<compile_context>
chip_gen: v7x
topology: tpu7x:2x2x1
jax: 0.10.0
libtpu: 0.0.40
codegen_flags: <defaults>
</compile_context>

<pallas_src>
import functools

import jax
import jax.numpy as jnp
from jax.experimental import pallas as pl
from jax.experimental.pallas import tpu as pltpu

BN_EPS = 1e-5
_VMEM_LIMIT = 32 * 1024 * 1024
_TAIL_PAD = 8  # extra scratch rows so every shifted tap slice stays in bounds


def _make_conv_tile(TH, W, C, compute_dtype):
    """Helper closed over static tile sizes: stage the halo'd padded tile into one
    contiguous VMEM buffer (flat row pitch W+2) and compute the 3x3 conv as 9
    shifted-slice MXU matmuls with f32 accumulation."""
    W2 = W + 2
    RT = TH * W2

    def conv_tile(xa_ref, xb_ref, w_ref, xts_ref):
        # Stage TH rows + 2 halo rows of the padded input contiguously in VMEM.
        xts_ref[pl.ds(0, RT), :] = xa_ref[0]
        xts_ref[pl.ds(RT, 2 * W2), :] = xb_ref[0, 0]
        # Zero the tail pad so every shifted tap slice reads finite data.
        xts_ref[pl.ds(RT + 2 * W2, _TAIL_PAD), :] = jnp.zeros((_TAIL_PAD, C), compute_dtype)
        # 3x3 conv == 9 shifted matmuls.  (Folding all 9 taps into one K=9*C matmul is a
        # further MXU-occupancy optimization for large C; at small C the relayout cost of
        # building the concatenated patch in-kernel outweighs it.)
        acc = jnp.zeros((RT, C), jnp.float32)
        for t in range(9):
            dy, dx = divmod(t, 3)
            tap = xts_ref[pl.ds(dy * W2 + dx, RT), :]
            acc = acc + jnp.dot(tap, w_ref[t], preferred_element_type=jnp.float32)
        return acc

    return conv_tile


def _make_stats_kernel(TH, W, C, compute_dtype):
    """Pass 1: conv + per-tile BatchNorm partial sums (sum, sum of squares)."""
    W2 = W + 2
    RT = TH * W2
    conv_tile = _make_conv_tile(TH, W, C, compute_dtype)

    def kernel(xa_ref, xb_ref, w_ref, part_ref, xts_ref, mask_ref):
        acc = conv_tile(xa_ref, xb_ref, w_ref, xts_ref)
        # Valid-column mask: flat rows with (f % (W+2)) >= W are layout junk columns.
        mask_ref[...] = jnp.ones((RT, 1), jnp.float32)
        for r in range(TH):
            mask_ref[pl.ds(r * W2 + W, 2), :] = jnp.zeros((2, 1), jnp.float32)
        m = mask_ref[...]
        part_ref[0, 0, pl.ds(0, 1), :] = jnp.sum(acc * m, axis=0, keepdims=True)
        part_ref[0, 0, pl.ds(1, 1), :] = jnp.sum(acc * acc * m, axis=0, keepdims=True)

    return kernel


def _make_apply_kernel(TH, W, C, compute_dtype):
    """Pass 2: conv + BN affine + residual + ReLU with the 2x2/stride-2 max-pool fused
    into the epilogue (strided reads straight out of the flat row buffer)."""
    W2 = W + 2
    RT = TH * W2
    conv_tile = _make_conv_tile(TH, W, C, compute_dtype)

    def kernel(xa_ref, xb_ref, w_ref, scale_ref, shift_ref, out_ref, xts_ref, ys_ref):
        acc = conv_tile(xa_ref, xb_ref, w_ref, xts_ref)
        # Residual aliases the centre tap of the already-resident input tile.
        ident = xts_ref[pl.ds(W2 + 1, RT), :].astype(jnp.float32)
        y = acc * scale_ref[...] + shift_ref[...] + ident
        ys_ref[...] = jnp.maximum(y, 0.0)
        hw = W // 2
        for pr in range(TH // 2):
            base = 2 * pr * W2
            a = ys_ref[pl.ds(base, hw, stride=2), :]
            b = ys_ref[pl.ds(base + 1, hw, stride=2), :]
            c = ys_ref[pl.ds(base + W2, hw, stride=2), :]
            d = ys_ref[pl.ds(base + W2 + 1, hw, stride=2), :]
            out_ref[0, pr] = jnp.maximum(jnp.maximum(a, b),
                                         jnp.maximum(c, d)).astype(out_ref.dtype)

    return kernel


def _pick_tile_h(H, W, C, compute_dtype, budget_bytes=4 * 1024 * 1024):
    """Largest row tile with: TH | H, (TH*(W+2)) % 16 == 0 (sublane alignment, bf16-safe),
    and a per-step VMEM footprint (double-buffered BlockSpec inputs + scratch) that fits a
    budget sized conservatively for v7x's smaller VMEM."""
    esize = jnp.dtype(compute_dtype).itemsize
    W2 = W + 2
    legal = [th for th in (64, 32, 16, 8, 4, 2)
             if H % th == 0 and (th * W2) % 16 == 0]
    assert legal, f"no legal row tile for H={H}, W={W}"
    for th in legal:
        rt = th * W2
        need = (2 * rt * C * esize                       # xa tile, double buffered
                + 2 * 2 * W2 * C * esize                 # halo rows, double buffered
                + 9 * C * C * esize                      # weights (resident)
                + 2 * (th // 2) * (W // 2) * C * 4       # pooled out, double buffered
                + (rt + 2 * W2 + _TAIL_PAD) * C * esize  # xts scratch
                + rt * C * 4 + rt * 4)                   # ys + mask scratch
        if need <= budget_bytes:
            return th
    return legal[-1]


def basic_block_forward(x_nchw, conv_w, bn_gamma, bn_beta, *,
                        compute_dtype=jnp.bfloat16, tile_h=None):
    """Forward pass of BasicBlock (stride=1, downsample=None), NCHW in / NCHW out."""
    N, Cin, H, W = x_nchw.shape
    Cout = conv_w.shape[0]
    assert Cin == Cout, "residual add requires inplanes == planes (stride=1, no downsample)"
    assert H % 2 == 0 and W % 2 == 0, "2x2/stride-2 pool needs even H, W"
    out_dtype = x_nchw.dtype
    W2 = W + 2

    TH = tile_h if tile_h is not None else _pick_tile_h(H, W, Cin, compute_dtype)
    assert H % TH == 0 and TH % 2 == 0 and (TH * W2) % 16 == 0, (TH, H, W)
    HB = H // TH
    RT = TH * W2

    # NHWC + zero pad, cast once to the matmul dtype.  Two (aliased, copy-free) reshaped
    # views deliver each tile's TH rows and its 2 halo rows through plain BlockSpecs.
    x_nhwc = jnp.transpose(x_nchw, (0, 2, 3, 1))
    xp = jnp.pad(x_nhwc, ((0, 0), (1, 1), (1, 1), (0, 0))).astype(compute_dtype)
    xa = xp.reshape(N, (H + 2) * W2, Cin)
    xb = xp.reshape(N, (H + 2) // 2, 2 * W2, Cin)

    # Per-tap weights: (O, I, kh, kw) -> (kh, kw, I, O) -> (9, Cin, Cout).
    w_taps = jnp.transpose(conv_w, (2, 3, 1, 0)).reshape(9, Cin, Cout).astype(compute_dtype)

    grid = (N, HB)
    xa_spec = pl.BlockSpec((1, RT, Cin), lambda n, hb: (n, hb, 0))
    xb_spec = pl.BlockSpec((1, 1, 2 * W2, Cin),
                           lambda n, hb: (n, hb * (TH // 2) + (TH // 2), 0, 0))
    w_spec = pl.BlockSpec((9, Cin, Cout), lambda n, hb: (0, 0, 0))
    cparams = pltpu.CompilerParams(
        dimension_semantics=("parallel", "parallel"),
        vmem_limit_bytes=_VMEM_LIMIT)

    esize = jnp.dtype(compute_dtype).itemsize
    in_bytes = int(xa.size * esize + N * HB * 2 * W2 * Cin * esize + w_taps.size * esize)
    conv_flops = int(2 * 9 * Cin * Cout * N * H * W2)
    xts_scratch = pltpu.VMEM((RT + 2 * W2 + _TAIL_PAD, Cin), compute_dtype)

    # ---- pass 1: conv + per-tile BN partials (sum, sum of squares) -----------------
    part = pl.pallas_call(
        _make_stats_kernel(TH, W, Cin, compute_dtype),
        out_shape=jax.ShapeDtypeStruct((N, HB, 2, Cout), jnp.float32),
        grid=grid,
        in_specs=[xa_spec, xb_spec, w_spec],
        out_specs=pl.BlockSpec((1, 1, 2, Cout), lambda n, hb: (n, hb, 0, 0)),
        scratch_shapes=[xts_scratch, pltpu.VMEM((RT, 1), jnp.float32)],
        compiler_params=cparams,
        cost_estimate=pl.CostEstimate(
            flops=conv_flops, transcendentals=0,
            bytes_accessed=in_bytes + int(N * HB * 2 * Cout * 4)),
    )(xa, xb, w_taps)

    # ---- tiny host reduction: global train-mode batch stats -> fused scale/shift ----
    count = float(N * H * W)
    sums = jnp.sum(part[:, :, 0, :], axis=(0, 1))
    sumsq = jnp.sum(part[:, :, 1, :], axis=(0, 1))
    mean = sums / count
    var = jnp.maximum(sumsq / count - mean * mean, 0.0)
    scale = bn_gamma.astype(jnp.float32) * jax.lax.rsqrt(var + BN_EPS)
    shift = bn_beta.astype(jnp.float32) - mean * scale
    scale2 = scale.reshape(1, Cout)
    shift2 = shift.reshape(1, Cout)

    # ---- pass 2: conv + BN affine + residual + ReLU + fused 2x2 max-pool -------------
    pooled = pl.pallas_call(
        _make_apply_kernel(TH, W, Cin, compute_dtype),
        out_shape=jax.ShapeDtypeStruct((N, H // 2, W // 2, Cout), out_dtype),
        grid=grid,
        in_specs=[xa_spec, xb_spec, w_spec,
                  pl.BlockSpec((1, Cout), lambda n, hb: (0, 0)),
                  pl.BlockSpec((1, Cout), lambda n, hb: (0, 0))],
        out_specs=pl.BlockSpec((1, TH // 2, W // 2, Cout), lambda n, hb: (n, hb, 0, 0)),
        scratch_shapes=[xts_scratch, pltpu.VMEM((RT, Cout), jnp.float32)],
        compiler_params=cparams,
        cost_estimate=pl.CostEstimate(
            flops=conv_flops + int(8 * N * H * W * Cout), transcendentals=0,
            bytes_accessed=in_bytes + int(2 * Cout * 4 + N * (H // 2) * (W // 2) * Cout * 4)),
    )(xa, xb, w_taps, scale2, shift2)

    return jnp.transpose(pooled, (0, 3, 1, 2))  # back to NCHW


def reference_forward(x, w, gamma, beta, eps=BN_EPS):
    """Pure-JAX reference matching PyTorch BasicBlock.forward (train-mode BN)."""
    out = jax.lax.conv_general_dilated(
        x, w, window_strides=(1, 1), padding=((1, 1), (1, 1)),
        dimension_numbers=('NCHW', 'OIHW', 'NCHW'),
        precision=jax.lax.Precision.HIGHEST)
    mean = jnp.mean(out, axis=(0, 2, 3), keepdims=True)
    var = jnp.mean((out - mean) ** 2, axis=(0, 2, 3), keepdims=True)
    out = (out - mean) * jax.lax.rsqrt(var + eps)
    out = out * gamma[None, :, None, None] + beta[None, :, None, None]
    out = out + x
    out = jnp.maximum(out, 0.0)
    N, C, H, W = out.shape
    out = out.reshape(N, C, H // 2, 2, W // 2, 2).max(axis=(3, 5))
    return out


if __name__ == "__main__":
    key = jax.random.PRNGKey(0)
    k1, k2, k3, k4 = jax.random.split(key, 4)

    # inplanes = planes = 4 (required by residual add with downsample=None, stride=1)
    N, C, H, W = 2, 4, 16, 16
    x = jax.random.normal(k1, (N, C, H, W), jnp.float32)
    conv_w = 0.1 * jax.random.normal(k2, (C, C, 3, 3), jnp.float32)      # conv3x3, bias=False
    bn_gamma = 1.0 + 0.1 * jax.random.normal(k3, (C,), jnp.float32)      # BatchNorm2d.weight
    bn_beta = 0.1 * jax.random.normal(k4, (C,), jnp.float32)             # BatchNorm2d.bias

    fwd_bf16 = jax.jit(functools.partial(basic_block_forward,
                                         compute_dtype=jnp.bfloat16, tile_h=8))
    fwd_f32 = jax.jit(functools.partial(basic_block_forward,
                                        compute_dtype=jnp.float32, tile_h=8))

    out_bf16 = jax.block_until_ready(fwd_bf16(x, conv_w, bn_gamma, bn_beta))
    out_f32 = jax.block_until_ready(fwd_f32(x, conv_w, bn_gamma, bn_beta))
    assert out_bf16.shape == (N, C, H // 2, W // 2), out_bf16.shape

    ref = reference_forward(x, conv_w, bn_gamma, bn_beta)

    # f32 compute path: tight structural check; bf16 path: loose numerical check.
    err_f32 = float(jnp.max(jnp.abs(out_f32 - ref)))
    if err_f32 > 5e-3:
        raise AssertionError(f"f32 Pallas BasicBlock mismatch vs reference, max abs err = {err_f32}")
    err_bf16 = float(jnp.max(jnp.abs(out_bf16 - ref)))
    if err_bf16 > 1e-1:
        raise AssertionError(f"bf16 Pallas BasicBlock mismatch vs reference, max abs err = {err_bf16}")

    print("KERNEL_OK")
</pallas_src>

<mosaic_0001>
module attributes {stable_mosaic.version = 11 : i64} {
  func.func @kernel(%arg0: i32, %arg1: i32, %arg2: memref<1x144x4xbf16, #tpu.memory_space<vmem>>, %arg3: memref<1x1x36x4xbf16, #tpu.memory_space<vmem>>, %arg4: memref<9x4x4xbf16, #tpu.memory_space<vmem>>, %arg5: memref<1x1x2x4xf32, #tpu.memory_space<vmem>>, %arg6: memref<188x4xbf16, #tpu.memory_space<vmem>>, %arg7: memref<144x1xf32, #tpu.memory_space<vmem>>) attributes {dimension_semantics = [#tpu.dimension_semantics<parallel>, #tpu.dimension_semantics<parallel>], iteration_bounds = array<i64: 2, 2>, scalar_prefetch = 0 : i64, scratch_operands = 2 : i64, tpu.core_type = #tpu.core_type<tc>, window_params = [{transform_indices = @transform_0, window_bounds = array<i64: 1, 144, 4>}, {transform_indices = @transform_1, window_bounds = array<i64: 1, 1, 36, 4>}, {pipeline_mode = #tpu.pipeline_mode<synchronous>, transform_indices = @transform_2, window_bounds = array<i64: 9, 4, 4>}, {transform_indices = @transform_3, window_bounds = array<i64: 1, 1, 2, 4>}]} {
    %c0 = arith.constant 0 : index
    %c0_0 = arith.constant 0 : index
    %c0_1 = arith.constant 0 : index
    %0 = vector.load %arg2[%c0, %c0_0, %c0_1] : memref<1x144x4xbf16, #tpu.memory_space<vmem>>, vector<1x144x4xbf16>
    %1 = vector.shape_cast %0 : vector<1x144x4xbf16> to vector<144x4xbf16>
    %c0_2 = arith.constant 0 : index
    %c0_3 = arith.constant 0 : index
    %2 = vector.load %arg6[%c0_2, %c0_3] : memref<188x4xbf16, #tpu.memory_space<vmem>>, vector<144x4xbf16>
    tpu.vector_store %arg6[%c0_2, %c0_3], %1 {strides = array<i32>} : memref<188x4xbf16, #tpu.memory_space<vmem>>, vector<144x4xbf16>,
    %c0_4 = arith.constant 0 : index
    %c0_5 = arith.constant 0 : index
    %c0_6 = arith.constant 0 : index
    %c0_7 = arith.constant 0 : index
    %3 = vector.load %arg3[%c0_4, %c0_5, %c0_6, %c0_7] : memref<1x1x36x4xbf16, #tpu.memory_space<vmem>>, vector<1x1x36x4xbf16>
    %4 = vector.shape_cast %3 : vector<1x1x36x4xbf16> to vector<36x4xbf16>
    %c144 = arith.constant 144 : index
    %c0_8 = arith.constant 0 : index
    %5 = vector.load %arg6[%c144, %c0_8] : memref<188x4xbf16, #tpu.memory_space<vmem>>, vector<36x4xbf16>
    tpu.vector_store %arg6[%c144, %c0_8], %4 {strides = array<i32>} : memref<188x4xbf16, #tpu.memory_space<vmem>>, vector<36x4xbf16>,
    %cst = arith.constant 0.000000e+00 : bf16
    %6 = vector.broadcast %cst : bf16 to vector<8x4xbf16>
    %c180 = arith.constant 180 : index
    %c0_9 = arith.constant 0 : index
    %7 = vector.load %arg6[%c180, %c0_9] : memref<188x4xbf16, #tpu.memory_space<vmem>>, vector<8x4xbf16>
    tpu.vector_store %arg6[%c180, %c0_9], %6 {strides = array<i32>} : memref<188x4xbf16, #tpu.memory_space<vmem>>, vector<8x4xbf16>,
    %cst_10 = arith.constant 0.000000e+00 : f32
    %8 = vector.broadcast %cst_10 : f32 to vector<144x4xf32>
    %c0_11 = arith.constant 0 : index
    %c0_12 = arith.constant 0 : index
    %9 = vector.load %arg6[%c0_11, %c0_12] : memref<188x4xbf16, #tpu.memory_space<vmem>>, vector<144x4xbf16>
    %c0_13 = arith.constant 0 : index
    %c0_14 = arith.constant 0 : index
    %c0_15 = arith.constant 0 : index
    %10 = vector.load %arg4[%c0_13, %c0_14, %c0_15] : memref<9x4x4xbf16, #tpu.memory_space<vmem>>, vector<1x4x4xbf16>
    %11 = vector.shape_cast %10 : vector<1x4x4xbf16> to vector<4x4xbf16>
    %cst_16 = arith.constant dense<0.000000e+00> : vector<144x4xf32>
    %12 = tpu.matmul %9, %11, %cst_16 {dimension_numbers = #tpu.dot_dimension_numbers<[1], [0], [0], [1], [0, 0, 1, 1], [], []>} : vector<144x4xbf16>, vector<4x4xbf16>, vector<144x4xf32> -> vector<144x4xf32>
    %13 = arith.addf %8, %12 : vector<144x4xf32>
    %c1 = arith.constant 1 : index
    %c0_17 = arith.constant 0 : index
    %14 = vector.load %arg6[%c1, %c0_17] : memref<188x4xbf16, #tpu.memory_space<vmem>>, vector<144x4xbf16>
    %c1_18 = arith.constant 1 : index
    %c0_19 = arith.constant 0 : index
    %c0_20 = arith.constant 0 : index
    %15 = vector.load %arg4[%c1_18, %c0_19, %c0_20] : memref<9x4x4xbf16, #tpu.memory_space<vmem>>, vector<1x4x4xbf16>
    %16 = vector.shape_cast %15 : vector<1x4x4xbf16> to vector<4x4xbf16>
    %cst_21 = arith.constant dense<0.000000e+00> : vector<144x4xf32>
    %17 = tpu.matmul %14, %16, %cst_21 {dimension_numbers = #tpu.dot_dimension_numbers<[1], [0], [0], [1], [0, 0, 1, 1], [], []>} : vector<144x4xbf16>, vector<4x4xbf16>, vector<144x4xf32> -> vector<144x4xf32>
    %18 = arith.addf %13, %17 : vector<144x4xf32>
    %c2 = arith.constant 2 : index
    %c0_22 = arith.constant 0 : index
    %19 = vector.load %arg6[%c2, %c0_22] : memref<188x4xbf16, #tpu.memory_space<vmem>>, vector<144x4xbf16>
    %c2_23 = arith.constant 2 : index
    %c0_24 = arith.constant 0 : index
    %c0_25 = arith.constant 0 : index
    %20 = vector.load %arg4[%c2_23, %c0_24, %c0_25] : memref<9x4x4xbf16, #tpu.memory_space<vmem>>, vector<1x4x4xbf16>
    %21 = vector.shape_cast %20 : vector<1x4x4xbf16> to vector<4x4xbf16>
    %cst_26 = arith.constant dense<0.000000e+00> : vector<144x4xf32>
    %22 = tpu.matmul %19, %21, %cst_26 {dimension_numbers = #tpu.dot_dimension_numbers<[1], [0], [0], [1], [0, 0, 1, 1], [], []>} : vector<144x4xbf16>, vector<4x4xbf16>, vector<144x4xf32> -> vector<144x4xf32>
    %23 = arith.addf %18, %22 : vector<144x4xf32>
    %c18 = arith.constant 18 : index
    %c0_27 = arith.constant 0 : index
    %24 = vector.load %arg6[%c18, %c0_27] : memref<188x4xbf16, #tpu.memory_space<vmem>>, vector<144x4xbf16>
    %c3 = arith.constant 3 : index
    %c0_28 = arith.constant 0 : index
    %c0_29 = arith.constant 0 : index
    %25 = vector.load %arg4[%c3, %c0_28, %c0_29] : memref<9x4x4xbf16, #tpu.memory_space<vmem>>, vector<1x4x4xbf16>
    %26 = vector.shape_cast %25 : vector<1x4x4xbf16> to vector<4x4xbf16>
    %cst_30 = arith.constant dense<0.000000e+00> : vector<144x4xf32>
    %27 = tpu.matmul %24, %26, %cst_30 {dimension_numbers = #tpu.dot_dimension_numbers<[1], [0], [0], [1], [0, 0, 1, 1], [], []>} : vector<144x4xbf16>, vector<4x4xbf16>, vector<144x4xf32> -> vector<144x4xf32>
    %28 = arith.addf %23, %27 : vector<144x4xf32>
    %c19 = arith.constant 19 : index
    %c0_31 = arith.constant 0 : index
    %29 = vector.load %arg6[%c19, %c0_31] : memref<188x4xbf16, #tpu.memory_space<vmem>>, vector<144x4xbf16>
    %c4 = arith.constant 4 : index
    %c0_32 = arith.constant 0 : index
    %c0_33 = arith.constant 0 : index
    %30 = vector.load %arg4[%c4, %c0_32, %c0_33] : memref<9x4x4xbf16, #tpu.memory_space<vmem>>, vector<1x4x4xbf16>
    %31 = vector.shape_cast %30 : vector<1x4x4xbf16> to vector<4x4xbf16>
    %cst_34 = arith.constant dense<0.000000e+00> : vector<144x4xf32>
    %32 = tpu.matmul %29, %31, %cst_34 {dimension_numbers = #tpu.dot_dimension_numbers<[1], [0], [0], [1], [0, 0, 1, 1], [], []>} : vector<144x4xbf16>, vector<4x4xbf16>, vector<144x4xf32> -> vector<144x4xf32>
    %33 = arith.addf %28, %32 : vector<144x4xf32>
    %c20 = arith.constant 20 : index
    %c0_35 = arith.constant 0 : index
    %34 = vector.load %arg6[%c20, %c0_35] : memref<188x4xbf16, #tpu.memory_space<vmem>>, vector<144x4xbf16>
    %c5 = arith.constant 5 : index
    %c0_36 = arith.constant 0 : index
    %c0_37 = arith.constant 0 : index
    %35 = vector.load %arg4[%c5, %c0_36, %c0_37] : memref<9x4x4xbf16, #tpu.memory_space<vmem>>, vector<1x4x4xbf16>
    %36 = vector.shape_cast %35 : vector<1x4x4xbf16> to vector<4x4xbf16>
    %cst_38 = arith.constant dense<0.000000e+00> : vector<144x4xf32>
    %37 = tpu.matmul %34, %36, %cst_38 {dimension_numbers = #tpu.dot_dimension_numbers<[1], [0], [0], [1], [0, 0, 1, 1], [], []>} : vector<144x4xbf16>, vector<4x4xbf16>, vector<144x4xf32> -> vector<144x4xf32>
    %38 = arith.addf %33, %37 : vector<144x4xf32>
    %c36 = arith.constant 36 : index
    %c0_39 = arith.constant 0 : index
    %39 = vector.load %arg6[%c36, %c0_39] : memref<188x4xbf16, #tpu.memory_space<vmem>>, vector<144x4xbf16>
    %c6 = arith.constant 6 : index
    %c0_40 = arith.constant 0 : index
    %c0_41 = arith.constant 0 : index
    %40 = vector.load %arg4[%c6, %c0_40, %c0_41] : memref<9x4x4xbf16, #tpu.memory_space<vmem>>, vector<1x4x4xbf16>
    %41 = vector.shape_cast %40 : vector<1x4x4xbf16> to vector<4x4xbf16>
    %cst_42 = arith.constant dense<0.000000e+00> : vector<144x4xf32>
    %42 = tpu.matmul %39, %41, %cst_42 {dimension_numbers = #tpu.dot_dimension_numbers<[1], [0], [0], [1], [0, 0, 1, 1], [], []>} : vector<144x4xbf16>, vector<4x4xbf16>, vector<144x4xf32> -> vector<144x4xf32>
    %43 = arith.addf %38, %42 : vector<144x4xf32>
    %c37 = arith.constant 37 : index
    %c0_43 = arith.constant 0 : index
    %44 = vector.load %arg6[%c37, %c0_43] : memref<188x4xbf16, #tpu.memory_space<vmem>>, vector<144x4xbf16>
    %c7 = arith.constant 7 : index
    %c0_44 = arith.constant 0 : index
    %c0_45 = arith.constant 0 : index
    %45 = vector.load %arg4[%c7, %c0_44, %c0_45] : memref<9x4x4xbf16, #tpu.memory_space<vmem>>, vector<1x4x4xbf16>
    %46 = vector.shape_cast %45 : vector<1x4x4xbf16> to vector<4x4xbf16>
    %cst_46 = arith.constant dense<0.000000e+00> : vector<144x4xf32>
    %47 = tpu.matmul %44, %46, %cst_46 {dimension_numbers = #tpu.dot_dimension_numbers<[1], [0], [0], [1], [0, 0, 1, 1], [], []>} : vector<144x4xbf16>, vector<4x4xbf16>, vector<144x4xf32> -> vector<144x4xf32>
    %48 = arith.addf %43, %47 : vector<144x4xf32>
    %c38 = arith.constant 38 : index
    %c0_47 = arith.constant 0 : index
    %49 = vector.load %arg6[%c38, %c0_47] : memref<188x4xbf16, #tpu.memory_space<vmem>>, vector<144x4xbf16>
    %c8 = arith.constant 8 : index
    %c0_48 = arith.constant 0 : index
    %c0_49 = arith.constant 0 : index
    %50 = vector.load %arg4[%c8, %c0_48, %c0_49] : memref<9x4x4xbf16, #tpu.memory_space<vmem>>, vector<1x4x4xbf16>
    %51 = vector.shape_cast %50 : vector<1x4x4xbf16> to vector<4x4xbf16>
    %cst_50 = arith.constant dense<0.000000e+00> : vector<144x4xf32>
    %52 = tpu.matmul %49, %51, %cst_50 {dimension_numbers = #tpu.dot_dimension_numbers<[1], [0], [0], [1], [0, 0, 1, 1], [], []>} : vector<144x4xbf16>, vector<4x4xbf16>, vector<144x4xf32> -> vector<144x4xf32>
    %53 = arith.addf %48, %52 : vector<144x4xf32>
    %cst_51 = arith.constant 1.000000e+00 : f32
    %54 = vector.broadcast %cst_51 : f32 to vector<144x1xf32>
    %c0_52 = arith.constant 0 : index
    %c0_53 = arith.constant 0 : index
    %55 = vector.load %arg7[%c0_52, %c0_53] : memref<144x1xf32, #tpu.memory_space<vmem>>, vector<144x1xf32>
    tpu.vector_store %arg7[%c0_52, %c0_53], %54 {strides = array<i32>} : memref<144x1xf32, #tpu.memory_space<vmem>>, vector<144x1xf32>,
    %cst_54 = arith.constant 0.000000e+00 : f32
    %56 = vector.broadcast %cst_54 : f32 to vector<2x1xf32>
    %c16 = arith.constant 16 : index
    %c0_55 = arith.constant 0 : index
    %57 = vector.load %arg7[%c16, %c0_55] : memref<144x1xf32, #tpu.memory_space<vmem>>, vector<2x1xf32>
    tpu.vector_store %arg7[%c16, %c0_55], %56 {strides = array<i32>} : memref<144x1xf32, #tpu.memory_space<vmem>>, vector<2x1xf32>,
    %cst_56 = arith.constant 0.000000e+00 : f32
    %58 = vector.broadcast %cst_56 : f32 to vector<2x1xf32>
    %c34 = arith.constant 34 : index
    %c0_57 = arith.constant 0 : index
    %59 = vector.load %arg7[%c34, %c0_57] : memref<144x1xf32, #tpu.memory_space<vmem>>, vector<2x1xf32>
    tpu.vector_store %arg7[%c34, %c0_57], %58 {strides = array<i32>} : memref<144x1xf32, #tpu.memory_space<vmem>>, vector<2x1xf32>,
    %cst_58 = arith.constant 0.000000e+00 : f32
    %60 = vector.broadcast %cst_58 : f32 to vector<2x1xf32>
    %c52 = arith.constant 52 : index
    %c0_59 = arith.constant 0 : index
    %61 = vector.load %arg7[%c52, %c0_59] : memref<144x1xf32, #tpu.memory_space<vmem>>, vector<2x1xf32>
    tpu.vector_store %arg7[%c52, %c0_59], %60 {strides = array<i32>} : memref<144x1xf32, #tpu.memory_space<vmem>>, vector<2x1xf32>,
    %cst_60 = arith.constant 0.000000e+00 : f32
    %62 = vector.broadcast %cst_60 : f32 to vector<2x1xf32>
    %c70 = arith.constant 70 : index
    %c0_61 = arith.constant 0 : index
    %63 = vector.load %arg7[%c70, %c0_61] : memref<144x1xf32, #tpu.memory_space<vmem>>, vector<2x1xf32>
    tpu.vector_store %arg7[%c70, %c0_61], %62 {strides = array<i32>} : memref<144x1xf32, #tpu.memory_space<vmem>>, vector<2x1xf32>,
    %cst_62 = arith.constant 0.000000e+00 : f32
    %64 = vector.broadcast %cst_62 : f32 to vector<2x1xf32>
    %c88 = arith.constant 88 : index
    %c0_63 = arith.constant 0 : index
    %65 = vector.load %arg7[%c88, %c0_63] : memref<144x1xf32, #tpu.memory_space<vmem>>, vector<2x1xf32>
    tpu.vector_store %arg7[%c88, %c0_63], %64 {strides = array<i32>} : memref<144x1xf32, #tpu.memory_space<vmem>>, vector<2x1xf32>,
    %cst_64 = arith.constant 0.000000e+00 : f32
    %66 = vector.broadcast %cst_64 : f32 to vector<2x1xf32>
    %c106 = arith.constant 106 : index
    %c0_65 = arith.constant 0 : index
    %67 = vector.load %arg7[%c106, %c0_65] : memref<144x1xf32, #tpu.memory_space<vmem>>, vector<2x1xf32>
    tpu.vector_store %arg7[%c106, %c0_65], %66 {strides = array<i32>} : memref<144x1xf32, #tpu.memory_space<vmem>>, vector<2x1xf32>,
    %cst_66 = arith.constant 0.000000e+00 : f32
    %68 = vector.broadcast %cst_66 : f32 to vector<2x1xf32>
    %c124 = arith.constant 124 : index
    %c0_67 = arith.constant 0 : index
    %69 = vector.load %arg7[%c124, %c0_67] : memref<144x1xf32, #tpu.memory_space<vmem>>, vector<2x1xf32>
    tpu.vector_store %arg7[%c124, %c0_67], %68 {strides = array<i32>} : memref<144x1xf32, #tpu.memory_space<vmem>>, vector<2x1xf32>,
    %cst_68 = arith.constant 0.000000e+00 : f32
    %70 = vector.broadcast %cst_68 : f32 to vector<2x1xf32>
    %c142 = arith.constant 142 : index
    %c0_69 = arith.constant 0 : index
    %71 = vector.load %arg7[%c142, %c0_69] : memref<144x1xf32, #tpu.memory_space<vmem>>, vector<2x1xf32>
    tpu.vector_store %arg7[%c142, %c0_69], %70 {strides = array<i32>} : memref<144x1xf32, #tpu.memory_space<vmem>>, vector<2x1xf32>,
    %c0_70 = arith.constant 0 : index
    %c0_71 = arith.constant 0 : index
    %72 = vector.load %arg7[%c0_70, %c0_71] : memref<144x1xf32, #tpu.memory_space<vmem>>, vector<144x1xf32>
    %73 = vector.broadcast %72 : vector<144x1xf32> to vector<144x4xf32>
    %74 = arith.mulf %53, %73 : vector<144x4xf32>
    %cst_72 = arith.constant dense<0.000000e+00> : vector<4xf32>
    %75 = vector.multi_reduction <add>, %74, %cst_72 [0] : vector<144x4xf32> to vector<4xf32>
    %76 = vector.shape_cast %75 : vector<4xf32> to vector<1x4xf32>
    %c0_73 = arith.constant 0 : index
    %c0_74 = arith.constant 0 : index
    %c0_75 = arith.constant 0 : index
    %c0_76 = arith.constant 0 : index
    %77 = vector.load %arg5[%c0_73, %c0_74, %c0_75, %c0_76] : memref<1x1x2x4xf32, #tpu.memory_space<vmem>>, vector<1x1x1x4xf32>
    %78 = vector.shape_cast %77 : vector<1x1x1x4xf32> to vector<1x4xf32>
    %79 = vector.shape_cast %76 : vector<1x4xf32> to vector<1x1x1x4xf32>
    tpu.vector_store %arg5[%c0_73, %c0_74, %c0_75, %c0_76], %79 {strides = array<i32>} : memref<1x1x2x4xf32, #tpu.memory_space<vmem>>, vector<1x1x1x4xf32>,
    %80 = arith.mulf %53, %53 : vector<144x4xf32>
    %81 = vector.broadcast %72 : vector<144x1xf32> to vector<144x4xf32>
    %82 = arith.mulf %80, %81 : vector<144x4xf32>
    %cst_77 = arith.constant dense<0.000000e+00> : vector<4xf32>
    %83 = vector.multi_reduction <add>, %82, %cst_77 [0] : vector<144x4xf32> to vector<4xf32>
    %84 = vector.shape_cast %83 : vector<4xf32> to vector<1x4xf32>
    %c0_78 = arith.constant 0 : index
    %c0_79 = arith.constant 0 : index
    %c1_80 = arith.constant 1 : index
    %c0_81 = arith.constant 0 : index
    %85 = vector.load %arg5[%c0_78, %c0_79, %c1_80, %c0_81] : memref<1x1x2x4xf32, #tpu.memory_space<vmem>>, vector<1x1x1x4xf32>
    %86 = vector.shape_cast %85 : vector<1x1x1x4xf32> to vector<1x4xf32>
    %87 = vector.shape_cast %84 : vector<1x4xf32> to vector<1x1x1x4xf32>
    tpu.vector_store %arg5[%c0_78, %c0_79, %c1_80, %c0_81], %87 {strides = array<i32>} : memref<1x1x2x4xf32, #tpu.memory_space<vmem>>, vector<1x1x1x4xf32>,
    return
  }
  func.func @transform_0(%arg0: i32, %arg1: i32) -> (i32, i32, i32) {
    %c0_i32 = arith.constant 0 : i32
    %c0_i32_0 = arith.constant 0 : i32
    return %arg0, %arg1, %c0_i32 : i32, i32, i32
  }
  func.func @transform_1(%arg0: i32, %arg1: i32) -> (i32, i32, i32, i32) {
    %c4_i32 = arith.constant 4 : i32
    %0 = arith.muli %arg1, %c4_i32 : i32
    %c4_i32_0 = arith.constant 4 : i32
    %1 = arith.addi %0, %c4_i32_0 : i32
    %c0_i32 = arith.constant 0 : i32
    %c0_i32_1 = arith.constant 0 : i32
    %c0_i32_2 = arith.constant 0 : i32
    return %arg0, %1, %c0_i32, %c0_i32_1 : i32, i32, i32, i32
  }
  func.func @transform_2(%arg0: i32, %arg1: i32) -> (i32, i32, i32) {
    %c0_i32 = arith.constant 0 : i32
    %c0_i32_0 = arith.constant 0 : i32
    %c0_i32_1 = arith.constant 0 : i32
    %c0_i32_2 = arith.constant 0 : i32
    return %c0_i32, %c0_i32_0, %c0_i32_1 : i32, i32, i32
  }
  func.func @transform_3(%arg0: i32, %arg1: i32) -> (i32, i32, i32, i32) {
    %c0_i32 = arith.constant 0 : i32
    %c0_i32_0 = arith.constant 0 : i32
    %c0_i32_1 = arith.constant 0 : i32
    return %arg0, %arg1, %c0_i32, %c0_i32_0 : i32, i32, i32, i32
  }
}

module attributes {stable_mosaic.version = 11 : i64} {
  func.func @kernel(%arg0: i32, %arg1: i32, %arg2: memref<1x144x4xbf16, #tpu.memory_space<vmem>>, %arg3: memref<1x1x36x4xbf16, #tpu.memory_space<vmem>>, %arg4: memref<9x4x4xbf16, #tpu.memory_space<vmem>>, %arg5: memref<1x4xf32, #tpu.memory_space<vmem>>, %arg6: memref<1x4xf32, #tpu.memory_space<vmem>>, %arg7: memref<1x4x8x4xf32, #tpu.memory_space<vmem>>, %arg8: memref<188x4xbf16, #tpu.memory_space<vmem>>, %arg9: memref<144x4xf32, #tpu.memory_space<vmem>>) attributes {dimension_semantics = [#tpu.dimension_semantics<parallel>, #tpu.dimension_semantics<parallel>], iteration_bounds = array<i64: 2, 2>, scalar_prefetch = 0 : i64, scratch_operands = 2 : i64, tpu.core_type = #tpu.core_type<tc>, window_params = [{transform_indices = @transform_0, window_bounds = array<i64: 1, 144, 4>}, {transform_indices = @transform_1, window_bounds = array<i64: 1, 1, 36, 4>}, {pipeline_mode = #tpu.pipeline_mode<synchronous>, transform_indices = @transform_2, window_bounds = array<i64: 9, 4, 4>}, {pipeline_mode = #tpu.pipeline_mode<synchronous>, transform_indices = @transform_3, window_bounds = array<i64: 1, 4>}, {pipeline_mode = #tpu.pipeline_mode<synchronous>, transform_indices = @transform_4, window_bounds = array<i64: 1, 4>}, {transform_indices = @transform_5, window_bounds = array<i64: 1, 4, 8, 4>}]} {
    %c0 = arith.constant 0 : index
    %c0_0 = arith.constant 0 : index
    %c0_1 = arith.constant 0 : index
    %0 = vector.load %arg2[%c0, %c0_0, %c0_1] : memref<1x144x4xbf16, #tpu.memory_space<vmem>>, vector<1x144x4xbf16>
    %1 = vector.shape_cast %0 : vector<1x144x4xbf16> to vector<144x4xbf16>
    %c0_2 = arith.constant 0 : index
    %c0_3 = arith.constant 0 : index
    %2 = vector.load %arg8[%c0_2, %c0_3] : memref<188x4xbf16, #tpu.memory_space<vmem>>, vector<144x4xbf16>
    tpu.vector_store %arg8[%c0_2, %c0_3], %1 {strides = array<i32>} : memref<188x4xbf16, #tpu.memory_space<vmem>>, vector<144x4xbf16>,
    %c0_4 = arith.constant 0 : index
    %c0_5 = arith.constant 0 : index
    %c0_6 = arith.constant 0 : index
    %c0_7 = arith.constant 0 : index
    %3 = vector.load %arg3[%c0_4, %c0_5, %c0_6, %c0_7] : memref<1x1x36x4xbf16, #tpu.memory_space<vmem>>, vector<1x1x36x4xbf16>
    %4 = vector.shape_cast %3 : vector<1x1x36x4xbf16> to vector<36x4xbf16>
    %c144 = arith.constant 144 : index
    %c0_8 = arith.constant 0 : index
    %5 = vector.load %arg8[%c144, %c0_8] : memref<188x4xbf16, #tpu.memory_space<vmem>>, vector<36x4xbf16>
    tpu.vector_store %arg8[%c144, %c0_8], %4 {strides = array<i32>} : memref<188x4xbf16, #tpu.memory_space<vmem>>, vector<36x4xbf16>,
    %cst = arith.constant 0.000000e+00 : bf16
    %6 = vector.broadcast %cst : bf16 to vector<8x4xbf16>
    %c180 = arith.constant 180 : index
    %c0_9 = arith.constant 0 : index
    %7 = vector.load %arg8[%c180, %c0_9] : memref<188x4xbf16, #tpu.memory_space<vmem>>, vector<8x4xbf16>
    tpu.vector_store %arg8[%c180, %c0_9], %6 {strides = array<i32>} : memref<188x4xbf16, #tpu.memory_space<vmem>>, vector<8x4xbf16>,
    %cst_10 = arith.constant 0.000000e+00 : f32
    %8 = vector.broadcast %cst_10 : f32 to vector<144x4xf32>
    %c0_11 = arith.constant 0 : index
    %c0_12 = arith.constant 0 : index
    %9 = vector.load %arg8[%c0_11, %c0_12] : memref<188x4xbf16, #tpu.memory_space<vmem>>, vector<144x4xbf16>
    %c0_13 = arith.constant 0 : index
    %c0_14 = arith.constant 0 : index
    %c0_15 = arith.constant 0 : index
    %10 = vector.load %arg4[%c0_13, %c0_14, %c0_15] : memref<9x4x4xbf16, #tpu.memory_space<vmem>>, vector<1x4x4xbf16>
    %11 = vector.shape_cast %10 : vector<1x4x4xbf16> to vector<4x4xbf16>
    %cst_16 = arith.constant dense<0.000000e+00> : vector<144x4xf32>
    %12 = tpu.matmul %9, %11, %cst_16 {dimension_numbers = #tpu.dot_dimension_numbers<[1], [0], [0], [1], [0, 0, 1, 1], [], []>} : vector<144x4xbf16>, vector<4x4xbf16>, vector<144x4xf32> -> vector<144x4xf32>
    %13 = arith.addf %8, %12 : vector<144x4xf32>
    %c1 = arith.constant 1 : index
    %c0_17 = arith.constant 0 : index
    %14 = vector.load %arg8[%c1, %c0_17] : memref<188x4xbf16, #tpu.memory_space<vmem>>, vector<144x4xbf16>
    %c1_18 = arith.constant 1 : index
    %c0_19 = arith.constant 0 : index
    %c0_20 = arith.constant 0 : index
    %15 = vector.load %arg4[%c1_18, %c0_19, %c0_20] : memref<9x4x4xbf16, #tpu.memory_space<vmem>>, vector<1x4x4xbf16>
    %16 = vector.shape_cast %15 : vector<1x4x4xbf16> to vector<4x4xbf16>
    %cst_21 = arith.constant dense<0.000000e+00> : vector<144x4xf32>
    %17 = tpu.matmul %14, %16, %cst_21 {dimension_numbers = #tpu.dot_dimension_numbers<[1], [0], [0], [1], [0, 0, 1, 1], [], []>} : vector<144x4xbf16>, vector<4x4xbf16>, vector<144x4xf32> -> vector<144x4xf32>
    %18 = arith.addf %13, %17 : vector<144x4xf32>
    %c2 = arith.constant 2 : index
    %c0_22 = arith.constant 0 : index
    %19 = vector.load %arg8[%c2, %c0_22] : memref<188x4xbf16, #tpu.memory_space<vmem>>, vector<144x4xbf16>
    %c2_23 = arith.constant 2 : index
    %c0_24 = arith.constant 0 : index
    %c0_25 = arith.constant 0 : index
    %20 = vector.load %arg4[%c2_23, %c0_24, %c0_25] : memref<9x4x4xbf16, #tpu.memory_space<vmem>>, vector<1x4x4xbf16>
    %21 = vector.shape_cast %20 : vector<1x4x4xbf16> to vector<4x4xbf16>
    %cst_26 = arith.constant dense<0.000000e+00> : vector<144x4xf32>
    %22 = tpu.matmul %19, %21, %cst_26 {dimension_numbers = #tpu.dot_dimension_numbers<[1], [0], [0], [1], [0, 0, 1, 1], [], []>} : vector<144x4xbf16>, vector<4x4xbf16>, vector<144x4xf32> -> vector<144x4xf32>
    %23 = arith.addf %18, %22 : vector<144x4xf32>
    %c18 = arith.constant 18 : index
    %c0_27 = arith.constant 0 : index
    %24 = vector.load %arg8[%c18, %c0_27] : memref<188x4xbf16, #tpu.memory_space<vmem>>, vector<144x4xbf16>
    %c3 = arith.constant 3 : index
    %c0_28 = arith.constant 0 : index
    %c0_29 = arith.constant 0 : index
    %25 = vector.load %arg4[%c3, %c0_28, %c0_29] : memref<9x4x4xbf16, #tpu.memory_space<vmem>>, vector<1x4x4xbf16>
    %26 = vector.shape_cast %25 : vector<1x4x4xbf16> to vector<4x4xbf16>
    %cst_30 = arith.constant dense<0.000000e+00> : vector<144x4xf32>
    %27 = tpu.matmul %24, %26, %cst_30 {dimension_numbers = #tpu.dot_dimension_numbers<[1], [0], [0], [1], [0, 0, 1, 1], [], []>} : vector<144x4xbf16>, vector<4x4xbf16>, vector<144x4xf32> -> vector<144x4xf32>
    %28 = arith.addf %23, %27 : vector<144x4xf32>
    %c19 = arith.constant 19 : index
    %c0_31 = arith.constant 0 : index
    %29 = vector.load %arg8[%c19, %c0_31] : memref<188x4xbf16, #tpu.memory_space<vmem>>, vector<144x4xbf16>
    %c4 = arith.constant 4 : index
    %c0_32 = arith.constant 0 : index
    %c0_33 = arith.constant 0 : index
    %30 = vector.load %arg4[%c4, %c0_32, %c0_33] : memref<9x4x4xbf16, #tpu.memory_space<vmem>>, vector<1x4x4xbf16>
    %31 = vector.shape_cast %30 : vector<1x4x4xbf16> to vector<4x4xbf16>
    %cst_34 = arith.constant dense<0.000000e+00> : vector<144x4xf32>
    %32 = tpu.matmul %29, %31, %cst_34 {dimension_numbers = #tpu.dot_dimension_numbers<[1], [0], [0], [1], [0, 0, 1, 1], [], []>} : vector<144x4xbf16>, vector<4x4xbf16>, vector<144x4xf32> -> vector<144x4xf32>
    %33 = arith.addf %28, %32 : vector<144x4xf32>
    %c20 = arith.constant 20 : index
    %c0_35 = arith.constant 0 : index
    %34 = vector.load %arg8[%c20, %c0_35] : memref<188x4xbf16, #tpu.memory_space<vmem>>, vector<144x4xbf16>
    %c5 = arith.constant 5 : index
    %c0_36 = arith.constant 0 : index
    %c0_37 = arith.constant 0 : index
    %35 = vector.load %arg4[%c5, %c0_36, %c0_37] : memref<9x4x4xbf16, #tpu.memory_space<vmem>>, vector<1x4x4xbf16>
    %36 = vector.shape_cast %35 : vector<1x4x4xbf16> to vector<4x4xbf16>
    %cst_38 = arith.constant dense<0.000000e+00> : vector<144x4xf32>
    %37 = tpu.matmul %34, %36, %cst_38 {dimension_numbers = #tpu.dot_dimension_numbers<[1], [0], [0], [1], [0, 0, 1, 1], [], []>} : vector<144x4xbf16>, vector<4x4xbf16>, vector<144x4xf32> -> vector<144x4xf32>
    %38 = arith.addf %33, %37 : vector<144x4xf32>
    %c36 = arith.constant 36 : index
    %c0_39 = arith.constant 0 : index
    %39 = vector.load %arg8[%c36, %c0_39] : memref<188x4xbf16, #tpu.memory_space<vmem>>, vector<144x4xbf16>
    %c6 = arith.constant 6 : index
    %c0_40 = arith.constant 0 : index
    %c0_41 = arith.constant 0 : index
    %40 = vector.load %arg4[%c6, %c0_40, %c0_41] : memref<9x4x4xbf16, #tpu.memory_space<vmem>>, vector<1x4x4xbf16>
    %41 = vector.shape_cast %40 : vector<1x4x4xbf16> to vector<4x4xbf16>
    %cst_42 = arith.constant dense<0.000000e+00> : vector<144x4xf32>
    %42 = tpu.matmul %39, %41, %cst_42 {dimension_numbers = #tpu.dot_dimension_numbers<[1], [0], [0], [1], [0, 0, 1, 1], [], []>} : vector<144x4xbf16>, vector<4x4xbf16>, vector<144x4xf32> -> vector<144x4xf32>
    %43 = arith.addf %38, %42 : vector<144x4xf32>
    %c37 = arith.constant 37 : index
    %c0_43 = arith.constant 0 : index
    %44 = vector.load %arg8[%c37, %c0_43] : memref<188x4xbf16, #tpu.memory_space<vmem>>, vector<144x4xbf16>
    %c7 = arith.constant 7 : index
    %c0_44 = arith.constant 0 : index
    %c0_45 = arith.constant 0 : index
    %45 = vector.load %arg4[%c7, %c0_44, %c0_45] : memref<9x4x4xbf16, #tpu.memory_space<vmem>>, vector<1x4x4xbf16>
    %46 = vector.shape_cast %45 : vector<1x4x4xbf16> to vector<4x4xbf16>
    %cst_46 = arith.constant dense<0.000000e+00> : vector<144x4xf32>
    %47 = tpu.matmul %44, %46, %cst_46 {dimension_numbers = #tpu.dot_dimension_numbers<[1], [0], [0], [1], [0, 0, 1, 1], [], []>} : vector<144x4xbf16>, vector<4x4xbf16>, vector<144x4xf32> -> vector<144x4xf32>
    %48 = arith.addf %43, %47 : vector<144x4xf32>
    %c38 = arith.constant 38 : index
    %c0_47 = arith.constant 0 : index
    %49 = vector.load %arg8[%c38, %c0_47] : memref<188x4xbf16, #tpu.memory_space<vmem>>, vector<144x4xbf16>
    %c8 = arith.constant 8 : index
    %c0_48 = arith.constant 0 : index
    %c0_49 = arith.constant 0 : index
    %50 = vector.load %arg4[%c8, %c0_48, %c0_49] : memref<9x4x4xbf16, #tpu.memory_space<vmem>>, vector<1x4x4xbf16>
    %51 = vector.shape_cast %50 : vector<1x4x4xbf16> to vector<4x4xbf16>
    %cst_50 = arith.constant dense<0.000000e+00> : vector<144x4xf32>
    %52 = tpu.matmul %49, %51, %cst_50 {dimension_numbers = #tpu.dot_dimension_numbers<[1], [0], [0], [1], [0, 0, 1, 1], [], []>} : vector<144x4xbf16>, vector<4x4xbf16>, vector<144x4xf32> -> vector<144x4xf32>
    %53 = arith.addf %48, %52 : vector<144x4xf32>
    %c19_51 = arith.constant 19 : index
    %c0_52 = arith.constant 0 : index
    %54 = vector.load %arg8[%c19_51, %c0_52] : memref<188x4xbf16, #tpu.memory_space<vmem>>, vector<144x4xbf16>
    %55 = arith.extf %54 : vector<144x4xbf16> to vector<144x4xf32>
    %c0_53 = arith.constant 0 : index
    %c0_54 = arith.constant 0 : index
    %56 = vector.load %arg5[%c0_53, %c0_54] : memref<1x4xf32, #tpu.memory_space<vmem>>, vector<1x4xf32>
    %57 = vector.broadcast %56 : vector<1x4xf32> to vector<144x4xf32>
    %58 = arith.mulf %53, %57 : vector<144x4xf32>
    %c0_55 = arith.constant 0 : index
    %c0_56 = arith.constant 0 : index
    %59 = vector.load %arg6[%c0_55, %c0_56] : memref<1x4xf32, #tpu.memory_space<vmem>>, vector<1x4xf32>
    %60 = vector.broadcast %59 : vector<1x4xf32> to vector<144x4xf32>
    %61 = arith.addf %58, %60 : vector<144x4xf32>
    %62 = arith.addf %61, %55 : vector<144x4xf32>
    %cst_57 = arith.constant 0.000000e+00 : f32
    %63 = vector.broadcast %cst_57 : f32 to vector<144x4xf32>
    %64 = arith.maximumf %62, %63 : vector<144x4xf32>
    %c0_58 = arith.constant 0 : index
    %c0_59 = arith.constant 0 : index
    %65 = vector.load %arg9[%c0_58, %c0_59] : memref<144x4xf32, #tpu.memory_space<vmem>>, vector<144x4xf32>
    tpu.vector_store %arg9[%c0_58, %c0_59], %64 {strides = array<i32>} : memref<144x4xf32, #tpu.memory_space<vmem>>, vector<144x4xf32>,
    %c0_60 = arith.constant 0 : index
    %c0_61 = arith.constant 0 : index
    %66 = tpu.strided_load %arg9[%c0_60, %c0_61] {strides = array<i32: 2, 1>} : memref<144x4xf32, #tpu.memory_space<vmem>>, vector<8x4xf32>
    %c1_62 = arith.constant 1 : index
    %c0_63 = arith.constant 0 : index
    %67 = tpu.strided_load %arg9[%c1_62, %c0_63] {strides = array<i32: 2, 1>} : memref<144x4xf32, #tpu.memory_space<vmem>>, vector<8x4xf32>
    %c18_64 = arith.constant 18 : index
    %c0_65 = arith.constant 0 : index
    %68 = tpu.strided_load %arg9[%c18_64, %c0_65] {strides = array<i32: 2, 1>} : memref<144x4xf32, #tpu.memory_space<vmem>>, vector<8x4xf32>
    %c19_66 = arith.constant 19 : index
    %c0_67 = arith.constant 0 : index
    %69 = tpu.strided_load %arg9[%c19_66, %c0_67] {strides = array<i32: 2, 1>} : memref<144x4xf32, #tpu.memory_space<vmem>>, vector<8x4xf32>
    %70 = arith.maximumf %66, %67 : vector<8x4xf32>
    %71 = arith.maximumf %68, %69 : vector<8x4xf32>
    %72 = arith.maximumf %70, %71 : vector<8x4xf32>
    %c0_68 = arith.constant 0 : index
    %c0_69 = arith.constant 0 : index
    %c0_70 = arith.constant 0 : index
    %c0_71 = arith.constant 0 : index
    %73 = vector.load %arg7[%c0_68, %c0_69, %c0_70, %c0_71] : memref<1x4x8x4xf32, #tpu.memory_space<vmem>>, vector<1x1x8x4xf32>
    %74 = vector.shape_cast %73 : vector<1x1x8x4xf32> to vector<8x4xf32>
    %75 = vector.shape_cast %72 : vector<8x4xf32> to vector<1x1x8x4xf32>
    tpu.vector_store %arg7[%c0_68, %c0_69, %c0_70, %c0_71], %75 {strides = array<i32>} : memref<1x4x8x4xf32, #tpu.memory_space<vmem>>, vector<1x1x8x4xf32>,
    %c36_72 = arith.constant 36 : index
    %c0_73 = arith.constant 0 : index
    %76 = tpu.strided_load %arg9[%c36_72, %c0_73] {strides = array<i32: 2, 1>} : memref<144x4xf32, #tpu.memory_space<vmem>>, vector<8x4xf32>
    %c37_74 = arith.constant 37 : index
    %c0_75 = arith.constant 0 : index
    %77 = tpu.strided_load %arg9[%c37_74, %c0_75] {strides = array<i32: 2, 1>} : memref<144x4xf32, #tpu.memory_space<vmem>>, vector<8x4xf32>
    %c54 = arith.constant 54 : index
    %c0_76 = arith.constant 0 : index
    %78 = tpu.strided_load %arg9[%c54, %c0_76] {strides = array<i32: 2, 1>} : memref<144x4xf32, #tpu.memory_space<vmem>>, vector<8x4xf32>
    %c55 = arith.constant 55 : index
    %c0_77 = arith.constant 0 : index
    %79 = tpu.strided_load %arg9[%c55, %c0_77] {strides = array<i32: 2, 1>} : memref<144x4xf32, #tpu.memory_space<vmem>>, vector<8x4xf32>
    %80 = arith.maximumf %76, %77 : vector<8x4xf32>
    %81 = arith.maximumf %78, %79 : vector<8x4xf32>
    %82 = arith.maximumf %80, %81 : vector<8x4xf32>
    %c0_78 = arith.constant 0 : index
    %c1_79 = arith.constant 1 : index
    %c0_80 = arith.constant 0 : index
    %c0_81 = arith.constant 0 : index
    %83 = vector.load %arg7[%c0_78, %c1_79, %c0_80, %c0_81] : memref<1x4x8x4xf32, #tpu.memory_space<vmem>>, vector<1x1x8x4xf32>
    %84 = vector.shape_cast %83 : vector<1x1x8x4xf32> to vector<8x4xf32>
    %85 = vector.shape_cast %82 : vector<8x4xf32> to vector<1x1x8x4xf32>
    tpu.vector_store %arg7[%c0_78, %c1_79, %c0_80, %c0_81], %85 {strides = array<i32>} : memref<1x4x8x4xf32, #tpu.memory_space<vmem>>, vector<1x1x8x4xf32>,
    %c72 = arith.constant 72 : index
    %c0_82 = arith.constant 0 : index
    %86 = tpu.strided_load %arg9[%c72, %c0_82] {strides = array<i32: 2, 1>} : memref<144x4xf32, #tpu.memory_space<vmem>>, vector<8x4xf32>
    %c73 = arith.constant 73 : index
    %c0_83 = arith.constant 0 : index
    %87 = tpu.strided_load %arg9[%c73, %c0_83] {strides = array<i32: 2, 1>} : memref<144x4xf32, #tpu.memory_space<vmem>>, vector<8x4xf32>
    %c90 = arith.constant 90 : index
    %c0_84 = arith.constant 0 : index
    %88 = tpu.strided_load %arg9[%c90, %c0_84] {strides = array<i32: 2, 1>} : memref<144x4xf32, #tpu.memory_space<vmem>>, vector<8x4xf32>
    %c91 = arith.constant 91 : index
    %c0_85 = arith.constant 0 : index
    %89 = tpu.strided_load %arg9[%c91, %c0_85] {strides = array<i32: 2, 1>} : memref<144x4xf32, #tpu.memory_space<vmem>>, vector<8x4xf32>
    %90 = arith.maximumf %86, %87 : vector<8x4xf32>
    %91 = arith.maximumf %88, %89 : vector<8x4xf32>
    %92 = arith.maximumf %90, %91 : vector<8x4xf32>
    %c0_86 = arith.constant 0 : index
    %c2_87 = arith.constant 2 : index
    %c0_88 = arith.constant 0 : index
    %c0_89 = arith.constant 0 : index
    %93 = vector.load %arg7[%c0_86, %c2_87, %c0_88, %c0_89] : memref<1x4x8x4xf32, #tpu.memory_space<vmem>>, vector<1x1x8x4xf32>
    %94 = vector.shape_cast %93 : vector<1x1x8x4xf32> to vector<8x4xf32>
    %95 = vector.shape_cast %92 : vector<8x4xf32> to vector<1x1x8x4xf32>
    tpu.vector_store %arg7[%c0_86, %c2_87, %c0_88, %c0_89], %95 {strides = array<i32>} : memref<1x4x8x4xf32, #tpu.memory_space<vmem>>, vector<1x1x8x4xf32>,
    %c108 = arith.constant 108 : index
    %c0_90 = arith.constant 0 : index
    %96 = tpu.strided_load %arg9[%c108, %c0_90] {strides = array<i32: 2, 1>} : memref<144x4xf32, #tpu.memory_space<vmem>>, vector<8x4xf32>
    %c109 = arith.constant 109 : index
    %c0_91 = arith.constant 0 : index
    %97 = tpu.strided_load %arg9[%c109, %c0_91] {strides = array<i32: 2, 1>} : memref<144x4xf32, #tpu.memory_space<vmem>>, vector<8x4xf32>
    %c126 = arith.constant 126 : index
    %c0_92 = arith.constant 0 : index
    %98 = tpu.strided_load %arg9[%c126, %c0_92] {strides = array<i32: 2, 1>} : memref<144x4xf32, #tpu.memory_space<vmem>>, vector<8x4xf32>
    %c127 = arith.constant 127 : index
    %c0_93 = arith.constant 0 : index
    %99 = tpu.strided_load %arg9[%c127, %c0_93] {strides = array<i32: 2, 1>} : memref<144x4xf32, #tpu.memory_space<vmem>>, vector<8x4xf32>
    %100 = arith.maximumf %96, %97 : vector<8x4xf32>
    %101 = arith.maximumf %98, %99 : vector<8x4xf32>
    %102 = arith.maximumf %100, %101 : vector<8x4xf32>
    %c0_94 = arith.constant 0 : index
    %c3_95 = arith.constant 3 : index
    %c0_96 = arith.constant 0 : index
    %c0_97 = arith.constant 0 : index
    %103 = vector.load %arg7[%c0_94, %c3_95, %c0_96, %c0_97] : memref<1x4x8x4xf32, #tpu.memory_space<vmem>>, vector<1x1x8x4xf32>
    %104 = vector.shape_cast %103 : vector<1x1x8x4xf32> to vector<8x4xf32>
    %105 = vector.shape_cast %102 : vector<8x4xf32> to vector<1x1x8x4xf32>
    tpu.vector_store %arg7[%c0_94, %c3_95, %c0_96, %c0_97], %105 {strides = array<i32>} : memref<1x4x8x4xf32, #tpu.memory_space<vmem>>, vector<1x1x8x4xf32>,
    return
  }
  func.func @transform_0(%arg0: i32, %arg1: i32) -> (i32, i32, i32) {
    %c0_i32 = arith.constant 0 : i32
    %c0_i32_0 = arith.constant 0 : i32
    return %arg0, %arg1, %c0_i32 : i32, i32, i32
  }
  func.func @transform_1(%arg0: i32, %arg1: i32) -> (i32, i32, i32, i32) {
    %c4_i32 = arith.constant 4 : i32
    %0 = arith.muli %arg1, %c4_i32 : i32
    %c4_i32_0 = arith.constant 4 : i32
    %1 = arith.addi %0, %c4_i32_0 : i32
    %c0_i32 = arith.constant 0 : i32
    %c0_i32_1 = arith.constant 0 : i32
    %c0_i32_2 = arith.constant 0 : i32
    return %arg0, %1, %c0_i32, %c0_i32_1 : i32, i32, i32, i32
  }
  func.func @transform_2(%arg0: i32, %arg1: i32) -> (i32, i32, i32) {
    %c0_i32 = arith.constant 0 : i32
    %c0_i32_0 = arith.constant 0 : i32
    %c0_i32_1 = arith.constant 0 : i32
    %c0_i32_2 = arith.constant 0 : i32
    return %c0_i32, %c0_i32_0, %c0_i32_1 : i32, i32, i32
  }
  func.func @transform_3(%arg0: i32, %arg1: i32) -> (i32, i32) {
    %c0_i32 = arith.constant 0 : i32
    %c0_i32_0 = arith.constant 0 : i32
    %c0_i32_1 = arith.constant 0 : i32
    return %c0_i32, %c0_i32_0 : i32, i32
  }
  func.func @transform_4(%arg0: i32, %arg1: i32) -> (i32, i32) {
    %c0_i32 = arith.constant 0 : i32
    %c0_i32_0 = arith.constant 0 : i32
    %c0_i32_1 = arith.constant 0 : i32
    return %c0_i32, %c0_i32_0 : i32, i32
  }
  func.func @transform_5(%arg0: i32, %arg1: i32) -> (i32, i32, i32, i32) {
    %c0_i32 = arith.constant 0 : i32
    %c0_i32_0 = arith.constant 0 : i32
    %c0_i32_1 = arith.constant 0 : i32
    return %arg0, %arg1, %c0_i32, %c0_i32_0 : i32, i32, i32, i32
  }
}

</mosaic_0001>

<bundles_post_ra>
// kernel: basic_block_forward.2
= control target key start
LH: loop header
LB: loop body
LE: loop exit
PB: predicated region body
PF: predicated region fallthrough
CT: control target
= control target key end

     0   :  { %s3623_s12 = smov 0   ;;  %s3625_s13 = smov 0   ;;  %s4381_s0 = inlined_call_operand.vmem [shape: bf16[2,324,4], index: 0, kind: input, shape index: {}]   ;;  %s4382_s1 = inlined_call_operand.vmem [shape: bf16[2,9,36,4], index: 1, kind: input, shape index: {}]   ;;  %s4383_s2 = inlined_call_operand.vmem [shape: bf16[9,4,4], index: 2, kind: input, shape index: {}]   ;;  %s4384_s3 = inlined_call_operand.vmem [shape: f32[2,2,2,4], index: 3, kind: output, shape index: {}]  }
   0x1   :  { %s3627_s14 = smov 0   ;;  %s3629_s15 = smov 0  }
   0x2   :  { %s3631_s16 = smov 0  }
   0x3 LB: > { %s22_s17 = sadd.s32 1, %s3589_s14  ;;  %s25_s18 = sadd.s32 1, %s3593_s15  ;;  %s3597_s16 = sphi %s3631_s16, %s13_s16   ;;  %s3593_s15 = sphi %s3629_s15, %s4388_s15   ;;  %s3589_s14 = sphi %s3627_s14, %s4387_s14   ;;  %s3585_s13 = sphi %s3625_s13, %s4386_s13   ;;  %s3581_s12 = sphi %s3623_s12, %s4385_s12  }
   0x4   : > { %p23_p0 = scmp.ge.s32.totalorder %s22_s17, 2  ;;  %p2642_p1 = scmp.ge.s32.totalorder %s3597_s16, 1 }
   0x5   : > { %p190_p2 = scmp.lt.s32.totalorder %s3597_s16, 5 }
   0x6   : > { %s4390_s17 = smov (%p23_p0, %s22_s17), 0  ;;  %s4392_s18 = smov (!%p23_p0, %s25_s18), %s3593_s15 }
   0x7   : > { %p191_p3 = pnand %p2642_p1, %p190_p2  ;;  %p27_p4 = scmp.ge.s32.totalorder %s4392_s18, 2 }
   0x8   : > { %vm502_vm0 = vcmask (!%p191_p3), 1041408   ;;  %v2708_v0 = vld [vmem:[%s4383_s2 + $0x8] sm:$0x3] (!%p191_p3)  ;;  %v2648_v1 = vld [vmem:[%s4383_s2 + $0x2] sm:$0x3] (!%p191_p3)  ;;  %v3599_v2 = vmov (!%p191_p3), 0.0  }
   0x9   : > { %s4394_s18 = smov (%p27_p4, %s4392_s18), 0  ;;  %194 = sbr.rel (%p191_p3) target bundleno = 602 (0x25a), region = 32 }
   0xa   : > { %3016 = vmatprep.subr.bf16.mxu0 (!%p191_p3), %v3599_v2  ;;  %2864 = vmatprep.subr.bf16.mxu1 (!%p191_p3), %v3599_v2  ;;  %v3666_v3 = vsel (!%p191_p3), %vm502_vm0, %v2708_v0, 0  ;;  %v504_v4 = vsel (!%p191_p3), %vm502_vm0, %v2648_v1, 0  ;;  %s236_s23 = smul.u32 (!%p191_p3), 18, %s3581_s12  ;;  %p241_p5 = scmp.lt.s32.totalorder (!%p191_p3), %s3585_s13, 1  ;;  %vm3600_vm1 = vmmov (!%p191_p3), 0   ;;  %vm294_vm2 = vcmask (!%p191_p3), 27648  }
   0xb   : > { %3017 = vmatpush3.bf16.msra.mxu0 (!%p191_p3), %v3666_v3  ;;  %2865 = vmatpush3.bf16.msra.mxu1 (!%p191_p3), %v504_v4  ;;  %v345_v11 = vld [vmem:[%s4383_s2] sm:$0x3] (!%p191_p3)  ;;  %s2644_s5 = sshll.u32 (!%p191_p3), %s3581_s12, 2  ;;  %vm397_vm3 = vsmask.f32 (!%p191_p3), 7424  ;;  %vm474_vm4 = vcmask (!%p191_p3), 31744  }
   0xc   : > { %2866 = vmatprep.mubr.msk.bf16.mxu1 (!%p191_p3), %vm3600_vm1, %v3599_v2  ;;  %3018 = vmatprep.mubr.msk.bf16.mxu0 (!%p191_p3), %vm3600_vm1, %v3599_v2  ;;  %p243_p6 = scmp.lt.s32.totalorder (!%p191_p3), %s236_s23, 40  ;;  %v630_v24 = vsel (!%p191_p3), %vm502_vm0, %v345_v11, 0  ;;  %vm1163_vm5 = vsmask.f32 (!%p191_p3), 6400  ;;  %s255_s6 = sadd.s32 (!%p191_p3), 4, %s2644_s5  ;;  %vm1412_vm6 = vcmask (!%p191_p3), 1045504  }
   0xd   : > { %3054 = vmatprep.subr.bf16.mxu0 (!%p191_p3), %v3599_v2  ;;  %2902 = vmatprep.subr.bf16.mxu1 (!%p191_p3), %v3599_v2  ;;  %p258_p7 = scmp.lt.s32.totalorder (!%p191_p3), %s255_s6, 8  ;;  %v2719_v41 = vld [vmem:[%s4383_s2 + $0xa] sm:$0x3] (!%p191_p3)  ;;  %vm322_vm7 = vcmask (!%p191_p3), 25600   ;;  %vm743_vm8 = vcmask (!%p191_p3), 1046528   ;;  %vm2254_vm10 = vcmask (!%p191_p3), 7168  }
   0xe   : > { %v1460_v57 = vsel (!%p191_p3), %vm502_vm0, %v2719_v41, 0  ;;  %vm1832_vm9 = vsmask.f32 (!%p191_p3), 5376  ;;  %vm2273_vm11 = vcmask (!%p191_p3), 1024   ;;  %vm2081_vm12 = vcmask (!%p191_p3), 1044480   ;;  %p269_p8 = scmp.lt.s32.totalorder (!%p191_p3), %s3581_s12, 1 }
   0xf   : > { %vm2449_vm13 = vcmask (!%p191_p3), 24576  }
  0x10   : > { %s4396_s13 = smov (!%p241_p5, %s3585_s13), 1  ;;  %s4398_s23 = smov (!%p243_p6, %s236_s23), 40 }
  0x11   : > { %s3478_s24 = smul.u32 41, %s4396_s13  ;;  %s4400_s6 = smov (!%p258_p7, %s255_s6), 8 }
  0x12   : > { %s3480_s9 = smul.u32 45, %s4396_s13  ;;  %s4402_s12 = smov (!%p269_p8, %s3581_s12), 1 }
  0x13   : > { %s246_s25 = sadd.s32 %s3478_s24, %s4398_s23  ;;  %s3479_s10 = smul.u32 5, %s4400_s6 }
  0x14   : > { %s2643_s26 = sshll.u32 %s246_s25, 2  ;;  %s2646_s6 = sshll.u32 %s4396_s13, 1 }
  0x15   : > { %s3685_s29 = scalar_lea.vmem %s4381_s0, %s2643_s26  ;;  %s262_s11 = sadd.s32 %s3480_s9, %s3479_s10 }
  0x16   : > { %v276_v5 = vld [vmem:[%s3685_s29] sm:$0xf]  ;;  %v277_v6 = vld [vmem:[%s3685_s29 + $0x4] sm:$0xf]  ;;  %v278_v7 = vld [vmem:[%s3685_s29 + $0x8] sm:$0xf]  ;;  %s272_s7 = sadd.s32 %s2646_s6, %s4402_s12 }
  0x17   : > { %v279_v8 = vld [vmem:[%s3685_s29 + $0xc] sm:$0xf]  ;;  %295 = vst.msk [vmem:[#allocation2] sm:$0xf] %vm294_vm2, %v276_v5  ;;  %296 = vst.msk [vmem:[#allocation2 + $0x4] sm:$0xf] %vm294_vm2, %v277_v6 }
  0x18   : > { %297 = vst.msk [vmem:[#allocation2 + $0x8] sm:$0xf] %vm294_vm2, %v278_v7  ;;  %v280_v9 = vld [vmem:[%s3685_s29 + $0x10] sm:$0xf]  ;;  %v281_v10 = vld [vmem:[%s3685_s29 + $0x14] sm:$0xf] }
  0x19   : > { %298 = vst.msk [vmem:[#allocation2 + $0xc] sm:$0xf] %vm294_vm2, %v279_v8  ;;  %299 = vst.msk [vmem:[#allocation2 + $0x10] sm:$0xf] %vm294_vm2, %v280_v9  ;;  %v282_v12 = vld [vmem:[%s3685_s29 + $0x18] sm:$0xf] }
  0x1a   : > { %300 = vst.msk [vmem:[#allocation2 + $0x14] sm:$0xf] %vm294_vm2, %v281_v10  ;;  %v283_v13 = vld [vmem:[%s3685_s29 + $0x1c] sm:$0xf]  ;;  %v284_v14 = vld [vmem:[%s3685_s29 + $0x20] sm:$0xf] }
  0x1b   : > { %301 = vst.msk [vmem:[#allocation2 + $0x18] sm:$0xf] %vm294_vm2, %v282_v12  ;;  %302 = vst.msk [vmem:[#allocation2 + $0x1c] sm:$0xf] %vm294_vm2, %v283_v13  ;;  %v285_v15 = vld [vmem:[%s3685_s29 + $0x24] sm:$0xf] }
  0x1c   : > { %303 = vst.msk [vmem:[#allocation2 + $0x20] sm:$0xf] %vm294_vm2, %v284_v14  ;;  %v286_v16 = vld [vmem:[%s3685_s29 + $0x28] sm:$0xf]  ;;  %v287_v17 = vld [vmem:[%s3685_s29 + $0x2c] sm:$0xf] }
  0x1d   : > { %304 = vst.msk [vmem:[#allocation2 + $0x24] sm:$0xf] %vm294_vm2, %v285_v15  ;;  %305 = vst.msk [vmem:[#allocation2 + $0x28] sm:$0xf] %vm294_vm2, %v286_v16  ;;  %v288_v18 = vld [vmem:[%s3685_s29 + $0x30] sm:$0xf] }
  0x1e   : > { %306 = vst.msk [vmem:[#allocation2 + $0x2c] sm:$0xf] %vm294_vm2, %v287_v17  ;;  %v289_v19 = vld [vmem:[%s3685_s29 + $0x34] sm:$0xf]  ;;  %v290_v20 = vld [vmem:[%s3685_s29 + $0x38] sm:$0xf] }
  0x1f   : > { %307 = vst.msk [vmem:[#allocation2 + $0x30] sm:$0xf] %vm294_vm2, %v288_v18  ;;  %308 = vst.msk [vmem:[#allocation2 + $0x34] sm:$0xf] %vm294_vm2, %v289_v19  ;;  %v291_v21 = vld [vmem:[%s3685_s29 + $0x3c] sm:$0xf] }
  0x20   : > { %309 = vst.msk [vmem:[#allocation2 + $0x38] sm:$0xf] %vm294_vm2, %v290_v20  ;;  %v292_v22 = vld [vmem:[%s3685_s29 + $0x40] sm:$0xf]  ;;  %v293_v23 = vld [vmem:[%s3685_s29 + $0x44] sm:$0xf] }
  0x21   : > { %310 = vst.msk [vmem:[#allocation2 + $0x3c] sm:$0xf] %vm294_vm2, %v291_v21  ;;  %311 = vst.msk [vmem:[#allocation2 + $0x40] sm:$0xf] %vm294_vm2, %v292_v22  ;;  %v327_v25 = vld [vmem:[#allocation2] sm:$0xf] }
  0x22   : > { %312 = vst.msk [vmem:[#allocation2 + $0x44] sm:$0xf] %vm294_vm2, %v293_v23  ;;  %v3728_v26 = vld [vmem:[#allocation2 + $0x4] sm:$0xf]  ;;  %v3733_v28 = vld [vmem:[#allocation2 + $0x8] sm:$0xff]   ;;  %v3743_v35 = vld [vmem:[#allocation2 + $0x10] sm:$0xff]  }
  0x23   : > { %v3731_v27 = vcombine.low %v327_v25, %v3728_v26  ;;  %v916_v29 = vld [vmem:[#allocation2 + $0x8] sm:$0xe]  ;;  %v3735_v30 = vld [vmem:[#allocation2 + $0xc] sm:$0xf]  ;;  %v406_v33 = vshll.u32 %v3733_v28, 16  ;;  %v3745_v36 = vld [vmem:[#allocation2 + $0x10] sm:$0xff]  }
  0x24   : > { %v3741_v34 = vcombine.low %v916_v29, %v3735_v30  ;;  %v1173_v42 = vshrl.u32 %v3743_v35, 16  ;;  %v1176_v43 = vshll.u32 %v3743_v35, 16  ;;  %v410_v44 = vshrl.u32 %v3733_v28, 16  ;;  %v3755_v45 = vld [vmem:[#allocation2 + $0x18] sm:$0xff]   ;;  %v3766_v59 = vld [vmem:[#allocation2 + $0x20] sm:$0xff]   ;;  %s2645_s19 = sshll.u32 %s262_s11, 2 }
  0x25   : > { %v399_v31 = vshrl.u32 %v3731_v27, 16  ;;  %v401_v32 = vshll.u32 %v3731_v27, 16  ;;  %v408_v38 = vrot.slane %v406_v33, 1  ;;  %v414_v49 = vshll.u32 %v3745_v36, 16  ;;  %v3770_v63 = vld [vmem:[#allocation2 + $0x18] sm:$0xff]   ;;  %v3785_v9 = vld [vmem:[#allocation2 + $0x20] sm:$0xff]   ;;  %s3796_s22 = scalar_lea.vmem %s4382_s1, %s2645_s19 }
  0x26   : > { %v1165_v39 = vshrl.u32 %v3741_v34, 16  ;;  %v1168_v40 = vshll.u32 %v3741_v34, 16  ;;  %v1175_v50 = vrot.slane %v1173_v42, 1  ;;  %v1178_v51 = vrot.slane %v1176_v43, 2  ;;  %v3789_v13 = vld [vmem:[#allocation2 + $0x28] sm:$0xff]   ;;  %s2647_s8 = sshll.u32 %s272_s7, 1 }
  0x27   : > { %v403_v37 = vrot.slane %v401_v32, 1  ;;  %v1182_v52 = vshrl.u32 %v3755_v45, 16  ;;  %v1185_v55 = vshll.u32 %v3755_v45, 16  ;;  %v412_v60 = vor.u32 %v410_v44, %v408_v38  ;;  %v313_v17 = vld [vmem:[%s3796_s22] sm:$0xf]  ;;  %v3811_v29 = vld [vmem:[#allocation2 + $0x28] sm:$0xff]   ;;  %s274_s11 = scalar_lea.vmem %s4384_s3, %s2647_s8 }
  0x28   : > { %v1167_v47 = vrot.slane %v1165_v39, 1  ;;  %v1170_v48 = vrot.slane %v1168_v40, 2  ;;  %v1179_v56 = vor.u32 %v1178_v51, %v1175_v50  ;;  %v416_v61 = vrot.slane %v414_v49, 1  ;;  %318 = vst.msk [vmem:[#allocation2 + $0x48] sm:$0xf] %vm294_vm2, %v313_v17  ;;  %v3832_v51 = vld [vmem:[#allocation2 + $0x30] sm:$0xff]  }
  0x29   : > { %v404_v46 = vor.u32 %v403_v37, %v399_v31  ;;  %v1184_v58 = vrot.slane %v1182_v52, 1  ;;  %v1187_v62 = vrot.slane %v1185_v55, 2  ;;  %v1191_v4 = vshrl.u32 %v3766_v59, 16  ;;  %v314_v23 = vld [vmem:[%s3796_s22 + $0x4] sm:$0xf]  ;;  %v3813_v31 = vld [vmem:[#allocation2 + $0x30] sm:$0xff]  }
  0x2a   : > { %v1171_v54 = vor.u32 %v1170_v48, %v1167_v47  ;;  %v1194_v5 = vshll.u32 %v3766_v59, 16  ;;  %v417_v6 = vsel %vm397_vm3, %v412_v60, %v416_v61  ;;  %v418_v7 = vshrl.u32 %v3745_v36, 16  ;;  %319 = vst.msk [vmem:[#allocation2 + $0x4c] sm:$0xf] %vm294_vm2, %v314_v23 }
  0x2b   : > { %v409_v53 = vsel %vm397_vm3, %v404_v46, %v408_v38  ;;  %v1188_v1 = vor.u32 %v1187_v62, %v1184_v58  ;;  %v422_v8 = vshll.u32 %v3770_v63, 16  ;;  %v1193_v11 = vrot.slane %v1191_v4, 1 }
  0x2c   : > { %2867 = vmatmul.mubr.msk.bf16.vlgmr.msra.gmra.mrb[0].mxu1 %vm474_vm4, %v409_v53  ;;  %v1180_v0 = vsel %vm1163_vm5, %v1171_v54, %v1179_v56  ;;  %v1196_v12 = vrot.slane %v1194_v5, 2  ;;  %v420_v14 = vor.u32 %v418_v7, %v416_v61  ;;  %v430_v16 = vshll.u32 %v3785_v9, 16 }
  0x2d   : > { %2870 = vmatprep.mubr.msk.bf16.mxu1 %vm3600_vm1, %v3599_v2  ;;  %2903 = vmatpush3.bf16.msra.mxu1 %v630_v24  ;;  %v1189_v10 = vsel %vm1163_vm5, %v1179_v56, %v1188_v1  ;;  %v424_v15 = vrot.slane %v422_v8, 1  ;;  %v1200_v19 = vshrl.u32 %v3789_v13, 16  ;;  %v1203_v20 = vshll.u32 %v3789_v13, 16  ;;  %v315_v24 = vld [vmem:[%s3796_s22 + $0x8] sm:$0xf] }
  0x2e   : > { %2940 = vmatprep.subr.bf16.mxu1 %v3599_v2  ;;  %3019 = vmatmul.mubr.msk.bf16.vlgmr.msra.gmra.mrb[0].mxu0 %vm474_vm4, %v1180_v0  ;;  %v1197_v18 = vor.u32 %v1196_v12, %v1193_v11  ;;  %v426_v22 = vshrl.u32 %v3770_v63, 16  ;;  %v432_v25 = vrot.slane %v430_v16, 1  ;;  %320 = vst.msk [vmem:[#allocation2 + $0x50] sm:$0xf] %vm294_vm2, %v315_v24  ;;  %v1209_v40 = vshrl.u32 %v3813_v31, 16  ;;  %v3850_v0 = vld [vmem:[#allocation2 + $0x38] sm:$0xff]  }
  0x2f   : > { %3055 = vmatpush3.bf16.msra.mxu0 %v1460_v57  ;;  %3022 = vmatprep.mubr.msk.bf16.mxu0 %vm3600_vm1, %v3599_v2  ;;  %v425_v21 = vsel %vm397_vm3, %v420_v14, %v424_v15  ;;  %v1202_v33 = vrot.slane %v1200_v19, 1  ;;  %v1205_v37 = vrot.slane %v1203_v20, 2  ;;  %v1212_v41 = vshll.u32 %v3813_v31, 16  ;;  %v1406_v56 = vld [vmem:[#allocation2 + $0x8] sm:$0xc] }
  0x30   : > { %3092 = vmatprep.subr.bf16.mxu0 %v3599_v2  ;;  %v1198_v32 = vsel %vm1163_vm5, %v1188_v1, %v1197_v18  ;;  %v428_v38 = vor.u32 %v426_v22, %v424_v15  ;;  %v434_v43 = vshrl.u32 %v3785_v9, 16  ;;  %v438_v44 = vshll.u32 %v3811_v29, 16  ;;  %v316_v57 = vld [vmem:[%s3796_s22 + $0xc] sm:$0xf]  ;;  %v317_v8 = vld [vmem:[%s3796_s22 + $0x10] sm:$0x3] }
  0x31   : > { %v1206_v39 = vor.u32 %v1205_v37, %v1202_v33  ;;  %v1211_v47 = vrot.slane %v1209_v40, 1  ;;  %v1214_v48 = vrot.slane %v1212_v41, 2  ;;  %v442_v54 = vshrl.u32 %v3811_v29, 16  ;;  %321 = vst.msk [vmem:[#allocation2 + $0x54] sm:$0xf] %vm294_vm2, %v316_v57  ;;  %v3868_v15 = vld [vmem:[#allocation2 + $0x40] sm:$0xff]  }
  0x32   : > { %v433_v42 = vsel %vm397_vm3, %v428_v38, %v432_v25  ;;  %v436_v49 = vor.u32 %v434_v43, %v432_v25  ;;  %v440_v50 = vrot.slane %v438_v44, 1  ;;  %v446_v55 = vshll.u32 %v3832_v51, 16  ;;  %323 = vst.msk [vmem:[#allocation2 + $0x58] sm:$0x3] %vm322_vm7, %v317_v8  ;;  %v2677_v44 = vld [vmem:[%s4383_s2 + $0x4] sm:$0x3] }
  0x33   : > { %v1207_v46 = vsel %vm1163_vm5, %v1197_v18, %v1206_v39  ;;  %v3837_v52 = vor.u32 %v1214_v48, %v1211_v47  ;;  %v2720_v60 = vcombine.low %v1406_v56, %v3735_v30  ;;  %v1414_v4 = vrot.slane %v3743_v35, 2  ;;  %v2730_v30 = vld [vmem:[%s4383_s2 + $0xc] sm:$0x3]  ;;  %v3882_v23 = vld [vmem:[#allocation2 + $0x48] ss:$0 sps:$4 sm:$0x11]  }
  0x34   : > { %2871 = vmatmul.mubr.msk.bf16.gmra.mrb[4].mxu1 %vm474_vm4, %v417_v6  ;;  %v441_v53 = vsel %vm397_vm3, %v436_v49, %v440_v50  ;;  %v444_v61 = vor.u32 %v442_v54, %v440_v50  ;;  %v448_v62 = vrot.slane %v446_v55, 1  ;;  %v450_v6 = vshrl.u32 %v3832_v51, 16  ;;  %v3915_v49 = vld [vmem:[#allocation2 + $0x38] sm:$0xff]   ;;  %v3938_v56 = vld [vmem:[#allocation2 + $0x48] sm:$0xff]  }
  0x35   : > { %2874 = vmatprep.mubr.msk.bf16.mxu1 %vm3600_vm1, %v3599_v2  ;;  %v1216_v58 = vsel %vm1163_vm5, %v1206_v39, %v3837_v52  ;;  %v1413_v1 = vrot.slane %v2720_v60, 2  ;;  %v454_v7 = vshll.u32 %v3850_v0, 16  ;;  %v1701_v11 = vsel %vm502_vm0, %v2730_v30, 0  ;;  %v3949_v60 = vld [vmem:[#allocation2 + $0x50] ss:$0 sps:$4 sm:$0x33]  }
  0x36   : > { %3023 = vmatmul.mubr.msk.bf16.gmra.mrb[4].mxu0 %vm474_vm4, %v1189_v10  ;;  %v449_v5 = vsel %vm397_vm3, %v444_v61, %v448_v62  ;;  %v452_v12 = vor.u32 %v450_v6, %v448_v62  ;;  %v1416_v16 = vrot.slane %v3755_v45, 2  ;;  %v458_v18 = vshrl.u32 %v3850_v0, 16  ;;  %v1585_v62 = vld [vmem:[#allocation2 + $0x10] sm:$0xc]  ;;  %v3965_v30 = vld [vmem:[#allocation2 + $0x18] sm:$0xff]  }
  0x37   : > { %3026 = vmatprep.mubr.msk.bf16.mxu0 %vm3600_vm1, %v3599_v2  ;;  %v1415_v10 = vsel %vm1412_vm6, %v1413_v1, %v1414_v4  ;;  %v456_v14 = vrot.slane %v454_v7, 1  ;;  %v462_v19 = vshll.u32 %v3868_v15, 16  ;;  %v3601_v24 = vmov 0   ;;  %v3957_v1 = vld [vmem:[#allocation2 + $0x14] sm:$0xf] }
  0x38   : > { %v1417_v20 = vsel %vm1412_vm6, %v1414_v4, %v1416_v16  ;;  %3525 = vset.pattern.permute.xlu0 %v3601_v24  ;;  %3526 = vset.pattern.permute.xlu1 %v3601_v24  ;;  %v1418_v25 = vrot.slane %v3766_v59, 2  ;;  %v466_v33 = vshrl.u32 %v3868_v15, 16  ;;  %v470_v37 = vshll.u32 %v3882_v23, 16  ;;  %v2750_v8 = vld [vmem:[%s4383_s2 + $0xe] sm:$0x3] }
  0x39   : > { %v457_v17 = vsel %vm397_vm3, %v452_v12, %v456_v14  ;;  %v464_v22 = vrot.slane %v462_v19, 1  ;;  %v1420_v41 = vrot.slane %v3789_v13, 2  ;;  %v791_v47 = vsel %vm502_vm0, %v2677_v44, 0 }
  0x3a   : > { %v1419_v38 = vsel %vm1412_vm6, %v1416_v16, %v1418_v25  ;;  %v472_v40 = vrot.slane %v470_v37, 1  ;;  %v1424_v50 = vrot.slane %v3915_v49, 2  ;;  %v1428_v57 = vrot.slane %v3938_v56, 2 }
  0x3b   : > { %v468_v39 = vor.u32 %v466_v33, %v464_v22  ;;  %v1421_v43 = vsel %vm1412_vm6, %v1418_v25, %v1420_v41  ;;  %v1430_v61 = vrot.slane %v3949_v60, 2  ;;  %v1655_v7 = vrot.slane %v3965_v30, 2 }
  0x3c   : > { %2875 = vmatmul.mubr.msk.bf16.gmra.mrb[8].mxu1 %vm474_vm4, %v425_v21  ;;  %v460_v21 = vor.u32 %v458_v18, %v456_v14  ;;  %v1950_v12 = vsel %vm502_vm0, %v2750_v8, 0  ;;  %v745_v37 = vrot.slane %v3733_v28, 1  ;;  %v1845_v8 = vshll.u32 %v3965_v30, 16 }
  0x3d   : > { %2878 = vmatprep.mubr.msk.bf16.mxu1 %vm3600_vm1, %v3599_v2  ;;  %v1431_v4 = vsel %vm1412_vm6, %v1428_v57, %v1430_v61 }
  0x3e   : > { %3027 = vmatmul.mubr.msk.bf16.gmra.mrb[8].mxu0 %vm474_vm4, %v1198_v32  ;;  %v465_v32 = vsel %vm397_vm3, %v460_v21, %v464_v22  ;;  %v737_v21 = vld [vmem:[#allocation2] sm:$0xe] }
  0x3f   : > { %3030 = vmatprep.mubr.msk.bf16.mxu0 %vm3600_vm1, %v3599_v2  ;;  %v2678_v24 = vcombine.low %v737_v21, %v3728_v26  ;;  %v2688_v26 = vld [vmem:[%s4383_s2 + $0x6] sm:$0x3] }
  0x41   : > { %v744_v33 = vrot.slane %v2678_v24, 1 }
  0x44   : > { %2879 = vmatmul.mubr.msk.bf16.gmra.mrb[12].mxu1 %vm474_vm4, %v433_v42  ;;  %v473_v42 = vsel %vm397_vm3, %v468_v39, %v472_v40  ;;  %v746_v39 = vsel %vm743_vm8, %v744_v33, %v745_v37  ;;  %v1032_v40 = vsel %vm502_vm0, %v2688_v26, 0  ;;  %v2761_v33 = vld [vmem:[%s4383_s2 + $0x10] sm:$0x3] }
  0x45   : > { %2882 = vmatprep.mubr.msk.bf16.mxu1 %vm3600_vm1, %v3599_v2 }
  0x46   : > { %3031 = vmatmul.mubr.msk.bf16.gmra.mrb[12].mxu0 %vm474_vm4, %v1207_v46  ;;  %v1422_v46 = vrot.slane %v3813_v31, 2 }
  0x47   : > { %3034 = vmatprep.mubr.msk.bf16.mxu0 %vm3600_vm1, %v3599_v2 }
  0x48   : > { %v1423_v48 = vsel %vm1412_vm6, %v1420_v41, %v1422_v46  ;;  %v4032_v41 = vld [vmem:[#allocation2 + $0x40] sm:$0xff]  }
  0x4c   : > { %2883 = vmatmul.mubr.msk.bf16.gmra.mrb[16].mxu1 %vm474_vm4, %v441_v53  ;;  %v3927_v53 = vld [vmem:[#allocation2 + $0x40] sm:$0xff]  }
  0x4d   : > { %2886 = vmatprep.mubr.msk.bf16.mxu1 %vm3600_vm1, %v3599_v2  ;;  %v1426_v54 = vrot.slane %v3927_v53, 2 }
  0x4e   : > { %3035 = vmatmul.mubr.msk.bf16.gmra.mrb[16].mxu0 %vm474_vm4, %v1216_v58 }
  0x4f   : > { %3056 = vmatprep.mubr.msk.bf16.mxu0 %vm3600_vm1, %v3599_v2  ;;  %v1427_v55 = vsel %vm1412_vm6, %v1424_v50, %v1426_v54  ;;  %v1429_v58 = vsel %vm1412_vm6, %v1426_v54, %v1428_v57  ;;  %v4057_v54 = vld [vmem:[#allocation2 + $0x50] sm:$0xff]  }
  0x54   : > { %2887 = vmatmul.mubr.msk.bf16.gmra.mrb[20].mxu1 %vm474_vm4, %v449_v5  ;;  %v3963_v5 = vcombine.low %v1585_v62, %v3957_v1  ;;  %v753_v62 = vrot.slane %v3811_v29, 1 }
  0x55   : > { %2890 = vmatprep.mubr.msk.bf16.mxu1 %vm3600_vm1, %v3599_v2 }
  0x56   : > { %3057 = vmatmul.mubr.msk.bf16.vlgmr.msra.gmra.mrb[0].mxu0 %vm474_vm4, %v1415_v10  ;;  %v1654_v6 = vrot.slane %v3963_v5, 2 }
  0x57   : > { %3093 = vmatpush3.bf16.msra.mxu0 %v1701_v11  ;;  %3060 = vmatprep.mubr.msk.bf16.mxu0 %vm3600_vm1, %v3599_v2  ;;  %v3980_v11 = vld [vmem:[#allocation2 + $0x20] sm:$0xff]  }
  0x58   : > { %3130 = vmatprep.subr.bf16.mxu0 %v3599_v2  ;;  %v1656_v10 = vsel %vm1412_vm6, %v1654_v6, %v1655_v7  ;;  %v1657_v14 = vrot.slane %v3980_v11, 2  ;;  %v1837_v6 = vshll.u32 %v3963_v5, 16  ;;  %v1854_v24 = vshll.u32 %v3980_v11, 16 }
  0x5a   : > { %v1658_v16 = vsel %vm1412_vm6, %v1655_v7, %v1657_v14  ;;  %v1842_v7 = vshrl.u32 %v3965_v30, 16  ;;  %v1856_v26 = vrot.slane %v1854_v24, 3  ;;  %v1890_v24 = vshll.u32 %v4032_v41, 16 }
  0x5c   : > { %2891 = vmatmul.mubr.msk.bf16.gmra.mrb[24].mxu1 %vm474_vm4, %v457_v17  ;;  %v3993_v17 = vld [vmem:[#allocation2 + $0x28] sm:$0xff]  }
  0x5d   : > { %2894 = vmatprep.mubr.msk.bf16.mxu1 %vm3600_vm1, %v3599_v2  ;;  %v1659_v18 = vrot.slane %v3993_v17, 2 }
  0x5e   : > { %3061 = vmatmul.mubr.msk.bf16.gmra.mrb[4].mxu0 %vm474_vm4, %v1417_v20  ;;  %v4004_v20 = vld [vmem:[#allocation2 + $0x30] sm:$0xff]  }
  0x5f   : > { %3064 = vmatprep.mubr.msk.bf16.mxu0 %vm3600_vm1, %v3599_v2  ;;  %v1660_v19 = vsel %vm1412_vm6, %v1657_v14, %v1659_v18  ;;  %v1661_v22 = vrot.slane %v4004_v20, 2  ;;  %v1839_v14 = vrot.slane %v1837_v6, 3 }
  0x61   : > { %v1662_v25 = vsel %vm1412_vm6, %v1659_v18, %v1661_v22  ;;  %v1847_v18 = vrot.slane %v1845_v8, 3 }
  0x64   : > { %2895 = vmatmul.mubr.msk.bf16.gmra.mrb[28].mxu1 %vm474_vm4, %v465_v32  ;;  %v4016_v32 = vld [vmem:[#allocation2 + $0x38] sm:$0xff]  }
  0x65   : > { %2898 = vmatprep.mubr.msk.bf16.mxu1 %vm3600_vm1, %v3599_v2  ;;  %v1881_v6 = vshll.u32 %v4016_v32, 16 }
  0x66   : > { %3065 = vmatmul.mubr.msk.bf16.gmra.mrb[8].mxu0 %vm474_vm4, %v1419_v38  ;;  %v1663_v38 = vrot.slane %v4016_v32, 2 }
  0x67   : > { %3068 = vmatprep.mubr.msk.bf16.mxu0 %vm3600_vm1, %v3599_v2 }
  0x6c   : > { %2899 = vmatmul.mubr.msk.bf16.gmra.mrb[32].mxu1 %vm474_vm4, %v473_v42  ;;  %v747_v42 = vrot.slane %v3745_v36, 1 }
  0x6d   : > { %2904 = vmatprep.mubr.msk.bf16.mxu1 %vm3600_vm1, %v3599_v2 }
  0x6e   : > { %3069 = vmatmul.mubr.msk.bf16.gmra.mrb[12].mxu0 %vm474_vm4, %v1421_v43  ;;  %v1665_v43 = vrot.slane %v4032_v41, 2  ;;  %v748_v44 = vsel %vm743_vm8, %v745_v37, %v747_v42 }
  0x6f   : > { %3072 = vmatprep.mubr.msk.bf16.mxu0 %vm3600_vm1, %v3599_v2 }
  0x74   : > { %2905 = vmatmul.mubr.msk.bf16.vlgmr.msra.gmra.mrb[0].mxu1 %vm474_vm4, %v3731_v27  ;;  %v1425_v27 = vsel %vm1412_vm6, %v1422_v46, %v1424_v50  ;;  %v1666_v46 = vsel %vm1412_vm6, %v1663_v38, %v1665_v43 }
  0x75   : > { %2908 = vmatprep.mubr.msk.bf16.mxu1 %vm3600_vm1, %v3599_v2  ;;  %2941 = vmatpush3.bf16.msra.mxu1 %v791_v47  ;;  %v4045_v47 = vld [vmem:[#allocation2 + $0x48] sm:$0xff]  }
  0x76   : > { %2978 = vmatprep.subr.bf16.mxu1 %v3599_v2  ;;  %3073 = vmatmul.mubr.msk.bf16.gmra.mrb[16].mxu0 %vm474_vm4, %v1423_v48  ;;  %v1667_v48 = vrot.slane %v4045_v47, 2 }
  0x77   : > { %3076 = vmatprep.mubr.msk.bf16.mxu0 %vm3600_vm1, %v3599_v2 }
  0x7c   : > { %2909 = vmatmul.mubr.msk.bf16.gmra.mrb[4].mxu1 %vm474_vm4, %v3733_v28  ;;  %v1664_v28 = vsel %vm1412_vm6, %v1661_v22, %v1663_v38  ;;  %v1851_v22 = vshrl.u32 %v3980_v11, 16  ;;  %v2129_v38 = vsel %vm502_vm0, %v2761_v33, 0 }
  0x7d   : > { %2912 = vmatprep.mubr.msk.bf16.mxu1 %vm3600_vm1, %v3599_v2 }
  0x7e   : > { %3077 = vmatmul.mubr.msk.bf16.gmra.mrb[20].mxu0 %vm474_vm4, %v1425_v27  ;;  %v1668_v27 = vsel %vm1412_vm6, %v1665_v43, %v1667_v48  ;;  %v1853_v37 = vrot.slane %v1851_v22, 2  ;;  %v1887_v22 = vshrl.u32 %v4032_v41, 16 }
  0x7f   : > { %3080 = vmatprep.mubr.msk.bf16.mxu0 %vm3600_vm1, %v3599_v2 }
  0x84   : > { %2913 = vmatmul.mubr.msk.bf16.gmra.mrb[8].mxu1 %vm474_vm4, %v3745_v36  ;;  %v749_v36 = vrot.slane %v3770_v63, 1 }
  0x85   : > { %2916 = vmatprep.mubr.msk.bf16.mxu1 %vm3600_vm1, %v3599_v2 }
  0x86   : > { %3081 = vmatmul.mubr.msk.bf16.gmra.mrb[24].mxu0 %vm474_vm4, %v1427_v55  ;;  %v750_v50 = vsel %vm743_vm8, %v747_v42, %v749_v36  ;;  %v1669_v55 = vrot.slane %v4057_v54, 2  ;;  %v1863_v42 = vshll.u32 %v3993_v17, 16 }
  0x87   : > { %3084 = vmatprep.mubr.msk.bf16.mxu0 %vm3600_vm1, %v3599_v2 }
  0x88   : > { %v1670_v61 = vsel %vm1412_vm6, %v1667_v48, %v1669_v55 }
  0x8c   : > { %2917 = vmatmul.mubr.msk.bf16.gmra.mrb[12].mxu1 %vm474_vm4, %v3770_v63  ;;  %v751_v63 = vrot.slane %v3785_v9, 1 }
  0x8d   : > { %2920 = vmatprep.mubr.msk.bf16.mxu1 %vm3600_vm1, %v3599_v2 }
  0x8e   : > { %3085 = vmatmul.mubr.msk.bf16.gmra.mrb[28].mxu0 %vm474_vm4, %v1429_v58  ;;  %v752_v57 = vsel %vm743_vm8, %v749_v36, %v751_v63  ;;  %v3556_v58 = vld [vmem:[#allocation2 + $0x58] ss:$0 sps:$4 sm:$0x33]   ;;  %v1865_v36 = vrot.slane %v1863_v42, 3  ;;  %v1899_v42 = vshll.u32 %v4045_v47, 16 }
  0x8f   : > { %3088 = vmatprep.mubr.msk.bf16.mxu0 %vm3600_vm1, %v3599_v2 }
  0x94   : > { %2921 = vmatmul.mubr.msk.bf16.gmra.mrb[16].mxu1 %vm474_vm4, %v3785_v9  ;;  %v1671_v9 = vrot.slane %v3556_v58, 2 }
  0x95   : > { %2924 = vmatprep.mubr.msk.bf16.mxu1 %vm3600_vm1, %v3599_v2 }
  0x96   : > { %3089 = vmatmul.mubr.msk.bf16.gmra.mrb[32].mxu0 %vm474_vm4, %v1431_v4  ;;  %v1834_v4 = vshrl.u32 %v3963_v5, 16 }
  0x97   : > { %3094 = vmatprep.mubr.msk.bf16.mxu0 %vm3600_vm1, %v3599_v2 }
  0x9c   : > { %2925 = vmatmul.mubr.msk.bf16.gmra.mrb[20].mxu1 %vm474_vm4, %v3811_v29  ;;  %v1836_v29 = vrot.slane %v1834_v4, 2  ;;  %v1878_v4 = vshrl.u32 %v4016_v32, 16 }
  0x9d   : > { %2928 = vmatprep.mubr.msk.bf16.mxu1 %vm3600_vm1, %v3599_v2 }
  0x9e   : > { %3095 = vmatmul.mubr.msk.bf16.vlgmr.msra.gmra.mrb[0].mxu0 %vm474_vm4, %v1656_v10  ;;  %v754_v10 = vsel %vm743_vm8, %v751_v63, %v753_v62  ;;  %v1840_v5 = vor.u32 %v1839_v14, %v1836_v29  ;;  %v3602_v63 = vmov 1.0   ;;  %v1880_v29 = vrot.slane %v1878_v4, 2 }
  0x9f   : > { %3131 = vmatpush3.bf16.msra.mxu0 %v1950_v12  ;;  %3098 = vmatprep.mubr.msk.bf16.mxu0 %vm3600_vm1, %v3599_v2  ;;  %v1672_v12 = vsel %vm1412_vm6, %v1669_v55, %v1671_v9  ;;  %2255 = vst.msk [vmem:[#allocation3] sm:$0xff] %vm2254_vm10, %v3602_v63  ;;  %2256 = vst.msk [vmem:[#allocation3 + $0x8] sm:$0xff] %vm2254_vm10, %v3602_v63  ;;  %v1883_v14 = vrot.slane %v1881_v6, 3  ;;  %v992_v4 = vrot.slane %v3789_v13, 1 }
  0xa0   : > { %3168 = vmatprep.subr.bf16.mxu0 %v3599_v2  ;;  %2257 = vst.msk [vmem:[#allocation3 + $0x10] sm:$0xff] %vm2254_vm10, %v3602_v63  ;;  %2258 = vst.msk [vmem:[#allocation3 + $0x18] sm:$0xff] %vm2254_vm10, %v3602_v63 }
  0xa1   : > { %2259 = vst.msk [vmem:[#allocation3 + $0x20] sm:$0xff] %vm2254_vm10, %v3602_v63  ;;  %2260 = vst.msk [vmem:[#allocation3 + $0x28] sm:$0xff] %vm2254_vm10, %v3602_v63 }
  0xa2   : > { %2261 = vst.msk [vmem:[#allocation3 + $0x30] sm:$0xff] %vm2254_vm10, %v3602_v63  ;;  %2262 = vst.msk [vmem:[#allocation3 + $0x38] sm:$0xff] %vm2254_vm10, %v3602_v63 }
  0xa3   : > { %2263 = vst.msk [vmem:[#allocation3 + $0x40] sm:$0xff] %vm2254_vm10, %v3602_v63  ;;  %2264 = vst.msk [vmem:[#allocation3 + $0x48] sm:$0xff] %vm2254_vm10, %v3602_v63 }
  0xa4   : > { %2929 = vmatmul.mubr.msk.bf16.gmra.mrb[24].mxu1 %vm474_vm4, %v3832_v51  ;;  %2265 = vst.msk [vmem:[#allocation3 + $0x50] sm:$0xff] %vm2254_vm10, %v3602_v63  ;;  %2266 = vst.msk [vmem:[#allocation3 + $0x58] sm:$0xff] %vm2254_vm10, %v3602_v63 }
  0xa5   : > { %2932 = vmatprep.mubr.msk.bf16.mxu1 %vm3600_vm1, %v3599_v2  ;;  %2267 = vst.msk [vmem:[#allocation3 + $0x60] sm:$0xff] %vm2254_vm10, %v3602_v63  ;;  %2268 = vst.msk [vmem:[#allocation3 + $0x68] sm:$0xff] %vm2254_vm10, %v3602_v63 }
  0xa6   : > { %3099 = vmatmul.mubr.msk.bf16.gmra.mrb[4].mxu0 %vm474_vm4, %v1658_v16  ;;  %v1844_v16 = vrot.slane %v1842_v7, 2  ;;  %2269 = vst.msk [vmem:[#allocation3 + $0x70] sm:$0xff] %vm2254_vm10, %v3602_v63  ;;  %2270 = vst.msk [vmem:[#allocation3 + $0x78] sm:$0xff] %vm2254_vm10, %v3602_v63 }
  0xa7   : > { %3102 = vmatprep.mubr.msk.bf16.mxu0 %vm3600_vm1, %v3599_v2  ;;  %2271 = vst.msk [vmem:[#allocation3 + $0x80] sm:$0xff] %vm2254_vm10, %v3602_v63  ;;  %2272 = vst.msk [vmem:[#allocation3 + $0x88] sm:$0xff] %vm2254_vm10, %v3602_v63  ;;  %v1905_v63 = vshrl.u32 %v4057_v54, 16 }
  0xa8   : > { %v1848_v21 = vor.u32 %v1847_v18, %v1844_v16  ;;  %2274 = vst.msk [vmem:[#allocation3 + $0x10] sm:$0x3] %vm2273_vm11, %v3599_v2  ;;  %2275 = vst.msk [vmem:[#allocation3 + $0x22] sm:$0x3] %vm2273_vm11, %v3599_v2  ;;  %v985_v16 = vrot.slane %v3741_v34, 1  ;;  %v986_v18 = vrot.slane %v3743_v35, 1 }
  0xa9   : > { %2276 = vst.msk [vmem:[#allocation3 + $0x34] sm:$0x3] %vm2273_vm11, %v3599_v2  ;;  %2277 = vst.msk [vmem:[#allocation3 + $0x46] sm:$0x3] %vm2273_vm11, %v3599_v2  ;;  %v2289_v33 = vld [vmem:[#allocation3 + $0x38] sm:$0xff] }
  0xaa   : > { %2278 = vst.msk [vmem:[#allocation3 + $0x58] sm:$0x3] %vm2273_vm11, %v3599_v2  ;;  %2279 = vst.msk [vmem:[#allocation3 + $0x6a] sm:$0x3] %vm2273_vm11, %v3599_v2 }
  0xab   : > { %2280 = vst.msk [vmem:[#allocation3 + $0x7c] sm:$0x3] %vm2273_vm11, %v3599_v2  ;;  %2281 = vst.msk [vmem:[#allocation3 + $0x8e] sm:$0x3] %vm2273_vm11, %v3599_v2 }
  0xac   : > { %2933 = vmatmul.mubr.msk.bf16.gmra.mrb[28].mxu1 %vm474_vm4, %v3850_v0 }
  0xad   : > { %2936 = vmatprep.mubr.msk.bf16.mxu1 %vm3600_vm1, %v3599_v2 }
  0xae   : > { %3103 = vmatmul.mubr.msk.bf16.gmra.mrb[8].mxu0 %vm474_vm4, %v1660_v19  ;;  %v755_v19 = vrot.slane %v3832_v51, 1  ;;  %v1849_v51 = vsel %vm1832_vm9, %v1840_v5, %v1848_v21  ;;  %v2287_v5 = vld [vmem:[#allocation3 + $0x28] sm:$0xff]  ;;  %v2298_v6 = vld [vmem:[#allocation3 + $0x80] sm:$0xff] }
  0xaf   : > { %3106 = vmatprep.mubr.msk.bf16.mxu0 %vm3600_vm1, %v3599_v2  ;;  %v2284_v7 = vld [vmem:[#allocation3 + $0x10] sm:$0xff] }
  0xb0   : > { %2312 = vperm.xlu1 %3526, %v2284_v7   ;;  %v2288_v34 = vld [vmem:[#allocation3 + $0x30] sm:$0xff] }
  0xb2   : > { %v2299_v7 = vld [vmem:[#allocation3 + $0x88] sm:$0xff] }
  0xb4   : > { %2937 = vmatmul.mubr.msk.bf16.gmra.mrb[32].mxu1 %vm474_vm4, %v3868_v15 }
  0xb5   : > { %2942 = vmatprep.mubr.msk.bf16.mxu1 %vm3600_vm1, %v3599_v2 }
  0xb6   : > { %3107 = vmatmul.mubr.msk.bf16.gmra.mrb[12].mxu0 %vm474_vm4, %v1662_v25  ;;  %v756_v25 = vsel %vm743_vm8, %v753_v62, %v755_v19  ;;  %v2282_v62 = vld [vmem:[#allocation3] sm:$0xff] }
  0xb7   : > { %3110 = vmatprep.mubr.msk.bf16.mxu0 %vm3600_vm1, %v3599_v2  ;;  %2302 = vperm.xlu0 %3525, %v2282_v62  }
  0xbc   : > { %2943 = vmatmul.mubr.msk.bf16.vlgmr.msra.gmra.mrb[0].mxu1 %vm474_vm4, %v746_v39  ;;  %v757_v39 = vrot.slane %v3850_v0, 1  ;;  %v759_v0 = vrot.slane %v3868_v15, 1 }
  0xbd   : > { %2946 = vmatprep.mubr.msk.bf16.mxu1 %vm3600_vm1, %v3599_v2  ;;  %2979 = vmatpush3.bf16.msra.mxu1 %v1032_v40  ;;  %v1857_v40 = vor.u32 %v1856_v26, %v1853_v37  ;;  %v1892_v37 = vrot.slane %v1890_v24, 3  ;;  %v988_v26 = vrot.slane %v3755_v45, 1  ;;  %v2293_v45 = vld [vmem:[#allocation3 + $0x58] sm:$0xff] }
  0xbe   : > { %3206 = vmatprep.subr.bf16.mxu1 %v3599_v2  ;;  %3111 = vmatmul.mubr.msk.bf16.gmra.mrb[16].mxu0 %vm474_vm4, %v1664_v28  ;;  %v1860_v28 = vshrl.u32 %v3993_v17, 16  ;;  %v758_v43 = vsel %vm743_vm8, %v755_v19, %v757_v39  ;;  %v760_v15 = vsel %vm743_vm8, %v757_v39, %v759_v0  ;;  %v2286_v19 = vld [vmem:[#allocation3 + $0x20] sm:$0xff]  ;;  %v2291_v39 = vld [vmem:[#allocation3 + $0x48] sm:$0xff] }
  0xbf   : > { %3114 = vmatprep.mubr.msk.bf16.mxu0 %vm3600_vm1, %v3599_v2 }
  0xc4   : > { %2947 = vmatmul.mubr.msk.bf16.gmra.mrb[4].mxu1 %vm474_vm4, %v748_v44  ;;  %v1858_v44 = vsel %vm1832_vm9, %v1848_v21, %v1857_v40  ;;  %v1884_v21 = vor.u32 %v1883_v14, %v1880_v29 }
  0xc5   : > { %2950 = vmatprep.mubr.msk.bf16.mxu1 %vm3600_vm1, %v3599_v2 }
  0xc6   : > { %3115 = vmatmul.mubr.msk.bf16.gmra.mrb[20].mxu0 %vm474_vm4, %v1666_v46  ;;  %v1862_v46 = vrot.slane %v1860_v28, 2  ;;  %v1896_v28 = vshrl.u32 %v4045_v47, 16 }
  0xc7   : > { %3118 = vmatprep.mubr.msk.bf16.mxu0 %vm3600_vm1, %v3599_v2 }
  0xc8   : > { %v1866_v48 = vor.u32 %v1865_v36, %v1862_v46  ;;  %v1898_v46 = vrot.slane %v1896_v28, 2  ;;  %v1901_v36 = vrot.slane %v1899_v42, 3  ;;  %v1218_v28 = vshrl.u32 %v3915_v49, 16 }
  0xc9   : > { %v1221_v42 = vshll.u32 %v3915_v49, 16 }
  0xca   : > { %v1867_v55 = vsel %vm1832_vm9, %v1857_v40, %v1866_v48 }
  0xcc   : > { %2951 = vmatmul.mubr.msk.bf16.gmra.mrb[8].mxu1 %vm474_vm4, %v750_v50  ;;  %v1869_v50 = vshrl.u32 %v4004_v20, 16 }
  0xcd   : > { %2954 = vmatprep.mubr.msk.bf16.mxu1 %vm3600_vm1, %v3599_v2 }
  0xce   : > { %3119 = vmatmul.mubr.msk.bf16.gmra.mrb[24].mxu0 %vm474_vm4, %v1668_v27  ;;  %v1872_v27 = vshll.u32 %v4004_v20, 16 }
  0xcf   : > { %3122 = vmatprep.mubr.msk.bf16.mxu0 %vm3600_vm1, %v3599_v2 }
  0xd0   : > { %v1874_v58 = vrot.slane %v1872_v27, 3  ;;  %v1902_v27 = vor.u32 %v1901_v36, %v1898_v46  ;;  %v1230_v36 = vshll.u32 %v3927_v53, 16 }
  0xd4   : > { %2955 = vmatmul.mubr.msk.bf16.gmra.mrb[12].mxu1 %vm474_vm4, %v752_v57  ;;  %v1871_v57 = vrot.slane %v1869_v50, 2  ;;  %v2295_v50 = vld [vmem:[#allocation3 + $0x68] sm:$0xff] }
  0xd5   : > { %2958 = vmatprep.mubr.msk.bf16.mxu1 %vm3600_vm1, %v3599_v2 }
  0xd6   : > { %3123 = vmatmul.mubr.msk.bf16.gmra.mrb[28].mxu0 %vm474_vm4, %v1670_v61  ;;  %v761_v61 = vrot.slane %v3882_v23, 1  ;;  %v1875_v9 = vor.u32 %v1874_v58, %v1871_v57  ;;  %v2296_v57 = vld [vmem:[#allocation3 + $0x70] sm:$0xff]  ;;  %v2297_v58 = vld [vmem:[#allocation3 + $0x78] sm:$0xff] }
  0xd7   : > { %3126 = vmatprep.mubr.msk.bf16.mxu0 %vm3600_vm1, %v3599_v2 }
  0xd8   : > { %v762_v8 = vsel %vm743_vm8, %v759_v0, %v761_v61  ;;  %v1876_v23 = vsel %vm1832_vm9, %v1866_v48, %v1875_v9  ;;  %v1885_v35 = vsel %vm1832_vm9, %v1875_v9, %v1884_v21  ;;  %v990_v0 = vrot.slane %v3766_v59, 1  ;;  %v2294_v48 = vld [vmem:[#allocation3 + $0x60] sm:$0xff]  ;;  %v4199_v9 = vld [vmem:[#allocation2 + $0x58] ss:$0 sps:$4 sm:$0x77]  }
  0xd9   : > { %v1907_v61 = vrot.slane %v1905_v63, 2  ;;  %v1236_v63 = vshrl.u32 %v3938_v56, 16 }
  0xdc   : > { %2959 = vmatmul.mubr.msk.bf16.gmra.mrb[16].mxu1 %vm474_vm4, %v754_v10  ;;  %v2283_v10 = vld [vmem:[#allocation3 + $0x8] sm:$0xff] }
  0xdd   : > { %2962 = vmatprep.mubr.msk.bf16.mxu1 %vm3600_vm1, %v3599_v2  ;;  %2307 = vperm.xlu0 %3525, %v2283_v10   ;;  %v1914_v10 = vshrl.u32 %v4199_v9, 16 }
  0xde   : > { %3127 = vmatmul.mubr.msk.bf16.gmra.mrb[32].mxu0 %vm474_vm4, %v1672_v12  ;;  %v2285_v12 = vld [vmem:[#allocation3 + $0x18] sm:$0xff] }
  0xdf   : > { %3132 = vmatprep.mubr.msk.bf16.mxu0 %vm3600_vm1, %v3599_v2  ;;  %2317 = vperm.xlu1 %3526, %v2285_v12   ;;  %v1917_v12 = vshll.u32 %v4199_v9, 16  ;;  %v1916_v29 = vrot.slane %v1914_v10, 2 }
  0xe1   : > { %2322 = vperm.xlu0 %3525, %v2286_v19   ;;  %v1919_v14 = vrot.slane %v1917_v12, 3  ;;  %v2099_v12 = vrot.slane %v4199_v9, 3 }
  0xe3   : > { %2327 = vperm.xlu1 %3526, %v2287_v5   ;;  %v2075_v5 = vld [vmem:[#allocation2 + $0x10] sm:$0x8] }
  0xe4   : > { %2963 = vmatmul.mubr.msk.bf16.gmra.mrb[20].mxu1 %vm474_vm4, %v756_v25  ;;  %v987_v25 = vsel %vm743_vm8, %v985_v16, %v986_v18  ;;  %v994_v16 = vrot.slane %v3813_v31, 1  ;;  %v996_v31 = vrot.slane %v3915_v49, 1  ;;  %v1227_v49 = vshrl.u32 %v3927_v53, 16 }
  0xe5   : > { %2966 = vmatprep.mubr.msk.bf16.mxu1 %vm3600_vm1, %v3599_v2  ;;  %2332 = vperm.xlu0 %3525, %v2288_v34  }
  0xe6   : > { %3133 = vmatmul.mubr.msk.bf16.vlgmr.msra.gmra.mrb[0].mxu0 %vm474_vm4, %v1849_v51  ;;  %v1889_v51 = vrot.slane %v1887_v22, 2  ;;  %v995_v19 = vsel %vm743_vm8, %v992_v4, %v994_v16  ;;  %v2762_v22 = vcombine.low %v2075_v5, %v3957_v1  ;;  %v997_v34 = vsel %vm743_vm8, %v994_v16, %v996_v31 }
  0xe7   : > { %3169 = vmatpush3.bf16.msra.mxu0 %v2129_v38  ;;  %3136 = vmatprep.mubr.msk.bf16.mxu0 %vm3600_vm1, %v3599_v2  ;;  %v2290_v38 = vld [vmem:[#allocation3 + $0x40] sm:$0xff] }
  0xe8   : > { %2337 = vperm.xlu1 %3526, %v2289_v33   ;;  %v1893_v40 = vor.u32 %v1892_v37, %v1889_v51  ;;  %v2082_v24 = vrot.slane %v2762_v22, 3  ;;  %v998_v33 = vrot.slane %v3927_v53, 1  ;;  %v1000_v37 = vrot.slane %v3938_v56, 1 }
  0xe9   : > { %2342 = vperm.xlu0 %3525, %v2290_v38   ;;  %v3558_v38 = vld [vmem:[#allocation2 + $0x50] ss:$0 sps:$4 sm:$0x11]  }
  0xea   : > { %v1903_v59 = vsel %vm1832_vm9, %v1893_v40, %v1902_v27 }
  0xec   : > { %2967 = vmatmul.mubr.msk.bf16.gmra.mrb[24].mxu1 %vm474_vm4, %v758_v43  ;;  %v989_v43 = vsel %vm743_vm8, %v986_v18, %v988_v26  ;;  %2347 = vperm.xlu1 %3526, %v2291_v39   ;;  %v1920_v18 = vor.u32 %v1919_v14, %v1916_v29 }
  0xed   : > { %2970 = vmatprep.mubr.msk.bf16.mxu1 %vm3600_vm1, %v3599_v2 }
  0xee   : > { %3137 = vmatmul.mubr.msk.bf16.gmra.mrb[4].mxu0 %vm474_vm4, %v1858_v44  ;;  %v2292_v44 = vld [vmem:[#allocation3 + $0x50] sm:$0xff] }
  0xef   : > { %3140 = vmatprep.mubr.msk.bf16.mxu0 %vm3600_vm1, %v3599_v2  ;;  %2352 = vperm.xlu0 %3525, %v2292_v44   ;;  %v1220_v44 = vrot.slane %v1218_v28, 1 }
  0xf0   : > { %2357 = vperm.xlu1 %3526, %v2293_v45   ;;  %v1223_v45 = vrot.slane %v1221_v42, 2 }
  0xf2   : > { %v1224_v46 = vor.u32 %v1223_v45, %v1220_v44 }
  0xf3   : > { %2362 = vperm.xlu0 %3525, %v2294_v48   ;;  %v1229_v48 = vrot.slane %v1227_v49, 1 }
  0xf4   : > { %2971 = vmatmul.mubr.msk.bf16.gmra.mrb[28].mxu1 %vm474_vm4, %v760_v15  ;;  %v1908_v15 = vshll.u32 %v4057_v54, 16  ;;  %2367 = vperm.xlu1 %3526, %v2295_v50   ;;  %v1232_v50 = vrot.slane %v1230_v36, 2 }
  0xf5   : > { %2974 = vmatprep.mubr.msk.bf16.mxu1 %vm3600_vm1, %v3599_v2 }
  0xf6   : > { %3141 = vmatmul.mubr.msk.bf16.gmra.mrb[8].mxu0 %vm474_vm4, %v1867_v55  ;;  %v991_v55 = vsel %vm743_vm8, %v988_v26, %v990_v0  ;;  %v1910_v62 = vrot.slane %v1908_v15, 3  ;;  %v2087_v26 = vrot.slane %v3993_v17, 3  ;;  %v2089_v17 = vrot.slane %v4004_v20, 3 }
  0xf7   : > { %3144 = vmatprep.mubr.msk.bf16.mxu0 %vm3600_vm1, %v3599_v2  ;;  %2372 = vperm.xlu0 %3525, %v2296_v57   ;;  %v2091_v20 = vrot.slane %v4016_v32, 3  ;;  %v1233_v53 = vor.u32 %v1232_v50, %v1229_v48  ;;  %v1239_v15 = vshll.u32 %v3938_v56, 16  ;;  %v1245_v56 = vshrl.u32 %v3949_v60, 16 }
  0xf8   : > { %2377 = vperm.xlu1 %3526, %v2297_v58  }
  0xf9   : > { %v1234_v32 = vsel %vm1163_vm5, %v1224_v46, %v1233_v53  ;;  %v1241_v57 = vrot.slane %v1239_v15, 2 }
  0xfb   : > { %2382 = vperm.xlu0 %3525, %v2298_v6  }
  0xfc   : > { %2975 = vmatmul.mubr.msk.bf16.gmra.mrb[32].mxu1 %vm474_vm4, %v762_v8  ;;  %v1911_v8 = vor.u32 %v1910_v62, %v1907_v61  ;;  %2387 = vperm.xlu1 %3526, %v2299_v7   ;;  %v1248_v61 = vshll.u32 %v3949_v60, 16  ;;  %v2097_v60 = vrot.slane %v4057_v54, 3 }
  0xfd   : > { %2980 = vmatprep.mubr.msk.bf16.mxu1 %vm3600_vm1, %v3599_v2 }
  0xfe   : > { %3145 = vmatmul.mubr.msk.bf16.gmra.mrb[12].mxu0 %vm474_vm4, %v1876_v23  ;;  %v993_v23 = vsel %vm743_vm8, %v990_v0, %v992_v4  ;;  %v1912_v13 = vsel %vm1832_vm9, %v1902_v27, %v1911_v8  ;;  %v1225_v0 = vsel %vm1163_vm5, %v3837_v52, %v1224_v46  ;;  %v2092_v27 = vsel %vm2081_vm12, %v2089_v17, %v2091_v20 }
  0xff   : > { %3148 = vmatprep.mubr.msk.bf16.mxu0 %vm3600_vm1, %v3599_v2  ;;  %v2093_v52 = vrot.slane %v4032_v41, 3  ;;  %v2095_v41 = vrot.slane %v4045_v47, 3  ;;  %v1247_v4 = vrot.slane %v1245_v56, 1  ;;  %v1250_v6 = vrot.slane %v1248_v61, 2 }
 0x101   : > { %v2094_v58 = vsel %vm2081_vm12, %v2091_v20, %v2093_v52  ;;  %v2096_v7 = vsel %vm2081_vm12, %v2093_v52, %v2095_v41  ;;  %v2098_v10 = vsel %vm2081_vm12, %v2095_v41, %v2097_v60 }
 0x104   : > { %2981 = vmatmul.mubr.msk.bf16.vlgmr.msra.gmra.mrb[0].mxu1 %vm474_vm4, %v987_v25  ;;  %v2083_v25 = vrot.slane %v3965_v30, 3  ;;  %v999_v30 = vsel %vm743_vm8, %v996_v31, %v998_v33 }
 0x105   : > { %2984 = vmatprep.mubr.msk.bf16.mxu1 %vm3600_vm1, %v3599_v2  ;;  %3207 = vmatpush3.bf16.msra.mxu1 %v3666_v3  ;;  %v1894_v3 = vsel %vm1832_vm9, %v1884_v21, %v1893_v40  ;;  %v1921_v21 = vsel %vm1832_vm9, %v1911_v8, %v1920_v18  ;;  %v1002_v40 = vrot.slane %v3558_v38, 1  ;;  %v1251_v8 = vor.u32 %v1250_v6, %v1247_v4 }
 0x106   : > { %3149 = vmatmul.mubr.msk.bf16.gmra.mrb[16].mxu0 %vm474_vm4, %v1885_v35  ;;  %v2084_v1 = vsel %vm2081_vm12, %v2082_v24, %v2083_v25  ;;  %v2085_v35 = vrot.slane %v3980_v11, 3  ;;  %v1001_v11 = vsel %vm743_vm8, %v998_v33, %v1000_v37 }
 0x107   : > { %3152 = vmatprep.mubr.msk.bf16.mxu0 %vm3600_vm1, %v3599_v2 }
 0x108   : > { %v2086_v51 = vsel %vm2081_vm12, %v2083_v25, %v2085_v35  ;;  %v2088_v39 = vsel %vm2081_vm12, %v2085_v35, %v2087_v26 }
 0x10c   : > { %2985 = vmatmul.mubr.msk.bf16.gmra.mrb[4].mxu1 %vm474_vm4, %v989_v43  ;;  %v1003_v43 = vsel %vm743_vm8, %v1000_v37, %v1002_v40 }
 0x10d   : > { %2988 = vmatprep.mubr.msk.bf16.mxu1 %vm3600_vm1, %v3599_v2 }
 0x10e   : > { %3153 = vmatmul.mubr.msk.bf16.gmra.mrb[20].mxu0 %vm474_vm4, %v1894_v3  ;;  %v2090_v3 = vsel %vm2081_vm12, %v2087_v26, %v2089_v17 }
 0x10f   : > { %3156 = vmatprep.mubr.msk.bf16.mxu0 %vm3600_vm1, %v3599_v2 }
 0x114   : > { %2989 = vmatmul.mubr.msk.bf16.gmra.mrb[8].mxu1 %vm474_vm4, %v991_v55  ;;  %v1238_v55 = vrot.slane %v1236_v63, 1 }
 0x115   : > { %2992 = vmatprep.mubr.msk.bf16.mxu1 %vm3600_vm1, %v3599_v2 }
 0x116   : > { %3157 = vmatmul.mubr.msk.bf16.gmra.mrb[24].mxu0 %vm474_vm4, %v1903_v59  ;;  %v1242_v59 = vor.u32 %v1241_v57, %v1238_v55 }
 0x117   : > { %3160 = vmatprep.mubr.msk.bf16.mxu0 %vm3600_vm1, %v3599_v2 }
 0x118   : > { %v1243_v62 = vsel %vm1163_vm5, %v1233_v53, %v1242_v59  ;;  %v1252_v47 = vsel %vm1163_vm5, %v1242_v59, %v1251_v8 }
 0x11c   : > { %2993 = vmatmul.mubr.msk.bf16.gmra.mrb[12].mxu1 %vm474_vm4, %v993_v23  ;;  %v2100_v23 = vsel %vm2081_vm12, %v2097_v60, %v2099_v12 }
 0x11d   : > { %2996 = vmatprep.mubr.msk.bf16.mxu1 %vm3600_vm1, %v3599_v2 }
 0x11e   : > { %3161 = vmatmul.mubr.msk.bf16.gmra.mrb[28].mxu0 %vm474_vm4, %v1912_v13 }
 0x11f   : > { %3164 = vmatprep.mubr.msk.bf16.mxu0 %vm3600_vm1, %v3599_v2 }
 0x124   : > { %2997 = vmatmul.mubr.msk.bf16.gmra.mrb[16].mxu1 %vm474_vm4, %v995_v19 }
 0x125   : > { %3000 = vmatprep.mubr.msk.bf16.mxu1 %vm3600_vm1, %v3599_v2 }
 0x126   : > { %3165 = vmatmul.mubr.msk.bf16.gmra.mrb[32].mxu0 %vm474_vm4, %v1921_v21 }
 0x127   : > { %3170 = vmatprep.mubr.msk.bf16.mxu0 %vm3600_vm1, %v3599_v2 }
 0x12c   : > { %3001 = vmatmul.mubr.msk.bf16.gmra.mrb[20].mxu1 %vm474_vm4, %v997_v34 }
 0x12d   : > { %3004 = vmatprep.mubr.msk.bf16.mxu1 %vm3600_vm1, %v3599_v2 }
 0x12e   : > { %3171 = vmatmul.mubr.msk.bf16.vlgmr.msra.gmra.mrb[0].mxu0 %vm474_vm4, %v2084_v1 }
 0x12f   : > { %3174 = vmatprep.mubr.msk.bf16.mxu0 %vm3600_vm1, %v3599_v2 }
 0x134   : > { %3005 = vmatmul.mubr.msk.bf16.gmra.mrb[24].mxu1 %vm474_vm4, %v999_v30 }
 0x135   : > { %3008 = vmatprep.mubr.msk.bf16.mxu1 %vm3600_vm1, %v3599_v2 }
 0x136   : > { %3175 = vmatmul.mubr.msk.bf16.gmra.mrb[4].mxu0 %vm474_vm4, %v2086_v51  ;;  %v2303_v51 = vpop.permute.xlu0 %2302 }
 0x137   : > { %3178 = vmatprep.mubr.msk.bf16.mxu0 %vm3600_vm1, %v3599_v2 }
 0x13c   : > { %3009 = vmatmul.mubr.msk.bf16.gmra.mrb[28].mxu1 %vm474_vm4, %v1001_v11 }
 0x13d   : > { %3012 = vmatprep.mubr.msk.bf16.mxu1 %vm3600_vm1, %v3599_v2 }
 0x13e   : > { %3179 = vmatmul.mubr.msk.bf16.gmra.mrb[8].mxu0 %vm474_vm4, %v2088_v39 }
 0x13f   : > { %3182 = vmatprep.mubr.msk.bf16.mxu0 %vm3600_vm1, %v3599_v2 }
 0x144   : > { %3013 = vmatmul.mubr.msk.bf16.gmra.mrb[32].mxu1 %vm474_vm4, %v1003_v43 }
 0x145   : > { %3038 = vmatprep.mubr.msk.bf16.mxu1 %vm3600_vm1, %v3599_v2 }
 0x146   : > { %3183 = vmatmul.mubr.msk.bf16.gmra.mrb[12].mxu0 %vm474_vm4, %v2090_v3  ;;  %v2313_v3 = vpop.permute.xlu1 %2312 }
 0x147   : > { %3186 = vmatprep.mubr.msk.bf16.mxu0 %vm3600_vm1, %v3599_v2 }
 0x14c   : > { %3039 = vmatmul.mubr.msk.bf16.vlgmr.msra.gmra.mrb[20].mxu1 %vm474_vm4, %v1225_v0 }
 0x14d   : > { %3042 = vmatprep.mubr.msk.bf16.mxu1 %vm3600_vm1, %v3599_v2 }
 0x14e   : > { %3187 = vmatmul.mubr.msk.bf16.gmra.mrb[16].mxu0 %vm474_vm4, %v2092_v27 }
 0x14f   : > { %3190 = vmatprep.mubr.msk.bf16.mxu0 %vm3600_vm1, %v3599_v2 }
 0x154   : > { %3043 = vmatmul.mubr.msk.bf16.gmra.mrb[24].mxu1 %vm474_vm4, %v1234_v32 }
 0x155   : > { %3046 = vmatprep.mubr.msk.bf16.mxu1 %vm3600_vm1, %v3599_v2 }
 0x156   : > { %3191 = vmatmul.mubr.msk.bf16.gmra.mrb[20].mxu0 %vm474_vm4, %v2094_v58 }
 0x157   : > { %3194 = vmatprep.mubr.msk.bf16.mxu0 %vm3600_vm1, %v3599_v2 }
 0x15c   : > { %3047 = vmatmul.mubr.msk.bf16.gmra.mrb[28].mxu1 %vm474_vm4, %v1243_v62  ;;  %v2308_v39 = vpop.permute.xlu0 %2307 }
 0x15d   : > { %3050 = vmatprep.mubr.msk.bf16.mxu1 %vm3600_vm1, %v3599_v2 }
 0x15e   : > { %3195 = vmatmul.mubr.msk.bf16.gmra.mrb[24].mxu0 %vm474_vm4, %v2096_v7  ;;  %v2318_v58 = vpop.permute.xlu1 %2317 }
 0x15f   : > { %3198 = vmatprep.mubr.msk.bf16.mxu0 %vm3600_vm1, %v3599_v2 }
 0x164   : > { %3051 = vmatmul.mubr.msk.bf16.gmra.mrb[32].mxu1 %vm474_vm4, %v1252_v47 }
 0x166   : > { %3199 = vmatmul.mubr.msk.bf16.gmra.mrb[28].mxu0 %vm474_vm4, %v2098_v10 }
 0x167   : > { %3202 = vmatprep.mubr.msk.bf16.mxu0 %vm3600_vm1, %v3599_v2 }
 0x16e   : > { %3203 = vmatmul.mubr.msk.bf16.gmra.mrb[32].mxu0 %vm474_vm4, %v2100_v23 }
 0x1d7   : > { %v1068_v13 = vpop.f32.mrb[0].mxu1 }
 0x1d8   : > { %v2982_v29 = vpop.f32.mrb[1].mxu1 }
 0x1d9   : > { %v1071_v54 = vpop.f32.mrb[2].mxu1 }
 0x1da   : > { %v2983_v14 = vpop.f32.mrb[3].mxu1 }
 0x1df   : > { %v1076_v16 = vpop.f32.mrb[4].mxu1 }
 0x1e0   : > { %v2986_v18 = vpop.f32.mrb[5].mxu1 }
 0x1e1   : > { %v1079_v19 = vpop.f32.mrb[6].mxu1 }
 0x1e2   : > { %v2987_v5 = vpop.f32.mrb[7].mxu1 }
 0x1e3   : > { %v2328_v5 = vpop.permute.xlu1 %2327 }
 0x1e7   : > { %v1084_v21 = vpop.f32.mrb[8].mxu1 }
 0x1e8   : > { %v2990_v22 = vpop.f32.mrb[9].mxu1 }
 0x1e9   : > { %v1087_v31 = vpop.f32.mrb[10].mxu1 }
 0x1ea   : > { %v2991_v24 = vpop.f32.mrb[11].mxu1 }
 0x1ef   : > { %v4312_v25 = vpop.f32.mrb[12].mxu1 }
 0x1f0   : > { %v2994_v2 = vpop.f32.mrb[13].mxu1 }
 0x1f1   : > { %v4314_v9 = vpop.f32.mrb[14].mxu1 }
 0x1f2   : > { %v2995_v34 = vpop.f32.mrb[15].mxu1 }
 0x1f7   : > { %v4316_v1 = vpop.f32.mrb[16].mxu1 }
 0x1f8   : > { %v2998_v33 = vpop.f32.mrb[17].mxu1 }
 0x1f9   : > { %v4318_v35 = vpop.f32.mrb[18].mxu1 }
 0x1fa   : > { %v2999_v30 = vpop.f32.mrb[19].mxu1 }
 0x201   : > { %v2165_v37 = vpop.f32.mrb[0].mxu0 }
 0x202   : > { %v3208_v26 = vadd.f32 %v2165_v37, %v1068_v13  ;;  %v3172_v11 = vpop.f32.mrb[1].mxu0  ;;  %v2323_v13 = vpop.permute.xlu0 %2322 }
 0x203   : > { %v2168_v38 = vpop.f32.mrb[2].mxu0 }
 0x204   : > { %v2390_v40 = vmul.f32 %v3208_v26, %v2303_v51  ;;  %v2451_v28 = vmul.f32 %v3208_v26, %v3208_v26  ;;  %v3209_v42 = vadd.f32 %v2168_v38, %v1071_v54  ;;  %v3173_v17 = vpop.f32.mrb[3].mxu0 }
 0x206   : > { %v2469_v43 = vmul.f32 %v2451_v28, %v2303_v51  ;;  %v2452_v44 = vmul.f32 %v3209_v42, %v3209_v42  ;;  %v2391_v45 = vmul.f32 %v3209_v42, %v2308_v39  ;;  %v2408_v46 = vsel %vm474_vm4, %v2390_v40, 0.0  ;;  %v2333_v40 = vpop.permute.xlu0 %2332 }
 0x208   : > { %v2409_v49 = vsel %vm474_vm4, %v2391_v45, 0.0  ;;  %v2470_v36 = vmul.f32 %v2452_v44, %v2308_v39  ;;  %v2487_v48 = vsel %vm474_vm4, %v2469_v43, 0.0 }
 0x209   : > { %v2410_v20 = vadd.f32 %v2409_v49, %v2408_v46  ;;  %v2173_v0 = vpop.f32.mrb[4].mxu0 }
 0x20a   : > { %v2488_v50 = vsel %vm474_vm4, %v2470_v36, 0.0  ;;  %v3210_v27 = vadd.f32 %v2173_v0, %v1076_v16  ;;  %v3176_v53 = vpop.f32.mrb[5].mxu0 }
 0x20b   : > { %v2489_v63 = vadd.f32 %v2488_v50, %v2487_v48  ;;  %v2176_v15 = vpop.f32.mrb[6].mxu0 }
 0x20c   : > { %v2392_v52 = vmul.f32 %v3210_v27, %v2313_v3  ;;  %v2453_v32 = vmul.f32 %v3210_v27, %v3210_v27  ;;  %v3211_v55 = vadd.f32 %v2176_v15, %v1079_v19  ;;  %v3177_v57 = vpop.f32.mrb[7].mxu0 }
 0x20e   : > { %v2411_v59 = vsel %vm474_vm4, %v2392_v52, 0.0  ;;  %v2471_v56 = vmul.f32 %v2453_v32, %v2313_v3  ;;  %v2393_v61 = vmul.f32 %v3211_v55, %v2318_v58  ;;  %v2454_v41 = vmul.f32 %v3211_v55, %v3211_v55  ;;  %v2338_v3 = vpop.permute.xlu1 %2337 }
 0x20f   : > { %v2412_v62 = vadd.f32 %v2411_v59, %v2410_v20  ;;  %v2343_v59 = vpop.permute.xlu0 %2342 }
 0x210   : > { %v2490_v4 = vsel %vm474_vm4, %v2471_v56, 0.0  ;;  %v2413_v6 = vsel %vm474_vm4, %v2393_v61, 0.0  ;;  %v2472_v7 = vmul.f32 %v2454_v41, %v2318_v58 }
 0x211   : > { %v2491_v8 = vadd.f32 %v2490_v4, %v2489_v63  ;;  %v2414_v60 = vadd.f32 %v2413_v6, %v2412_v62  ;;  %v2181_v47 = vpop.f32.mrb[8].mxu0 }
 0x212   : > { %v2492_v10 = vsel %vm474_vm4, %v2472_v7, 0.0  ;;  %v3212_v12 = vadd.f32 %v2181_v47, %v1084_v21  ;;  %v3180_v23 = vpop.f32.mrb[9].mxu0  ;;  %v2348_v7 = vpop.permute.xlu1 %2347 }
 0x213   : > { %v2493_v29 = vadd.f32 %v2492_v10, %v2491_v8  ;;  %v2184_v54 = vpop.f32.mrb[10].mxu0 }
 0x214   : > { %v2394_v14 = vmul.f32 %v3212_v12, %v2323_v13  ;;  %v2455_v16 = vmul.f32 %v3212_v12, %v3212_v12  ;;  %v3213_v18 = vadd.f32 %v2184_v54, %v1087_v31  ;;  %v3181_v19 = vpop.f32.mrb[11].mxu0 }
 0x216   : > { %v2415_v22 = vsel %vm474_vm4, %v2394_v14, 0.0  ;;  %v2473_v24 = vmul.f32 %v2455_v16, %v2323_v13  ;;  %v2395_v2 = vmul.f32 %v3213_v18, %v2328_v5  ;;  %v2456_v34 = vmul.f32 %v3213_v18, %v3213_v18 }
 0x217   : > { %v2416_v33 = vadd.f32 %v2415_v22, %v2414_v60 }
 0x218   : > { %v2494_v30 = vsel %vm474_vm4, %v2473_v24, 0.0  ;;  %v2417_v51 = vsel %vm474_vm4, %v2395_v2, 0.0  ;;  %v2474_v21 = vmul.f32 %v2456_v34, %v2328_v5  ;;  %v2353_v2 = vpop.permute.xlu0 %2352 }
 0x219   : > { %v2495_v37 = vadd.f32 %v2494_v30, %v2493_v29  ;;  %v2418_v26 = vadd.f32 %v2417_v51, %v2416_v33  ;;  %v2189_v11 = vpop.f32.mrb[12].mxu0 }
 0x21a   : > { %v2496_v38 = vsel %vm474_vm4, %v2474_v21, 0.0  ;;  %v3214_v31 = vadd.f32 %v2189_v11, %v4312_v25  ;;  %v3184_v39 = vpop.f32.mrb[13].mxu0 }
 0x21b   : > { %v2497_v28 = vadd.f32 %v2496_v38, %v2495_v37  ;;  %v2192_v42 = vpop.f32.mrb[14].mxu0 }
 0x21c   : > { %v2396_v17 = vmul.f32 %v3214_v31, %v2333_v40  ;;  %v2457_v43 = vmul.f32 %v3214_v31, %v3214_v31  ;;  %v3215_v44 = vadd.f32 %v2192_v42, %v4314_v9  ;;  %v3185_v45 = vpop.f32.mrb[15].mxu0 }
 0x21e   : > { %v2419_v46 = vsel %vm474_vm4, %v2396_v17, 0.0  ;;  %v2475_v49 = vmul.f32 %v2457_v43, %v2333_v40  ;;  %v2397_v36 = vmul.f32 %v3215_v44, %v2338_v3  ;;  %v2458_v20 = vmul.f32 %v3215_v44, %v3215_v44 }
 0x21f   : > { %v1357_v0 = vpop.f32.mrb[20].mxu1  ;;  %v2420_v48 = vadd.f32 %v2419_v46, %v2418_v26  ;;  %v2358_v26 = vpop.permute.xlu1 %2357 }
 0x220   : > { %v3040_v50 = vpop.f32.mrb[21].mxu1  ;;  %v2498_v25 = vsel %vm474_vm4, %v2475_v49, 0.0  ;;  %v2421_v27 = vsel %vm474_vm4, %v2397_v36, 0.0  ;;  %v2476_v53 = vmul.f32 %v2458_v20, %v2338_v3 }
 0x221   : > { %v1360_v63 = vpop.f32.mrb[22].mxu1  ;;  %v2499_v15 = vadd.f32 %v2498_v25, %v2497_v28  ;;  %v2422_v52 = vadd.f32 %v2421_v27, %v2420_v48  ;;  %v2197_v32 = vpop.f32.mrb[16].mxu0 }
 0x222   : > { %v3041_v9 = vpop.f32.mrb[23].mxu1  ;;  %v2500_v55 = vsel %vm474_vm4, %v2476_v53, 0.0  ;;  %v3216_v57 = vadd.f32 %v2197_v32, %v4316_v1  ;;  %v3188_v58 = vpop.f32.mrb[17].mxu0 }
 0x223   : > { %v2501_v56 = vadd.f32 %v2500_v55, %v2499_v15  ;;  %v2200_v61 = vpop.f32.mrb[18].mxu0  ;;  %v2363_v50 = vpop.permute.xlu0 %2362 }
 0x224   : > { %v2398_v41 = vmul.f32 %v3216_v57, %v2343_v59  ;;  %v2459_v62 = vmul.f32 %v3216_v57, %v3216_v57  ;;  %v3217_v4 = vadd.f32 %v2200_v61, %v4318_v35  ;;  %v3189_v6 = vpop.f32.mrb[19].mxu0  ;;  %v2368_v32 = vpop.permute.xlu1 %2367 }
 0x226   : > { %v2423_v8 = vsel %vm474_vm4, %v2398_v41, 0.0  ;;  %v2477_v60 = vmul.f32 %v2459_v62, %v2343_v59  ;;  %v2399_v47 = vmul.f32 %v3217_v4, %v2348_v7  ;;  %v2460_v10 = vmul.f32 %v3217_v4, %v3217_v4 }
 0x227   : > { %v1365_v12 = vpop.f32.mrb[24].mxu1  ;;  %v2424_v23 = vadd.f32 %v2423_v8, %v2422_v52 }
 0x228   : > { %v3044_v13 = vpop.f32.mrb[25].mxu1  ;;  %v2502_v1 = vsel %vm474_vm4, %v2477_v60, 0.0  ;;  %v2425_v29 = vsel %vm474_vm4, %v2399_v47, 0.0  ;;  %v2478_v54 = vmul.f32 %v2460_v10, %v2348_v7 }
 0x229   : > { %v1368_v14 = vpop.f32.mrb[26].mxu1  ;;  %v2503_v16 = vadd.f32 %v2502_v1, %v2501_v56  ;;  %v2426_v18 = vadd.f32 %v2425_v29, %v2424_v23  ;;  %v2205_v19 = vpop.f32.mrb[20].mxu0 }
 0x22a   : > { %v3045_v35 = vpop.f32.mrb[27].mxu1  ;;  %v2504_v5 = vsel %vm474_vm4, %v2478_v54, 0.0  ;;  %v3218_v22 = vadd.f32 %v2205_v19, %v1357_v0  ;;  %v3192_v24 = vpop.f32.mrb[21].mxu0 }
 0x22b   : > { %v2505_v34 = vadd.f32 %v2504_v5, %v2503_v16  ;;  %v2208_v33 = vpop.f32.mrb[22].mxu0  ;;  %v2373_v13 = vpop.permute.xlu0 %2372 }
 0x22c   : > { %v2400_v30 = vmul.f32 %v3218_v22, %v2353_v2  ;;  %v2461_v51 = vmul.f32 %v3218_v22, %v3218_v22  ;;  %v3219_v21 = vadd.f32 %v2208_v33, %v1360_v63  ;;  %v3193_v37 = vpop.f32.mrb[23].mxu0  ;;  %v2378_v19 = vpop.permute.xlu1 %2377 }
 0x22e   : > { %v2427_v11 = vsel %vm474_vm4, %v2400_v30, 0.0  ;;  %v2479_v38 = vmul.f32 %v2461_v51, %v2353_v2  ;;  %v2401_v31 = vmul.f32 %v3219_v21, %v2358_v26  ;;  %v2462_v39 = vmul.f32 %v3219_v21, %v3219_v21 }
 0x22f   : > { %v1373_v40 = vpop.f32.mrb[28].mxu1  ;;  %v2428_v28 = vadd.f32 %v2427_v11, %v2426_v18 }
 0x230   : > { %v3048_v42 = vpop.f32.mrb[29].mxu1  ;;  %v2506_v17 = vsel %vm474_vm4, %v2479_v38, 0.0  ;;  %v2429_v43 = vsel %vm474_vm4, %v2401_v31, 0.0  ;;  %v2480_v44 = vmul.f32 %v2462_v39, %v2358_v26  ;;  %v2383_v31 = vpop.permute.xlu0 %2382 }
 0x231   : > { %v1376_v45 = vpop.f32.mrb[30].mxu1  ;;  %v2507_v3 = vadd.f32 %v2506_v17, %v2505_v34  ;;  %v2430_v46 = vadd.f32 %v2429_v43, %v2428_v28  ;;  %v2213_v49 = vpop.f32.mrb[24].mxu0 }
 0x232   : > { %v3049_v36 = vpop.f32.mrb[31].mxu1  ;;  %v2508_v20 = vsel %vm474_vm4, %v2480_v44, 0.0  ;;  %v3220_v0 = vadd.f32 %v2213_v49, %v1365_v12  ;;  %v3196_v48 = vpop.f32.mrb[25].mxu0 }
 0x233   : > { %v2509_v25 = vadd.f32 %v2508_v20, %v2507_v3  ;;  %v2216_v27 = vpop.f32.mrb[26].mxu0  ;;  %v2388_v44 = vpop.permute.xlu1 %2387 }
 0x234   : > { %v2402_v53 = vmul.f32 %v3220_v0, %v2363_v50  ;;  %v2463_v63 = vmul.f32 %v3220_v0, %v3220_v0  ;;  %v3221_v15 = vadd.f32 %v2216_v27, %v1368_v14  ;;  %v3197_v52 = vpop.f32.mrb[27].mxu0 }
 0x236   : > { %v2431_v9 = vsel %vm474_vm4, %v2402_v53, 0.0  ;;  %v2481_v55 = vmul.f32 %v2463_v63, %v2363_v50  ;;  %v2403_v57 = vmul.f32 %v3221_v15, %v2368_v32  ;;  %v2464_v58 = vmul.f32 %v3221_v15, %v3221_v15 }
 0x237   : > { %v1381_v59 = vpop.f32.mrb[32].mxu1  ;;  %v2432_v56 = vadd.f32 %v2431_v9, %v2430_v46 }
 0x238   : > { %v3052_v61 = vpop.f32.mrb[33].mxu1  ;;  %v2510_v41 = vsel %vm474_vm4, %v2481_v55, 0.0  ;;  %v2433_v62 = vsel %vm474_vm4, %v2403_v57, 0.0  ;;  %v2482_v4 = vmul.f32 %v2464_v58, %v2368_v32 }
 0x239   : > { %v1384_v6 = vpop.f32.mrb[34].mxu1  ;;  %v2511_v7 = vadd.f32 %v2510_v41, %v2509_v25  ;;  %v2434_v8 = vadd.f32 %v2433_v62, %v2432_v56  ;;  %v2221_v60 = vpop.f32.mrb[28].mxu0 }
 0x23a   : > { %v3053_v47 = vpop.f32.mrb[35].mxu1  ;;  %v2512_v10 = vsel %vm474_vm4, %v2482_v4, 0.0  ;;  %v3222_v12 = vadd.f32 %v2221_v60, %v1373_v40  ;;  %v3200_v23 = vpop.f32.mrb[29].mxu0 }
 0x23b   : > { %v2513_v1 = vadd.f32 %v2512_v10, %v2511_v7  ;;  %v2224_v29 = vpop.f32.mrb[30].mxu0 }
 0x23c   : > { %v2404_v54 = vmul.f32 %v3222_v12, %v2373_v13  ;;  %v2465_v14 = vmul.f32 %v3222_v12, %v3222_v12  ;;  %v3223_v16 = vadd.f32 %v2224_v29, %v1376_v45  ;;  %v3201_v18 = vpop.f32.mrb[31].mxu0 }
 0x23e   : > { %v2435_v35 = vsel %vm474_vm4, %v2404_v54, 0.0  ;;  %v2483_v5 = vmul.f32 %v2465_v14, %v2373_v13  ;;  %v2405_v22 = vmul.f32 %v3223_v16, %v2378_v19  ;;  %v2466_v24 = vmul.f32 %v3223_v16, %v3223_v16 }
 0x23f   : > { %v2436_v2 = vadd.f32 %v2435_v35, %v2434_v8 }
 0x240   : > { %v2514_v34 = vsel %vm474_vm4, %v2483_v5, 0.0  ;;  %v2437_v33 = vsel %vm474_vm4, %v2405_v22, 0.0  ;;  %v2484_v30 = vmul.f32 %v2466_v24, %v2378_v19 }
 0x241   : > { %v2515_v51 = vadd.f32 %v2514_v34, %v2513_v1  ;;  %v2438_v21 = vadd.f32 %v2437_v33, %v2436_v2  ;;  %v2229_v37 = vpop.f32.mrb[32].mxu0 }
 0x242   : > { %v2516_v26 = vsel %vm474_vm4, %v2484_v30, 0.0  ;;  %v3224_v11 = vadd.f32 %v2229_v37, %v1381_v59  ;;  %v3204_v38 = vpop.f32.mrb[33].mxu0 }
 0x243   : > { %v2517_v39 = vadd.f32 %v2516_v26, %v2515_v51  ;;  %v2232_v40 = vpop.f32.mrb[34].mxu0 }
 0x244   : > { %v2406_v28 = vmul.f32 %v3224_v11, %v2383_v31  ;;  %v2467_v42 = vmul.f32 %v3224_v11, %v3224_v11  ;;  %v3225_v17 = vadd.f32 %v2232_v40, %v1384_v6  ;;  %v3205_v43 = vpop.f32.mrb[35].mxu0 }
 0x246   : > { %v2439_v45 = vsel %vm474_vm4, %v2406_v28, 0.0  ;;  %v2485_v3 = vmul.f32 %v2467_v42, %v2383_v31  ;;  %v2407_v46 = vmul.f32 %v3225_v17, %v2388_v44  ;;  %v2468_v49 = vmul.f32 %v3225_v17, %v3225_v17 }
 0x247   : > { %v2440_v36 = vadd.f32 %v2439_v45, %v2438_v21 }
 0x248   : > { %v2518_v20 = vsel %vm474_vm4, %v2485_v3, 0.0  ;;  %v2441_v0 = vsel %vm474_vm4, %v2407_v46, 0.0  ;;  %v2486_v48 = vmul.f32 %v2468_v49, %v2388_v44 }
 0x249   : > { %v2519_v50 = vadd.f32 %v2518_v20, %v2517_v39  ;;  %v2442_v25 = vadd.f32 %v2441_v0, %v2440_v36 }
 0x24a   : > { %v2520_v27 = vsel %vm474_vm4, %v2486_v48, 0.0 }
 0x24b   : > { %v2443_v53 = vrot.slane %v2442_v25, 4  ;;  %v2521_v63 = vadd.f32 %v2520_v27, %v2519_v50 }
 0x24d   : > { %v2444_v15 = vadd.f32 %v2443_v53, %v2442_v25  ;;  %v2522_v52 = vrot.slane %v2521_v63, 4 }
 0x24f   : > { %v2445_v32 = vrot.slane %v2444_v15, 2  ;;  %v2523_v9 = vadd.f32 %v2522_v52, %v2521_v63 }
 0x251   : > { %v2446_v55 = vadd.f32 %v2445_v32, %v2444_v15  ;;  %v2524_v57 = vrot.slane %v2523_v9, 2 }
 0x253   : > { %v2447_v58 = vrot.slane %v2446_v55, 1  ;;  %v2525_v59 = vadd.f32 %v2524_v57, %v2523_v9 }
 0x255   : > { %v2448_v56 = vadd.f32 %v2447_v58, %v2446_v55  ;;  %v2526_v61 = vrot.slane %v2525_v59, 1 }
 0x257   : > { %2450 = vst.msk [vmem:[%s274_s11] sm:$0x1] %vm2449_vm13, %v2448_v56  ;;  %v2527_v41 = vadd.f32 %v2526_v61, %v2525_v59 }
 0x259   : > { %2528 = vst.msk [vmem:[%s274_s11 + $0x1] sm:$0x1] %vm2449_vm13, %v2527_v41 }
 0x25a PF: > { %s13_s16 = sadd.s32 1, %s3597_s16   ;;  %s4385_s12 = smov %s3589_s14 }
 0x25b   : > { %p10_p9 = scmp.ge.s32.totalorder %s13_s16, 6   ;;  %s4386_s13 = smov %s3593_s15 }
 0x25c   : > { %s4387_s14 = smov %s4390_s17  ;;  %s4388_s15 = smov %s4394_s18 }
 0x25d   :  { %12 = sbr.rel (!%p10_p9) target bundleno = 3 (0x3), region = 73 }

// kernel: basic_block_forward.3
= control target key start
LH: loop header
LB: loop body
LE: loop exit
PB: predicated region body
PF: predicated region fallthrough
CT: control target
= control target key end

     0   :  { %s3686_s18 = smov 0   ;;  %s3688_s19 = smov 0   ;;  %s4484_s0 = inlined_call_operand.vmem [shape: bf16[2,324,4], index: 0, kind: input, shape index: {}]   ;;  %s4485_s1 = inlined_call_operand.vmem [shape: bf16[2,9,36,4], index: 1, kind: input, shape index: {}]   ;;  %s4486_s2 = inlined_call_operand.vmem [shape: bf16[9,4,4], index: 2, kind: input, shape index: {}]   ;;  %s4487_s3 = inlined_call_operand.vmem [shape: f32[1,4], index: 3, kind: input, shape index: {}]   ;;  %s4488_s4 = inlined_call_operand.vmem [shape: f32[1,4], index: 4, kind: input, shape index: {}]   ;;  %s4489_s5 = inlined_call_operand.vmem [shape: f32[2,8,8,4], index: 5, kind: output, shape index: {}]  }
   0x1   :  { %s3690_s20 = smov 0   ;;  %s3692_s21 = smov 0  }
   0x2   :  { %s3694_s22 = smov 0  }
   0x3 LB: > { %s24_s23 = sadd.s32 1, %s3644_s20  ;;  %s27_s24 = sadd.s32 1, %s3648_s21  ;;  %s3652_s22 = sphi %s3694_s22, %s15_s22   ;;  %s3648_s21 = sphi %s3692_s21, %s4493_s21   ;;  %s3644_s20 = sphi %s3690_s20, %s4492_s20   ;;  %s3640_s19 = sphi %s3688_s19, %s4491_s19   ;;  %s3636_s18 = sphi %s3686_s18, %s4490_s18  }
   0x4   : > { %p25_p0 = scmp.ge.s32.totalorder %s24_s23, 2  ;;  %p2676_p1 = scmp.ge.s32.totalorder %s3652_s22, 1 }
   0x5   : > { %p240_p2 = scmp.lt.s32.totalorder %s3652_s22, 5 }
   0x6   : > { %s4495_s23 = smov (%p25_p0, %s24_s23), 0  ;;  %s4497_s24 = smov (!%p25_p0, %s27_s24), %s3648_s21 }
   0x7   : > { %p241_p3 = pnand %p2676_p1, %p240_p2  ;;  %p29_p4 = scmp.ge.s32.totalorder %s4497_s24, 2 }
   0x8   : > { %vm559_vm0 = vcmask (!%p241_p3), 1041408   ;;  %v2743_v0 = vld [vmem:[%s4486_s2 + $0x8] sm:$0x3] (!%p241_p3)  ;;  %v2683_v1 = vld [vmem:[%s4486_s2 + $0x2] sm:$0x3] (!%p241_p3)  ;;  %v3654_v2 = vmov (!%p241_p3), 0.0  }
   0x9   : > { %s4499_s24 = smov (%p29_p4, %s4497_s24), 0  ;;  %244 = sbr.rel (%p241_p3) target bundleno = 603 (0x25b), region = 40 }
   0xa   : > { %3056 = vmatprep.subr.bf16.mxu0 (!%p241_p3), %v3654_v2  ;;  %2904 = vmatprep.subr.bf16.mxu1 (!%p241_p3), %v3654_v2  ;;  %v3729_v3 = vsel (!%p241_p3), %vm559_vm0, %v2743_v0, 0  ;;  %v561_v4 = vsel (!%p241_p3), %vm559_vm0, %v2683_v1, 0  ;;  %s291_s29 = smul.u32 (!%p241_p3), 18, %s3636_s18  ;;  %p296_p5 = scmp.lt.s32.totalorder (!%p241_p3), %s3640_s19, 1  ;;  %vm3655_vm1 = vmmov (!%p241_p3), 0   ;;  %vm351_vm2 = vcmask (!%p241_p3), 27648  }
   0xb   : > { %3057 = vmatpush3.bf16.msra.mxu0 (!%p241_p3), %v3729_v3  ;;  %2905 = vmatpush3.bf16.msra.mxu1 (!%p241_p3), %v561_v4  ;;  %s3746_s6 = sshll.u32 (!%p241_p3), %s3636_s18, 2  ;;  %vm454_vm3 = vsmask.f32 (!%p241_p3), 7424  ;;  %v402_v23 = vld [vmem:[%s4486_s2] sm:$0x3] (!%p241_p3)  ;;  %vm531_vm4 = vcmask (!%p241_p3), 31744  }
   0xc   : > { %2906 = vmatprep.mubr.msk.bf16.mxu1 (!%p241_p3), %vm3655_vm1, %v3654_v2  ;;  %3058 = vmatprep.mubr.msk.bf16.mxu0 (!%p241_p3), %vm3655_vm1, %v3654_v2  ;;  %p298_p6 = scmp.lt.s32.totalorder (!%p241_p3), %s291_s29, 40  ;;  %s310_s12 = sadd.s32 (!%p241_p3), 4, %s3746_s6  ;;  %v687_v36 = vsel (!%p241_p3), %vm559_vm0, %v402_v23, 0  ;;  %v2754_v42 = vld [vmem:[%s4486_s2 + $0xa] sm:$0x3] (!%p241_p3)  ;;  %vm1469_vm6 = vcmask (!%p241_p3), 1045504  }
   0xd   : > { %3094 = vmatprep.subr.bf16.mxu0 (!%p241_p3), %v3654_v2  ;;  %2942 = vmatprep.subr.bf16.mxu1 (!%p241_p3), %v3654_v2  ;;  %p313_p7 = scmp.lt.s32.totalorder (!%p241_p3), %s310_s12, 8  ;;  %vm1220_vm5 = vsmask.f32 (!%p241_p3), 6400  ;;  %v1517_v58 = vsel (!%p241_p3), %vm559_vm0, %v2754_v42, 0  ;;  %vm379_vm7 = vcmask (!%p241_p3), 25600   ;;  %vm800_vm8 = vcmask (!%p241_p3), 1046528  }
   0xe   : > { %vm1889_vm9 = vsmask.f32 (!%p241_p3), 5376  ;;  %vm2138_vm10 = vcmask (!%p241_p3), 1044480   ;;  %p325_p8 = scmp.lt.s32.totalorder (!%p241_p3), %s3746_s6, 7 }
  0x10   : > { %s4501_s19 = smov (!%p296_p5, %s3640_s19), 1  ;;  %s4503_s29 = smov (!%p298_p6, %s291_s29), 40 }
  0x11   : > { %s3518_s30 = smul.u32 41, %s4501_s19  ;;  %s4505_s12 = smov (!%p313_p7, %s310_s12), 8 }
  0x12   : > { %s3520_s17 = smul.u32 45, %s4501_s19  ;;  %s4507_s6 = smov (!%p325_p8, %s3746_s6), 7 }
  0x13   : > { %s301_s7 = sadd.s32 %s3518_s30, %s4503_s29  ;;  %s3519_s18 = smul.u32 5, %s4505_s12 }
  0x14   : > { %s2677_s8 = sshll.u32 %s301_s7, 2 }
  0x15   : > { %s3751_s11 = scalar_lea.vmem %s4484_s0, %s2677_s8  ;;  %s317_s25 = sadd.s32 %s3520_s17, %s3519_s18 }
  0x16   : > { %v333_v5 = vld [vmem:[%s3751_s11] sm:$0xf]  ;;  %v334_v6 = vld [vmem:[%s3751_s11 + $0x4] sm:$0xf]  ;;  %v335_v7 = vld [vmem:[%s3751_s11 + $0x8] sm:$0xf] }
  0x17   : > { %v336_v8 = vld [vmem:[%s3751_s11 + $0xc] sm:$0xf]  ;;  %352 = vst.msk [vmem:[#allocation2] sm:$0xf] %vm351_vm2, %v333_v5  ;;  %353 = vst.msk [vmem:[#allocation2 + $0x4] sm:$0xf] %vm351_vm2, %v334_v6 }
  0x18   : > { %354 = vst.msk [vmem:[#allocation2 + $0x8] sm:$0xf] %vm351_vm2, %v335_v7  ;;  %v337_v9 = vld [vmem:[%s3751_s11 + $0x10] sm:$0xf]  ;;  %v338_v10 = vld [vmem:[%s3751_s11 + $0x14] sm:$0xf] }
  0x19   : > { %355 = vst.msk [vmem:[#allocation2 + $0xc] sm:$0xf] %vm351_vm2, %v336_v8  ;;  %356 = vst.msk [vmem:[#allocation2 + $0x10] sm:$0xf] %vm351_vm2, %v337_v9  ;;  %v339_v11 = vld [vmem:[%s3751_s11 + $0x18] sm:$0xf] }
  0x1a   : > { %357 = vst.msk [vmem:[#allocation2 + $0x14] sm:$0xf] %vm351_vm2, %v338_v10  ;;  %v340_v12 = vld [vmem:[%s3751_s11 + $0x1c] sm:$0xf]  ;;  %v341_v13 = vld [vmem:[%s3751_s11 + $0x20] sm:$0xf] }
  0x1b   : > { %358 = vst.msk [vmem:[#allocation2 + $0x18] sm:$0xf] %vm351_vm2, %v339_v11  ;;  %359 = vst.msk [vmem:[#allocation2 + $0x1c] sm:$0xf] %vm351_vm2, %v340_v12  ;;  %v342_v14 = vld [vmem:[%s3751_s11 + $0x24] sm:$0xf] }
  0x1c   : > { %360 = vst.msk [vmem:[#allocation2 + $0x20] sm:$0xf] %vm351_vm2, %v341_v13  ;;  %v343_v15 = vld [vmem:[%s3751_s11 + $0x28] sm:$0xf]  ;;  %v344_v16 = vld [vmem:[%s3751_s11 + $0x2c] sm:$0xf] }
  0x1d   : > { %361 = vst.msk [vmem:[#allocation2 + $0x24] sm:$0xf] %vm351_vm2, %v342_v14  ;;  %362 = vst.msk [vmem:[#allocation2 + $0x28] sm:$0xf] %vm351_vm2, %v343_v15  ;;  %v345_v17 = vld [vmem:[%s3751_s11 + $0x30] sm:$0xf] }
  0x1e   : > { %363 = vst.msk [vmem:[#allocation2 + $0x2c] sm:$0xf] %vm351_vm2, %v344_v16  ;;  %v346_v18 = vld [vmem:[%s3751_s11 + $0x34] sm:$0xf]  ;;  %v347_v19 = vld [vmem:[%s3751_s11 + $0x38] sm:$0xf] }
  0x1f   : > { %364 = vst.msk [vmem:[#allocation2 + $0x30] sm:$0xf] %vm351_vm2, %v345_v17  ;;  %365 = vst.msk [vmem:[#allocation2 + $0x34] sm:$0xf] %vm351_vm2, %v346_v18  ;;  %v348_v20 = vld [vmem:[%s3751_s11 + $0x3c] sm:$0xf] }
  0x20   : > { %366 = vst.msk [vmem:[#allocation2 + $0x38] sm:$0xf] %vm351_vm2, %v347_v19  ;;  %v349_v21 = vld [vmem:[%s3751_s11 + $0x40] sm:$0xf]  ;;  %v350_v22 = vld [vmem:[%s3751_s11 + $0x44] sm:$0xf] }
  0x21   : > { %367 = vst.msk [vmem:[#allocation2 + $0x3c] sm:$0xf] %vm351_vm2, %v348_v20  ;;  %368 = vst.msk [vmem:[#allocation2 + $0x40] sm:$0xf] %vm351_vm2, %v349_v21  ;;  %v384_v24 = vld [vmem:[#allocation2] sm:$0xf] }
  0x22   : > { %369 = vst.msk [vmem:[#allocation2 + $0x44] sm:$0xf] %vm351_vm2, %v350_v22  ;;  %v3795_v25 = vld [vmem:[#allocation2 + $0x4] sm:$0xf]  ;;  %v3800_v27 = vld [vmem:[#allocation2 + $0x8] sm:$0xff]   ;;  %v3804_v30 = vld [vmem:[#allocation2 + $0x10] sm:$0xff]  }
  0x23   : > { %v3798_v26 = vcombine.low %v384_v24, %v3795_v25  ;;  %v973_v28 = vld [vmem:[#allocation2 + $0x8] sm:$0xe]  ;;  %v3802_v29 = vld [vmem:[#allocation2 + $0xc] sm:$0xf]  ;;  %v463_v33 = vshll.u32 %v3800_v27, 16  ;;  %v3816_v35 = vld [vmem:[#allocation2 + $0x10] sm:$0xff]  }
  0x24   : > { %v3814_v34 = vcombine.low %v973_v28, %v3802_v29  ;;  %v3819_v37 = vld [vmem:[#allocation2 + $0x18] sm:$0xff]   ;;  %v1230_v43 = vshrl.u32 %v3804_v30, 16  ;;  %v1233_v44 = vshll.u32 %v3804_v30, 16  ;;  %v467_v45 = vshrl.u32 %v3800_v27, 16  ;;  %v3833_v53 = vld [vmem:[#allocation2 + $0x20] sm:$0xff]   ;;  %s2679_s26 = sshll.u32 %s317_s25, 2 }
  0x25   : > { %v456_v31 = vshrl.u32 %v3798_v26, 16  ;;  %v458_v32 = vshll.u32 %v3798_v26, 16  ;;  %v465_v39 = vrot.slane %v463_v33, 1  ;;  %v471_v49 = vshll.u32 %v3816_v35, 16  ;;  %v3841_v63 = vld [vmem:[#allocation2 + $0x18] sm:$0xff]   ;;  %s3853_s29 = scalar_lea.vmem %s4485_s1, %s2679_s26  ;;  %v3858_v9 = vld [vmem:[#allocation2 + $0x28] sm:$0xff]  }
  0x26   : > { %v1222_v40 = vshrl.u32 %v3814_v34, 16  ;;  %v1225_v41 = vshll.u32 %v3814_v34, 16  ;;  %v1232_v50 = vrot.slane %v1230_v43, 1  ;;  %v1235_v51 = vrot.slane %v1233_v44, 2  ;;  %v370_v10 = vld [vmem:[%s3853_s29] sm:$0xf] }
  0x27   : > { %v460_v38 = vrot.slane %v458_v32, 1  ;;  %v1239_v52 = vshrl.u32 %v3819_v37, 16  ;;  %v1242_v56 = vshll.u32 %v3819_v37, 16  ;;  %v469_v60 = vor.u32 %v467_v45, %v465_v39  ;;  %375 = vst.msk [vmem:[#allocation2 + $0x48] sm:$0xf] %vm351_vm2, %v370_v10  ;;  %v3865_v13 = vld [vmem:[#allocation2 + $0x20] sm:$0xff]  }
  0x28   : > { %v1224_v47 = vrot.slane %v1222_v40, 1  ;;  %v1227_v48 = vrot.slane %v1225_v41, 2  ;;  %v1236_v57 = vor.u32 %v1235_v51, %v1232_v50  ;;  %v473_v61 = vrot.slane %v471_v49, 1  ;;  %v371_v11 = vld [vmem:[%s3853_s29 + $0x4] sm:$0xf]  ;;  %v3881_v28 = vld [vmem:[#allocation2 + $0x30] sm:$0xff]  }
  0x29   : > { %v461_v46 = vor.u32 %v460_v38, %v456_v31  ;;  %v1241_v59 = vrot.slane %v1239_v52, 1  ;;  %v1244_v62 = vrot.slane %v1242_v56, 2  ;;  %v1248_v4 = vshrl.u32 %v3833_v53, 16  ;;  %v372_v12 = vld [vmem:[%s3853_s29 + $0x8] sm:$0xf]  ;;  %v3901_v51 = vld [vmem:[#allocation2 + $0x30] sm:$0xff]  }
  0x2a   : > { %v1228_v55 = vor.u32 %v1227_v48, %v1224_v47  ;;  %v1251_v5 = vshll.u32 %v3833_v53, 16  ;;  %v474_v6 = vsel %vm454_vm3, %v469_v60, %v473_v61  ;;  %v475_v7 = vshrl.u32 %v3816_v35, 16  ;;  %376 = vst.msk [vmem:[#allocation2 + $0x4c] sm:$0xf] %vm351_vm2, %v371_v11  ;;  %377 = vst.msk [vmem:[#allocation2 + $0x50] sm:$0xf] %vm351_vm2, %v372_v12 }
  0x2b   : > { %v466_v54 = vsel %vm454_vm3, %v461_v46, %v465_v39  ;;  %v1245_v1 = vor.u32 %v1244_v62, %v1241_v59  ;;  %v479_v8 = vshll.u32 %v3841_v63, 16  ;;  %v1250_v15 = vrot.slane %v1248_v4, 1  ;;  %v3885_v38 = vld [vmem:[#allocation2 + $0x28] sm:$0xff]   ;;  %s2681_s26 = sshll.u32 %s4501_s19, 3 }
  0x2c   : > { %2907 = vmatmul.mubr.msk.bf16.vlgmr.msra.gmra.mrb[0].mxu1 %vm531_vm4, %v466_v54  ;;  %v1237_v0 = vsel %vm1220_vm5, %v1228_v55, %v1236_v57  ;;  %v1253_v16 = vrot.slane %v1251_v5, 2  ;;  %v477_v17 = vor.u32 %v475_v7, %v473_v61  ;;  %v487_v19 = vshll.u32 %v3865_v13, 16  ;;  %s4404_s27 = sadd.s32 %s2681_s26, %s4507_s6 }
  0x2d   : > { %2910 = vmatprep.mubr.msk.bf16.mxu1 %vm3655_vm1, %v3654_v2  ;;  %2943 = vmatpush3.bf16.msra.mxu1 %v687_v36  ;;  %v1246_v14 = vsel %vm1220_vm5, %v1236_v57, %v1245_v1  ;;  %v481_v18 = vrot.slane %v479_v8, 1  ;;  %v1257_v21 = vshrl.u32 %v3858_v9, 16  ;;  %v1260_v22 = vshll.u32 %v3858_v9, 16  ;;  %v1463_v57 = vld [vmem:[#allocation2 + $0x8] sm:$0xc]  ;;  %s2682_s19 = sshll.u32 %s4404_s27, 3 }
  0x2e   : > { %2980 = vmatprep.subr.bf16.mxu1 %v3654_v2  ;;  %3059 = vmatmul.mubr.msk.bf16.vlgmr.msra.gmra.mrb[0].mxu0 %vm531_vm4, %v1237_v0  ;;  %v1254_v20 = vor.u32 %v1253_v16, %v1250_v15  ;;  %v483_v24 = vshrl.u32 %v3841_v63, 16  ;;  %v489_v31 = vrot.slane %v487_v19, 1  ;;  %v1266_v41 = vshrl.u32 %v3881_v28, 16  ;;  %v3919_v0 = vld [vmem:[#allocation2 + $0x38] sm:$0xff]   ;;  %v374_v8 = vld [vmem:[%s3853_s29 + $0x10] sm:$0x3] }
  0x2f   : > { %3095 = vmatpush3.bf16.msra.mxu0 %v1517_v58  ;;  %3062 = vmatprep.mubr.msk.bf16.mxu0 %vm3655_vm1, %v3654_v2  ;;  %v482_v23 = vsel %vm454_vm3, %v477_v17, %v481_v18  ;;  %v1259_v33 = vrot.slane %v1257_v21, 1  ;;  %v1262_v36 = vrot.slane %v1260_v22, 2  ;;  %v1269_v42 = vshll.u32 %v3881_v28, 16  ;;  %v373_v58 = vld [vmem:[%s3853_s29 + $0xc] sm:$0xf]  ;;  %v3937_v15 = vld [vmem:[#allocation2 + $0x40] sm:$0xff]   ;;  %s4416_s29 = scalar_lea.vmem %s4489_s5, %s2682_s19 }
  0x30   : > { %3132 = vmatprep.subr.bf16.mxu0 %v3654_v2  ;;  %v1255_v32 = vsel %vm1220_vm5, %v1245_v1, %v1254_v20  ;;  %v485_v39 = vor.u32 %v483_v24, %v481_v18  ;;  %v491_v44 = vshrl.u32 %v3865_v13, 16  ;;  %v495_v45 = vshll.u32 %v3885_v38, 16  ;;  %378 = vst.msk [vmem:[#allocation2 + $0x54] sm:$0xf] %vm351_vm2, %v373_v58 }
  0x31   : > { %v1263_v40 = vor.u32 %v1262_v36, %v1259_v33  ;;  %v1268_v47 = vrot.slane %v1266_v41, 1  ;;  %v1271_v48 = vrot.slane %v1269_v42, 2  ;;  %v499_v55 = vshrl.u32 %v3885_v38, 16  ;;  %380 = vst.msk [vmem:[#allocation2 + $0x58] sm:$0x3] %vm379_vm7, %v374_v8 }
  0x32   : > { %v490_v43 = vsel %vm454_vm3, %v485_v39, %v489_v31  ;;  %v493_v49 = vor.u32 %v491_v44, %v489_v31  ;;  %v497_v50 = vrot.slane %v495_v45, 1  ;;  %v503_v56 = vshll.u32 %v3901_v51, 16  ;;  %v2712_v44 = vld [vmem:[%s4486_s2 + $0x4] sm:$0x3]  ;;  %v1214_v58 = vld [vmem:[#allocation2 + $0x50] sm:$0x3] }
  0x33   : > { %v1264_v46 = vsel %vm1220_vm5, %v1254_v20, %v1263_v40  ;;  %v3906_v52 = vor.u32 %v1271_v48, %v1268_v47  ;;  %v2755_v60 = vcombine.low %v1463_v57, %v3802_v29  ;;  %v1471_v4 = vrot.slane %v3804_v30, 2  ;;  %v2765_v29 = vld [vmem:[%s4486_s2 + $0xc] sm:$0x3]  ;;  %v2785_v8 = vld [vmem:[%s4486_s2 + $0xe] sm:$0x3] }
  0x34   : > { %2911 = vmatmul.mubr.msk.bf16.gmra.mrb[4].mxu1 %vm531_vm4, %v474_v6  ;;  %v498_v54 = vsel %vm454_vm3, %v493_v49, %v497_v50  ;;  %v501_v61 = vor.u32 %v499_v55, %v497_v50  ;;  %v505_v62 = vrot.slane %v503_v56, 1  ;;  %v507_v6 = vshrl.u32 %v3901_v51, 16  ;;  %v3993_v50 = vld [vmem:[#allocation2 + $0x40] sm:$0xff]   ;;  %v4004_v55 = vld [vmem:[#allocation2 + $0x48] sm:$0xff]  }
  0x35   : > { %2914 = vmatprep.mubr.msk.bf16.mxu1 %vm3655_vm1, %v3654_v2  ;;  %v1273_v59 = vsel %vm1220_vm5, %v1263_v40, %v3906_v52  ;;  %v1470_v1 = vrot.slane %v2755_v60, 2  ;;  %v511_v7 = vshll.u32 %v3919_v0, 16  ;;  %v1758_v11 = vsel %vm559_vm0, %v2765_v29, 0  ;;  %v4034_v29 = vld [vmem:[#allocation2 + $0x18] sm:$0xff]  }
  0x36   : > { %3063 = vmatmul.mubr.msk.bf16.gmra.mrb[4].mxu0 %vm531_vm4, %v1246_v14  ;;  %v506_v5 = vsel %vm454_vm3, %v501_v61, %v505_v62  ;;  %v509_v12 = vor.u32 %v507_v6, %v505_v62  ;;  %v1473_v16 = vrot.slane %v3819_v37, 2  ;;  %v515_v18 = vshrl.u32 %v3919_v0, 16  ;;  %v1642_v62 = vld [vmem:[#allocation2 + $0x10] sm:$0xc] }
  0x37   : > { %3066 = vmatprep.mubr.msk.bf16.mxu0 %vm3655_vm1, %v3654_v2  ;;  %v1472_v10 = vsel %vm1469_vm6, %v1470_v1, %v1471_v4  ;;  %v513_v14 = vrot.slane %v511_v7, 1  ;;  %v519_v19 = vshll.u32 %v3937_v15, 16  ;;  %v1475_v24 = vrot.slane %v3833_v53, 2  ;;  %v4026_v1 = vld [vmem:[#allocation2 + $0x14] sm:$0xf] }
  0x38   : > { %v1474_v20 = vsel %vm1469_vm6, %v1471_v4, %v1473_v16  ;;  %v1477_v41 = vrot.slane %v3858_v9, 2  ;;  %v1479_v45 = vrot.slane %v3881_v28, 2  ;;  %v848_v47 = vsel %vm559_vm0, %v2712_v44, 0 }
  0x39   : > { %v514_v17 = vsel %vm454_vm3, %v509_v12, %v513_v14  ;;  %v517_v21 = vor.u32 %v515_v18, %v513_v14  ;;  %v521_v22 = vrot.slane %v519_v19, 1  ;;  %v1476_v36 = vsel %vm1469_vm6, %v1473_v16, %v1475_v24 }
  0x3a   : > { %v1480_v48 = vsel %vm1469_vm6, %v1477_v41, %v1479_v45  ;;  %v1485_v57 = vrot.slane %v4004_v55, 2  ;;  %v4018_v60 = vcombine.low %v1214_v58, %v1214_v58  ;;  %v1712_v7 = vrot.slane %v4034_v29, 2 }
  0x3b   : > { %v522_v31 = vsel %vm454_vm3, %v517_v21, %v521_v22  ;;  %v2007_v12 = vsel %vm559_vm0, %v2785_v8, 0  ;;  %v794_v21 = vld [vmem:[#allocation2] sm:$0xe]  ;;  %v1902_v8 = vshll.u32 %v4034_v29, 16 }
  0x3c   : > { %2915 = vmatmul.mubr.msk.bf16.gmra.mrb[8].mxu1 %vm531_vm4, %v482_v23  ;;  %v3951_v23 = vld [vmem:[#allocation2 + $0x48] ss:$0 sps:$4 sm:$0x11]   ;;  %v1487_v61 = vrot.slane %v4018_v60, 2 }
  0x3d   : > { %2918 = vmatprep.mubr.msk.bf16.mxu1 %vm3655_vm1, %v3654_v2  ;;  %v527_v33 = vshll.u32 %v3951_v23, 16 }
  0x3e   : > { %3067 = vmatmul.mubr.msk.bf16.gmra.mrb[8].mxu0 %vm531_vm4, %v1255_v32  ;;  %v523_v32 = vshrl.u32 %v3937_v15, 16  ;;  %v1488_v4 = vsel %vm1469_vm6, %v1485_v57, %v1487_v61 }
  0x3f   : > { %3070 = vmatprep.mubr.msk.bf16.mxu0 %vm3655_vm1, %v3654_v2  ;;  %v529_v40 = vrot.slane %v527_v33, 1 }
  0x40   : > { %v525_v39 = vor.u32 %v523_v32, %v521_v22  ;;  %v4085_v32 = vld [vmem:[#allocation2 + $0x38] sm:$0xff]  }
  0x42   : > { %v530_v42 = vsel %vm454_vm3, %v525_v39, %v529_v40  ;;  %v1720_v39 = vrot.slane %v4085_v32, 2 }
  0x44   : > { %2919 = vmatmul.mubr.msk.bf16.gmra.mrb[12].mxu1 %vm531_vm4, %v490_v43  ;;  %v1478_v43 = vsel %vm1469_vm6, %v1475_v24, %v1477_v41  ;;  %v2713_v24 = vcombine.low %v794_v21, %v3795_v25  ;;  %v2723_v25 = vld [vmem:[%s4486_s2 + $0x6] sm:$0x3] }
  0x45   : > { %2922 = vmatprep.mubr.msk.bf16.mxu1 %vm3655_vm1, %v3654_v2  ;;  %v1089_v41 = vsel %vm559_vm0, %v2723_v25, 0 }
  0x46   : > { %3071 = vmatmul.mubr.msk.bf16.gmra.mrb[12].mxu0 %vm531_vm4, %v1264_v46  ;;  %v3980_v46 = vld [vmem:[#allocation2 + $0x38] sm:$0xff]   ;;  %v801_v33 = vrot.slane %v2713_v24, 1 }
  0x47   : > { %3074 = vmatprep.mubr.msk.bf16.mxu0 %vm3655_vm1, %v3654_v2  ;;  %v1481_v49 = vrot.slane %v3980_v46, 2 }
  0x4c   : > { %2923 = vmatmul.mubr.msk.bf16.gmra.mrb[16].mxu1 %vm531_vm4, %v498_v54  ;;  %v1483_v54 = vrot.slane %v3993_v50, 2 }
  0x4d   : > { %2926 = vmatprep.mubr.msk.bf16.mxu1 %vm3655_vm1, %v3654_v2 }
  0x4e   : > { %3075 = vmatmul.mubr.msk.bf16.gmra.mrb[16].mxu0 %vm531_vm4, %v1273_v59  ;;  %v1484_v56 = vsel %vm1469_vm6, %v1481_v49, %v1483_v54  ;;  %v1486_v59 = vsel %vm1469_vm6, %v1483_v54, %v1485_v57 }
  0x4f   : > { %3096 = vmatprep.mubr.msk.bf16.mxu0 %vm3655_vm1, %v3654_v2 }
  0x54   : > { %2927 = vmatmul.mubr.msk.bf16.gmra.mrb[20].mxu1 %vm531_vm4, %v506_v5  ;;  %v4032_v5 = vcombine.low %v1642_v62, %v4026_v1  ;;  %v810_v62 = vrot.slane %v3885_v38, 1 }
  0x55   : > { %2930 = vmatprep.mubr.msk.bf16.mxu1 %vm3655_vm1, %v3654_v2 }
  0x56   : > { %3097 = vmatmul.mubr.msk.bf16.vlgmr.msra.gmra.mrb[0].mxu0 %vm531_vm4, %v1472_v10  ;;  %v1711_v6 = vrot.slane %v4032_v5, 2 }
  0x57   : > { %3133 = vmatpush3.bf16.msra.mxu0 %v1758_v11  ;;  %3100 = vmatprep.mubr.msk.bf16.mxu0 %vm3655_vm1, %v3654_v2  ;;  %v4049_v11 = vld [vmem:[#allocation2 + $0x20] sm:$0xff]  }
  0x58   : > { %3170 = vmatprep.subr.bf16.mxu0 %v3654_v2  ;;  %v1713_v10 = vsel %vm1469_vm6, %v1711_v6, %v1712_v7  ;;  %v1714_v14 = vrot.slane %v4049_v11, 2  ;;  %v1894_v6 = vshll.u32 %v4032_v5, 16  ;;  %v1911_v24 = vshll.u32 %v4049_v11, 16 }
  0x5a   : > { %v1715_v16 = vsel %vm1469_vm6, %v1712_v7, %v1714_v14  ;;  %v1899_v7 = vshrl.u32 %v4034_v29, 16  ;;  %v1913_v25 = vrot.slane %v1911_v24, 3 }
  0x5c   : > { %2931 = vmatmul.mubr.msk.bf16.gmra.mrb[24].mxu1 %vm531_vm4, %v514_v17  ;;  %v4062_v17 = vld [vmem:[#allocation2 + $0x28] sm:$0xff]  }
  0x5d   : > { %2934 = vmatprep.mubr.msk.bf16.mxu1 %vm3655_vm1, %v3654_v2  ;;  %v1716_v18 = vrot.slane %v4062_v17, 2 }
  0x5e   : > { %3101 = vmatmul.mubr.msk.bf16.gmra.mrb[4].mxu0 %vm531_vm4, %v1474_v20  ;;  %v4073_v20 = vld [vmem:[#allocation2 + $0x30] sm:$0xff]  }
  0x5f   : > { %3104 = vmatprep.mubr.msk.bf16.mxu0 %vm3655_vm1, %v3654_v2  ;;  %v1717_v19 = vsel %vm1469_vm6, %v1714_v14, %v1716_v18  ;;  %v1718_v22 = vrot.slane %v4073_v20, 2  ;;  %v1896_v14 = vrot.slane %v1894_v6, 3 }
  0x64   : > { %2935 = vmatmul.mubr.msk.bf16.gmra.mrb[28].mxu1 %vm531_vm4, %v522_v31  ;;  %v1719_v31 = vsel %vm1469_vm6, %v1716_v18, %v1718_v22  ;;  %v1904_v18 = vrot.slane %v1902_v8, 3 }
  0x65   : > { %2938 = vmatprep.mubr.msk.bf16.mxu1 %vm3655_vm1, %v3654_v2 }
  0x66   : > { %3105 = vmatmul.mubr.msk.bf16.gmra.mrb[8].mxu0 %vm531_vm4, %v1476_v36  ;;  %v802_v36 = vrot.slane %v3800_v27, 1 }
  0x67   : > { %3108 = vmatprep.mubr.msk.bf16.mxu0 %vm3655_vm1, %v3654_v2 }
  0x68   : > { %v803_v40 = vsel %vm800_vm8, %v801_v33, %v802_v36  ;;  %v2796_v33 = vld [vmem:[%s4486_s2 + $0x10] sm:$0x3] }
  0x6c   : > { %2939 = vmatmul.mubr.msk.bf16.gmra.mrb[32].mxu1 %vm531_vm4, %v530_v42  ;;  %v4101_v42 = vld [vmem:[#allocation2 + $0x40] sm:$0xff]  }
  0x6d   : > { %2944 = vmatprep.mubr.msk.bf16.mxu1 %vm3655_vm1, %v3654_v2  ;;  %v1722_v44 = vrot.slane %v4101_v42, 2 }
  0x6e   : > { %3109 = vmatmul.mubr.msk.bf16.gmra.mrb[12].mxu0 %vm531_vm4, %v1478_v43  ;;  %v804_v43 = vrot.slane %v3816_v35, 1 }
  0x6f   : > { %3112 = vmatprep.mubr.msk.bf16.mxu0 %vm3655_vm1, %v3654_v2 }
  0x74   : > { %2945 = vmatmul.mubr.msk.bf16.vlgmr.msra.gmra.mrb[0].mxu1 %vm531_vm4, %v3798_v26  ;;  %v1482_v26 = vsel %vm1469_vm6, %v1479_v45, %v1481_v49  ;;  %v805_v45 = vsel %vm800_vm8, %v802_v36, %v804_v43 }
  0x75   : > { %2948 = vmatprep.mubr.msk.bf16.mxu1 %vm3655_vm1, %v3654_v2  ;;  %2981 = vmatpush3.bf16.msra.mxu1 %v848_v47  ;;  %v1723_v47 = vsel %vm1469_vm6, %v1720_v39, %v1722_v44 }
  0x76   : > { %3018 = vmatprep.subr.bf16.mxu1 %v3654_v2  ;;  %3113 = vmatmul.mubr.msk.bf16.gmra.mrb[16].mxu0 %vm531_vm4, %v1480_v48  ;;  %v4114_v48 = vld [vmem:[#allocation2 + $0x48] sm:$0xff]  }
  0x77   : > { %3116 = vmatprep.mubr.msk.bf16.mxu0 %vm3655_vm1, %v3654_v2  ;;  %v1724_v49 = vrot.slane %v4114_v48, 2 }
  0x79   : > { %v1725_v54 = vsel %vm1469_vm6, %v1722_v44, %v1724_v49 }
  0x7c   : > { %2949 = vmatmul.mubr.msk.bf16.gmra.mrb[4].mxu1 %vm531_vm4, %v3800_v27  ;;  %v1721_v27 = vsel %vm1469_vm6, %v1718_v22, %v1720_v39  ;;  %v1908_v22 = vshrl.u32 %v4049_v11, 16  ;;  %v2186_v39 = vsel %vm559_vm0, %v2796_v33, 0 }
  0x7d   : > { %2952 = vmatprep.mubr.msk.bf16.mxu1 %vm3655_vm1, %v3654_v2 }
  0x7e   : > { %3117 = vmatmul.mubr.msk.bf16.gmra.mrb[20].mxu0 %vm531_vm4, %v1482_v26  ;;  %v1910_v36 = vrot.slane %v1908_v22, 2  ;;  %v1956_v22 = vshll.u32 %v4114_v48, 16 }
  0x7f   : > { %3120 = vmatprep.mubr.msk.bf16.mxu0 %vm3655_vm1, %v3654_v2 }
  0x84   : > { %2953 = vmatmul.mubr.msk.bf16.gmra.mrb[8].mxu1 %vm531_vm4, %v3816_v35  ;;  %v806_v35 = vrot.slane %v3841_v63, 1 }
  0x85   : > { %2956 = vmatprep.mubr.msk.bf16.mxu1 %vm3655_vm1, %v3654_v2 }
  0x86   : > { %3121 = vmatmul.mubr.msk.bf16.gmra.mrb[24].mxu0 %vm531_vm4, %v1484_v56  ;;  %v807_v26 = vsel %vm800_vm8, %v804_v43, %v806_v35  ;;  %v4126_v56 = vld [vmem:[#allocation2 + $0x50] sm:$0xff]   ;;  %v1920_v43 = vshll.u32 %v4062_v17, 16 }
  0x87   : > { %3124 = vmatprep.mubr.msk.bf16.mxu0 %vm3655_vm1, %v3654_v2  ;;  %v1726_v57 = vrot.slane %v4126_v56, 2 }
  0x89   : > { %v1727_v61 = vsel %vm1469_vm6, %v1724_v49, %v1726_v57 }
  0x8c   : > { %2957 = vmatmul.mubr.msk.bf16.gmra.mrb[12].mxu1 %vm531_vm4, %v3841_v63  ;;  %v808_v63 = vrot.slane %v3865_v13, 1 }
  0x8d   : > { %2960 = vmatprep.mubr.msk.bf16.mxu1 %vm3655_vm1, %v3654_v2 }
  0x8e   : > { %3125 = vmatmul.mubr.msk.bf16.gmra.mrb[28].mxu0 %vm531_vm4, %v1486_v59  ;;  %v809_v58 = vsel %vm800_vm8, %v806_v35, %v808_v63  ;;  %v3593_v59 = vld [vmem:[#allocation2 + $0x58] ss:$0 sps:$4 sm:$0x33]   ;;  %v1922_v35 = vrot.slane %v1920_v43, 3 }
  0x8f   : > { %3128 = vmatprep.mubr.msk.bf16.mxu0 %vm3655_vm1, %v3654_v2  ;;  %v4234_v43 = vld [vmem:[#allocation2 + $0x58] ss:$0 sps:$4 sm:$0x77]  }
  0x94   : > { %2961 = vmatmul.mubr.msk.bf16.gmra.mrb[16].mxu1 %vm531_vm4, %v3865_v13  ;;  %v1728_v13 = vrot.slane %v3593_v59, 2 }
  0x95   : > { %2964 = vmatprep.mubr.msk.bf16.mxu1 %vm3655_vm1, %v3654_v2 }
  0x96   : > { %3129 = vmatmul.mubr.msk.bf16.gmra.mrb[32].mxu0 %vm531_vm4, %v1488_v4  ;;  %v1891_v4 = vshrl.u32 %v4032_v5, 16 }
  0x97   : > { %3134 = vmatprep.mubr.msk.bf16.mxu0 %vm3655_vm1, %v3654_v2 }
  0x9c   : > { %2965 = vmatmul.mubr.msk.bf16.gmra.mrb[20].mxu1 %vm531_vm4, %v3885_v38  ;;  %v1893_v38 = vrot.slane %v1891_v4, 2 }
  0x9d   : > { %2968 = vmatprep.mubr.msk.bf16.mxu1 %vm3655_vm1, %v3654_v2 }
  0x9e   : > { %3135 = vmatmul.mubr.msk.bf16.vlgmr.msra.gmra.mrb[0].mxu0 %vm531_vm4, %v1713_v10  ;;  %v811_v10 = vsel %vm800_vm8, %v808_v63, %v810_v62  ;;  %v1897_v5 = vor.u32 %v1896_v14, %v1893_v38  ;;  %v1944_v38 = vshrl.u32 %v4101_v42, 16  ;;  %v1947_v14 = vshll.u32 %v4101_v42, 16 }
  0x9f   : > { %3171 = vmatpush3.bf16.msra.mxu0 %v2007_v12  ;;  %3138 = vmatprep.mubr.msk.bf16.mxu0 %vm3655_vm1, %v3654_v2  ;;  %v1729_v12 = vsel %vm1469_vm6, %v1726_v57, %v1728_v13  ;;  %v1938_v13 = vshll.u32 %v4085_v32, 16 }
  0xa0   : > { %3208 = vmatprep.subr.bf16.mxu0 %v3654_v2 }
  0xa1   : > { %v1940_v8 = vrot.slane %v1938_v13, 3  ;;  %v1055_v13 = vrot.slane %v3993_v50, 1 }
  0xa4   : > { %2969 = vmatmul.mubr.msk.bf16.gmra.mrb[24].mxu1 %vm531_vm4, %v3901_v51 }
  0xa5   : > { %2972 = vmatprep.mubr.msk.bf16.mxu1 %vm3655_vm1, %v3654_v2 }
  0xa6   : > { %3139 = vmatmul.mubr.msk.bf16.gmra.mrb[4].mxu0 %vm531_vm4, %v1715_v16  ;;  %v1901_v16 = vrot.slane %v1899_v7, 2 }
  0xa7   : > { %3142 = vmatprep.mubr.msk.bf16.mxu0 %vm3655_vm1, %v3654_v2 }
  0xa8   : > { %v1905_v21 = vor.u32 %v1904_v18, %v1901_v16 }
  0xac   : > { %2973 = vmatmul.mubr.msk.bf16.gmra.mrb[28].mxu1 %vm531_vm4, %v3919_v0 }
  0xad   : > { %2976 = vmatprep.mubr.msk.bf16.mxu1 %vm3655_vm1, %v3654_v2 }
  0xae   : > { %3143 = vmatmul.mubr.msk.bf16.gmra.mrb[8].mxu0 %vm531_vm4, %v1717_v19  ;;  %v812_v19 = vrot.slane %v3901_v51, 1  ;;  %v1906_v51 = vsel %vm1889_vm9, %v1897_v5, %v1905_v21 }
  0xaf   : > { %3146 = vmatprep.mubr.msk.bf16.mxu0 %vm3655_vm1, %v3654_v2 }
  0xb4   : > { %2977 = vmatmul.mubr.msk.bf16.gmra.mrb[32].mxu1 %vm531_vm4, %v3937_v15 }
  0xb5   : > { %2982 = vmatprep.mubr.msk.bf16.mxu1 %vm3655_vm1, %v3654_v2 }
  0xb6   : > { %3147 = vmatmul.mubr.msk.bf16.gmra.mrb[12].mxu0 %vm531_vm4, %v1719_v31  ;;  %v813_v31 = vsel %vm800_vm8, %v810_v62, %v812_v19  ;;  %v1935_v62 = vshrl.u32 %v4085_v32, 16 }
  0xb7   : > { %3150 = vmatprep.mubr.msk.bf16.mxu0 %vm3655_vm1, %v3654_v2 }
  0xb8   : > { %v1937_v7 = vrot.slane %v1935_v62, 2 }
  0xbc   : > { %2983 = vmatmul.mubr.msk.bf16.vlgmr.msra.gmra.mrb[0].mxu1 %vm531_vm4, %v803_v40  ;;  %v814_v40 = vrot.slane %v3919_v0, 1  ;;  %v816_v0 = vrot.slane %v3937_v15, 1  ;;  %v818_v15 = vrot.slane %v3951_v23, 1  ;;  %v1042_v23 = vrot.slane %v3814_v34, 1 }
  0xbd   : > { %2986 = vmatprep.mubr.msk.bf16.mxu1 %vm3655_vm1, %v3654_v2  ;;  %3019 = vmatpush3.bf16.msra.mxu1 %v1089_v41  ;;  %v1914_v41 = vor.u32 %v1913_v25, %v1910_v36  ;;  %v1949_v34 = vrot.slane %v1947_v14, 3  ;;  %v1962_v36 = vshrl.u32 %v4126_v56, 16  ;;  %v1965_v25 = vshll.u32 %v4126_v56, 16 }
  0xbe   : > { %3246 = vmatprep.subr.bf16.mxu1 %v3654_v2  ;;  %3151 = vmatmul.mubr.msk.bf16.gmra.mrb[16].mxu0 %vm531_vm4, %v1721_v27  ;;  %v1917_v27 = vshrl.u32 %v4062_v17, 16  ;;  %v815_v44 = vsel %vm800_vm8, %v812_v19, %v814_v40  ;;  %v817_v63 = vsel %vm800_vm8, %v814_v40, %v816_v0  ;;  %v819_v4 = vsel %vm800_vm8, %v816_v0, %v818_v15 }
  0xbf   : > { %3154 = vmatprep.mubr.msk.bf16.mxu0 %vm3655_vm1, %v3654_v2  ;;  %v1946_v19 = vrot.slane %v1944_v38, 2  ;;  %v1275_v38 = vshrl.u32 %v3980_v46, 16  ;;  %v1278_v14 = vshll.u32 %v3980_v46, 16 }
  0xc1   : > { %v1950_v5 = vor.u32 %v1949_v34, %v1946_v19  ;;  %v1280_v19 = vrot.slane %v1278_v14, 2 }
  0xc4   : > { %2987 = vmatmul.mubr.msk.bf16.gmra.mrb[4].mxu1 %vm531_vm4, %v805_v45  ;;  %v1915_v45 = vsel %vm1889_vm9, %v1905_v21, %v1914_v41  ;;  %v1953_v21 = vshrl.u32 %v4114_v48, 16 }
  0xc5   : > { %2990 = vmatprep.mubr.msk.bf16.mxu1 %vm3655_vm1, %v3654_v2 }
  0xc6   : > { %3155 = vmatmul.mubr.msk.bf16.gmra.mrb[20].mxu0 %vm531_vm4, %v1723_v47  ;;  %v1919_v47 = vrot.slane %v1917_v27, 2  ;;  %v1955_v33 = vrot.slane %v1953_v21, 2  ;;  %v1967_v27 = vrot.slane %v1965_v25, 3  ;;  %v1287_v21 = vshll.u32 %v3993_v50, 16 }
  0xc7   : > { %3158 = vmatprep.mubr.msk.bf16.mxu0 %vm3655_vm1, %v3654_v2 }
  0xc8   : > { %v1923_v49 = vor.u32 %v1922_v35, %v1919_v47  ;;  %v1974_v47 = vshll.u32 %v4234_v43, 16 }
  0xca   : > { %v1924_v57 = vsel %vm1889_vm9, %v1914_v41, %v1923_v49  ;;  %v1964_v41 = vrot.slane %v1962_v36, 2 }
  0xcc   : > { %2991 = vmatmul.mubr.msk.bf16.gmra.mrb[8].mxu1 %vm531_vm4, %v807_v26  ;;  %v1926_v26 = vshrl.u32 %v4073_v20, 16 }
  0xcd   : > { %2994 = vmatprep.mubr.msk.bf16.mxu1 %vm3655_vm1, %v3654_v2 }
  0xce   : > { %3159 = vmatmul.mubr.msk.bf16.gmra.mrb[24].mxu0 %vm531_vm4, %v1725_v54  ;;  %v1929_v54 = vshll.u32 %v4073_v20, 16 }
  0xcf   : > { %3162 = vmatprep.mubr.msk.bf16.mxu0 %vm3655_vm1, %v3654_v2 }
  0xd0   : > { %v1931_v59 = vrot.slane %v1929_v54, 3 }
  0xd4   : > { %2995 = vmatmul.mubr.msk.bf16.gmra.mrb[12].mxu1 %vm531_vm4, %v809_v58  ;;  %v1928_v58 = vrot.slane %v1926_v26, 2  ;;  %v1976_v26 = vrot.slane %v1974_v47, 3 }
  0xd5   : > { %2998 = vmatprep.mubr.msk.bf16.mxu1 %vm3655_vm1, %v3654_v2 }
  0xd6   : > { %3163 = vmatmul.mubr.msk.bf16.gmra.mrb[28].mxu0 %vm531_vm4, %v1727_v61  ;;  %v1932_v61 = vor.u32 %v1931_v59, %v1928_v58 }
  0xd7   : > { %3166 = vmatprep.mubr.msk.bf16.mxu0 %vm3655_vm1, %v3654_v2 }
  0xd8   : > { %v1933_v6 = vsel %vm1889_vm9, %v1923_v49, %v1932_v61 }
  0xdc   : > { %2999 = vmatmul.mubr.msk.bf16.gmra.mrb[16].mxu1 %vm531_vm4, %v811_v10  ;;  %v1043_v10 = vrot.slane %v3804_v30, 1  ;;  %v1045_v30 = vrot.slane %v3819_v37, 1  ;;  %v1958_v37 = vrot.slane %v1956_v22, 3 }
  0xdd   : > { %3002 = vmatprep.mubr.msk.bf16.mxu1 %vm3655_vm1, %v3654_v2 }
  0xde   : > { %3167 = vmatmul.mubr.msk.bf16.gmra.mrb[32].mxu0 %vm531_vm4, %v1729_v12  ;;  %v1941_v12 = vor.u32 %v1940_v8, %v1937_v7  ;;  %v1044_v16 = vsel %vm800_vm8, %v1042_v23, %v1043_v10  ;;  %v1046_v24 = vsel %vm800_vm8, %v1043_v10, %v1045_v30  ;;  %v1057_v7 = vrot.slane %v4004_v55, 1  ;;  %v3595_v23 = vld [vmem:[#allocation2 + $0x50] ss:$0 sps:$4 sm:$0x11]  }
  0xdf   : > { %3172 = vmatprep.mubr.msk.bf16.mxu0 %vm3655_vm1, %v3654_v2  ;;  %v2144_v8 = vrot.slane %v4062_v17, 3  ;;  %v2146_v17 = vrot.slane %v4073_v20, 3  ;;  %v2148_v20 = vrot.slane %v4085_v32, 3 }
  0xe0   : > { %v1942_v18 = vsel %vm1889_vm9, %v1932_v61, %v1941_v12  ;;  %v2140_v61 = vrot.slane %v4034_v29, 3 }
  0xe1   : > { %v2147_v34 = vsel %vm2138_vm10, %v2144_v8, %v2146_v17 }
  0xe4   : > { %3003 = vmatmul.mubr.msk.bf16.gmra.mrb[20].mxu1 %vm531_vm4, %v813_v31  ;;  %v1951_v31 = vsel %vm1889_vm9, %v1941_v12, %v1950_v5  ;;  %v1059_v12 = vrot.slane %v3595_v23, 1  ;;  %v3605_v23 = vld [vmem:[#allocation2 + $0xc] sm:$0xf] }
  0xe5   : > { %3006 = vmatprep.mubr.msk.bf16.mxu1 %vm3655_vm1, %v3654_v2 }
  0xe6   : > { %3173 = vmatmul.mubr.msk.bf16.vlgmr.msra.gmra.mrb[0].mxu0 %vm531_vm4, %v1906_v51  ;;  %v1959_v51 = vor.u32 %v1958_v37, %v1955_v33  ;;  %v2149_v33 = vsel %vm2138_vm10, %v2146_v17, %v2148_v20  ;;  %v4362_v17 = vld [vmem:[%s4487_s3] ss:$0 sm:$0xff] }
  0xe7   : > { %3209 = vmatpush3.bf16.msra.mxu0 %v2186_v39  ;;  %3176 = vmatprep.mubr.msk.bf16.mxu0 %vm3655_vm1, %v3654_v2 }
  0xe8   : > { %v1960_v40 = vsel %vm1889_vm9, %v1950_v5, %v1959_v51  ;;  %v1284_v5 = vshrl.u32 %v3993_v50, 16 }
  0xec   : > { %3007 = vmatmul.mubr.msk.bf16.gmra.mrb[24].mxu1 %vm531_vm4, %v815_v44  ;;  %v1968_v44 = vor.u32 %v1967_v27, %v1964_v41  ;;  %v1305_v41 = vshll.u32 %v4018_v60, 16 }
  0xed   : > { %3010 = vmatprep.mubr.msk.bf16.mxu1 %vm3655_vm1, %v3654_v2 }
  0xee   : > { %3177 = vmatmul.mubr.msk.bf16.gmra.mrb[4].mxu0 %vm531_vm4, %v1915_v45  ;;  %v1971_v45 = vshrl.u32 %v4234_v43, 16  ;;  %v1969_v0 = vsel %vm1889_vm9, %v1959_v51, %v1968_v44  ;;  %v1296_v51 = vshll.u32 %v4004_v55, 16 }
  0xef   : > { %3180 = vmatprep.mubr.msk.bf16.mxu0 %vm3655_vm1, %v3654_v2 }
  0xf0   : > { %v1973_v49 = vrot.slane %v1971_v45, 2  ;;  %v1298_v25 = vrot.slane %v1296_v51, 2 }
  0xf2   : > { %v1977_v54 = vor.u32 %v1976_v26, %v1973_v49 }
  0xf4   : > { %3011 = vmatmul.mubr.msk.bf16.gmra.mrb[28].mxu1 %vm531_vm4, %v817_v63  ;;  %v1978_v58 = vsel %vm1889_vm9, %v1968_v44, %v1977_v54  ;;  %v1307_v44 = vrot.slane %v1305_v41, 2 }
  0xf5   : > { %3014 = vmatprep.mubr.msk.bf16.mxu1 %vm3655_vm1, %v3654_v2 }
  0xf6   : > { %3181 = vmatmul.mubr.msk.bf16.gmra.mrb[8].mxu0 %vm531_vm4, %v1924_v57  ;;  %v2132_v57 = vld [vmem:[#allocation2 + $0x10] sm:$0x8] }
  0xf7   : > { %3184 = vmatprep.mubr.msk.bf16.mxu0 %vm3655_vm1, %v3654_v2  ;;  %v2797_v59 = vcombine.low %v2132_v57, %v4026_v1 }
  0xf9   : > { %v2139_v15 = vrot.slane %v2797_v59, 3 }
  0xfb   : > { %v2141_v1 = vsel %vm2138_vm10, %v2139_v15, %v2140_v61 }
  0xfc   : > { %3015 = vmatmul.mubr.msk.bf16.gmra.mrb[32].mxu1 %vm531_vm4, %v819_v4  ;;  %v2142_v4 = vrot.slane %v4049_v11, 3  ;;  %v1058_v11 = vsel %vm800_vm8, %v1055_v13, %v1057_v7 }
  0xfd   : > { %3020 = vmatprep.mubr.msk.bf16.mxu1 %vm3655_vm1, %v3654_v2 }
  0xfe   : > { %3185 = vmatmul.mubr.msk.bf16.gmra.mrb[12].mxu0 %vm531_vm4, %v1933_v6  ;;  %v2143_v6 = vsel %vm2138_vm10, %v2140_v61, %v2142_v4  ;;  %v2145_v10 = vsel %vm2138_vm10, %v2142_v4, %v2144_v8  ;;  %v3604_v8 = vld [vmem:[#allocation2 + $0x8] sm:$0xe] }
  0xff   : > { %3188 = vmatprep.mubr.msk.bf16.mxu0 %vm3655_vm1, %v3654_v2 }
 0x104   : > { %3021 = vmatmul.mubr.msk.bf16.vlgmr.msra.gmra.mrb[0].mxu1 %vm531_vm4, %v1044_v16  ;;  %v1060_v16 = vsel %vm800_vm8, %v1057_v7, %v1059_v12  ;;  %v3606_v12 = vld [vmem:[#allocation2 + $0x10] sm:$0xff]  }
 0x105   : > { %3024 = vmatprep.mubr.msk.bf16.mxu1 %vm3655_vm1, %v3654_v2  ;;  %3247 = vmatpush3.bf16.msra.mxu1 %v3729_v3  ;;  %v1047_v3 = vrot.slane %v3833_v53, 1  ;;  %v1049_v53 = vrot.slane %v3858_v9, 1  ;;  %v1051_v9 = vrot.slane %v3881_v28, 1  ;;  %v1053_v28 = vrot.slane %v3980_v46, 1 }
 0x106   : > { %3189 = vmatmul.mubr.msk.bf16.gmra.mrb[16].mxu0 %vm531_vm4, %v1942_v18  ;;  %v1277_v18 = vrot.slane %v1275_v38, 1  ;;  %v2313_v38 = vunpack.c.l.bf16 %v3606_v12 }
 0x107   : > { %3192 = vmatprep.mubr.msk.bf16.mxu0 %vm3655_vm1, %v3654_v2  ;;  %v1048_v39 = vsel %vm800_vm8, %v1045_v30, %v1047_v3  ;;  %v1050_v35 = vsel %vm800_vm8, %v1047_v3, %v1049_v53  ;;  %v1052_v63 = vsel %vm800_vm8, %v1049_v53, %v1051_v9  ;;  %v1054_v62 = vsel %vm800_vm8, %v1051_v9, %v1053_v28 }
 0x108   : > { %v1056_v29 = vsel %vm800_vm8, %v1053_v28, %v1055_v13  ;;  %v1281_v30 = vor.u32 %v1280_v19, %v1277_v18  ;;  %v1293_v3 = vshrl.u32 %v4004_v55, 16  ;;  %v1302_v55 = vshrl.u32 %v4018_v60, 16 }
 0x109   : > { %v2154_v60 = vrot.slane %v4126_v56, 3 }
 0x10a   : > { %v1282_v22 = vsel %vm1220_vm5, %v3906_v52, %v1281_v30  ;;  %v2150_v52 = vrot.slane %v4101_v42, 3  ;;  %v1295_v36 = vrot.slane %v1293_v3, 1  ;;  %v2152_v42 = vrot.slane %v4114_v48, 3 }
 0x10b   : > { %v1304_v53 = vrot.slane %v1302_v55, 1 }
 0x10c   : > { %3025 = vmatmul.mubr.msk.bf16.gmra.mrb[4].mxu1 %vm531_vm4, %v1046_v24  ;;  %v1286_v24 = vrot.slane %v1284_v5, 1  ;;  %v2153_v45 = vsel %vm2138_vm10, %v2150_v52, %v2152_v42 }
 0x10d   : > { %3028 = vmatprep.mubr.msk.bf16.mxu1 %vm3655_vm1, %v3654_v2  ;;  %v1308_v47 = vor.u32 %v1307_v44, %v1304_v53 }
 0x10e   : > { %3193 = vmatmul.mubr.msk.bf16.gmra.mrb[20].mxu0 %vm531_vm4, %v1951_v31  ;;  %v1289_v31 = vrot.slane %v1287_v21, 2  ;;  %v2403_v21 = vrot.slane %v2313_v38, 3 }
 0x10f   : > { %3196 = vmatprep.mubr.msk.bf16.mxu0 %vm3655_vm1, %v3654_v2 }
 0x110   : > { %v1290_v37 = vor.u32 %v1289_v31, %v1286_v24 }
 0x112   : > { %v1291_v32 = vsel %vm1220_vm5, %v1281_v30, %v1290_v37  ;;  %v4367_v30 = vld [vmem:[%s4488_s4] ss:$0 sm:$0xff] }
 0x114   : > { %3029 = vmatmul.mubr.msk.bf16.gmra.mrb[8].mxu1 %vm531_vm4, %v1048_v39  ;;  %v2151_v39 = vsel %vm2138_vm10, %v2148_v20, %v2150_v52  ;;  %v3607_v52 = vld [vmem:[#allocation2 + $0x18] sm:$0xff]  }
 0x115   : > { %3032 = vmatprep.mubr.msk.bf16.mxu1 %vm3655_vm1, %v3654_v2 }
 0x116   : > { %3197 = vmatmul.mubr.msk.bf16.gmra.mrb[24].mxu0 %vm531_vm4, %v1960_v40  ;;  %v1299_v40 = vor.u32 %v1298_v25, %v1295_v36 }
 0x117   : > { %3200 = vmatprep.mubr.msk.bf16.mxu0 %vm3655_vm1, %v3654_v2 }
 0x118   : > { %v1300_v27 = vsel %vm1220_vm5, %v1290_v37, %v1299_v40  ;;  %v1309_v48 = vsel %vm1220_vm5, %v1299_v40, %v1308_v47 }
 0x11c   : > { %3033 = vmatmul.mubr.msk.bf16.gmra.mrb[12].mxu1 %vm531_vm4, %v1050_v35  ;;  %v2155_v35 = vsel %vm2138_vm10, %v2152_v42, %v2154_v60 }
 0x11d   : > { %3036 = vmatprep.mubr.msk.bf16.mxu1 %vm3655_vm1, %v3654_v2 }
 0x11e   : > { %3201 = vmatmul.mubr.msk.bf16.gmra.mrb[28].mxu0 %vm531_vm4, %v1969_v0  ;;  %v2156_v0 = vrot.slane %v4234_v43, 3 }
 0x11f   : > { %3204 = vmatprep.mubr.msk.bf16.mxu0 %vm3655_vm1, %v3654_v2 }
 0x120   : > { %v2157_v49 = vsel %vm2138_vm10, %v2154_v60, %v2156_v0  ;;  %v2316_v0 = vunpack.c.h.bf16 %v3607_v52 }
 0x124   : > { %3037 = vmatmul.mubr.msk.bf16.gmra.mrb[16].mxu1 %vm531_vm4, %v1052_v63 }
 0x125   : > { %3040 = vmatprep.mubr.msk.bf16.mxu1 %vm3655_vm1, %v3654_v2 }
 0x126   : > { %3205 = vmatmul.mubr.msk.bf16.gmra.mrb[32].mxu0 %vm531_vm4, %v1978_v58 }
 0x127   : > { %3210 = vmatprep.mubr.msk.bf16.mxu0 %vm3655_vm1, %v3654_v2 }
 0x12c   : > { %3041 = vmatmul.mubr.msk.bf16.gmra.mrb[20].mxu1 %vm531_vm4, %v1054_v62 }
 0x12d   : > { %3044 = vmatprep.mubr.msk.bf16.mxu1 %vm3655_vm1, %v3654_v2 }
 0x12e   : > { %3211 = vmatmul.mubr.msk.bf16.vlgmr.msra.gmra.mrb[0].mxu0 %vm531_vm4, %v2141_v1 }
 0x12f   : > { %3214 = vmatprep.mubr.msk.bf16.mxu0 %vm3655_vm1, %v3654_v2 }
 0x134   : > { %3045 = vmatmul.mubr.msk.bf16.gmra.mrb[24].mxu1 %vm531_vm4, %v1056_v29 }
 0x135   : > { %3048 = vmatprep.mubr.msk.bf16.mxu1 %vm3655_vm1, %v3654_v2 }
 0x136   : > { %3215 = vmatmul.mubr.msk.bf16.gmra.mrb[4].mxu0 %vm531_vm4, %v2143_v6 }
 0x137   : > { %3218 = vmatprep.mubr.msk.bf16.mxu0 %vm3655_vm1, %v3654_v2 }
 0x13c   : > { %3049 = vmatmul.mubr.msk.bf16.gmra.mrb[28].mxu1 %vm531_vm4, %v1058_v11  ;;  %v2311_v11 = vunpack.c.l.bf16 %v3604_v8 }
 0x13d   : > { %3052 = vmatprep.mubr.msk.bf16.mxu1 %vm3655_vm1, %v3654_v2 }
 0x13e   : > { %3219 = vmatmul.mubr.msk.bf16.gmra.mrb[8].mxu0 %vm531_vm4, %v2145_v10  ;;  %v2312_v10 = vunpack.c.l.bf16 %v3605_v23 }
 0x13f   : > { %3222 = vmatprep.mubr.msk.bf16.mxu0 %vm3655_vm1, %v3654_v2 }
 0x140   : > { %v2401_v18 = vrot.slane %v2312_v10, 3 }
 0x142   : > { %v2404_v51 = vsel %vm2138_vm10, %v2401_v18, %v2403_v21 }
 0x144   : > { %3053 = vmatmul.mubr.msk.bf16.gmra.mrb[32].mxu1 %vm531_vm4, %v1060_v16  ;;  %v2400_v16 = vrot.slane %v2311_v11, 3 }
 0x145   : > { %3078 = vmatprep.mubr.msk.bf16.mxu1 %vm3655_vm1, %v3654_v2 }
 0x146   : > { %3223 = vmatmul.mubr.msk.bf16.gmra.mrb[12].mxu0 %vm531_vm4, %v2147_v34  ;;  %v2402_v31 = vsel %vm2138_vm10, %v2400_v16, %v2401_v18  ;;  %v3609_v18 = vld [vmem:[#allocation2 + $0x28] sm:$0xff]  }
 0x147   : > { %3226 = vmatprep.mubr.msk.bf16.mxu0 %vm3655_vm1, %v3654_v2 }
 0x14c   : > { %3079 = vmatmul.mubr.msk.bf16.vlgmr.msra.gmra.mrb[20].mxu1 %vm531_vm4, %v1282_v22 }
 0x14d   : > { %3082 = vmatprep.mubr.msk.bf16.mxu1 %vm3655_vm1, %v3654_v2 }
 0x14e   : > { %3227 = vmatmul.mubr.msk.bf16.gmra.mrb[16].mxu0 %vm531_vm4, %v2149_v33  ;;  %v2314_v33 = vunpack.c.h.bf16 %v3606_v12 }
 0x14f   : > { %3230 = vmatprep.mubr.msk.bf16.mxu0 %vm3655_vm1, %v3654_v2 }
 0x150   : > { %v2405_v40 = vrot.slane %v2314_v33, 3 }
 0x154   : > { %3083 = vmatmul.mubr.msk.bf16.gmra.mrb[24].mxu1 %vm531_vm4, %v1291_v32  ;;  %v2315_v32 = vunpack.c.l.bf16 %v3607_v52 }
 0x155   : > { %3086 = vmatprep.mubr.msk.bf16.mxu1 %vm3655_vm1, %v3654_v2 }
 0x156   : > { %3231 = vmatmul.mubr.msk.bf16.gmra.mrb[20].mxu0 %vm531_vm4, %v2151_v39  ;;  %v2407_v44 = vrot.slane %v2315_v32, 3 }
 0x157   : > { %3234 = vmatprep.mubr.msk.bf16.mxu0 %vm3655_vm1, %v3654_v2 }
 0x15c   : > { %3087 = vmatmul.mubr.msk.bf16.gmra.mrb[28].mxu1 %vm531_vm4, %v1300_v27 }
 0x15d   : > { %3090 = vmatprep.mubr.msk.bf16.mxu1 %vm3655_vm1, %v3654_v2 }
 0x15e   : > { %3235 = vmatmul.mubr.msk.bf16.gmra.mrb[24].mxu0 %vm531_vm4, %v2153_v45 }
 0x15f   : > { %3238 = vmatprep.mubr.msk.bf16.mxu0 %vm3655_vm1, %v3654_v2 }
 0x164   : > { %3091 = vmatmul.mubr.msk.bf16.gmra.mrb[32].mxu1 %vm531_vm4, %v1309_v48 }
 0x166   : > { %3239 = vmatmul.mubr.msk.bf16.gmra.mrb[28].mxu0 %vm531_vm4, %v2155_v35  ;;  %v2406_v35 = vsel %vm2138_vm10, %v2403_v21, %v2405_v40 }
 0x167   : > { %3242 = vmatprep.mubr.msk.bf16.mxu0 %vm3655_vm1, %v3654_v2 }
 0x16e   : > { %3243 = vmatmul.mubr.msk.bf16.gmra.mrb[32].mxu0 %vm531_vm4, %v2157_v49 }
 0x1d7   : > { %v1125_v26 = vpop.f32.mrb[0].mxu1 }
 0x1d8   : > { %v3022_v9 = vpop.f32.mrb[1].mxu1 }
 0x1d9   : > { %v1128_v56 = vpop.f32.mrb[2].mxu1  ;;  %v2408_v9 = vsel %vm2138_vm10, %v2405_v40, %v2407_v44 }
 0x1da   : > { %v3023_v54 = vpop.f32.mrb[3].mxu1 }
 0x1df   : > { %v1133_v63 = vpop.f32.mrb[4].mxu1 }
 0x1e0   : > { %v3026_v57 = vpop.f32.mrb[5].mxu1 }
 0x1e1   : > { %v1136_v58 = vpop.f32.mrb[6].mxu1 }
 0x1e2   : > { %v3027_v59 = vpop.f32.mrb[7].mxu1 }
 0x1e7   : > { %v4347_v28 = vpop.f32.mrb[8].mxu1 }
 0x1e8   : > { %v3030_v15 = vpop.f32.mrb[9].mxu1 }
 0x1e9   : > { %v4349_v61 = vpop.f32.mrb[10].mxu1  ;;  %v2409_v15 = vrot.slane %v2316_v0, 3 }
 0x1ea   : > { %v3031_v2 = vpop.f32.mrb[11].mxu1 }
 0x1eb   : > { %v2410_v12 = vsel %vm2138_vm10, %v2407_v44, %v2409_v15 }
 0x1ef   : > { %v4351_v62 = vpop.f32.mrb[12].mxu1 }
 0x1f0   : > { %v3034_v43 = vpop.f32.mrb[13].mxu1 }
 0x1f1   : > { %v4353_v1 = vpop.f32.mrb[14].mxu1 }
 0x1f2   : > { %v3035_v13 = vpop.f32.mrb[15].mxu1 }
 0x1f7   : > { %v4355_v4 = vpop.f32.mrb[16].mxu1 }
 0x1f8   : > { %v3038_v29 = vpop.f32.mrb[17].mxu1 }
 0x1f9   : > { %v4357_v6 = vpop.f32.mrb[18].mxu1 }
 0x1fa   : > { %v3039_v7 = vpop.f32.mrb[19].mxu1 }
 0x201   : > { %v2222_v14 = vpop.f32.mrb[0].mxu0 }
 0x202   : > { %v3248_v19 = vadd.f32 %v2222_v14, %v1125_v26  ;;  %v3212_v34 = vpop.f32.mrb[1].mxu0 }
 0x203   : > { %v2225_v5 = vpop.f32.mrb[2].mxu0 }
 0x204   : > { %v2337_v20 = vmul.f32 %v3248_v19, %v4362_v17  ;;  %v3249_v22 = vadd.f32 %v2225_v5, %v1128_v56  ;;  %v3213_v24 = vpop.f32.mrb[3].mxu0  ;;  %v3608_v56 = vld [vmem:[#allocation2 + $0x20] sm:$0xff]   ;;  %v2319_v19 = vunpack.c.l.bf16 %v3609_v18 }
 0x205   : > { %v2317_v54 = vunpack.c.l.bf16 %v3608_v56  ;;  %v2318_v38 = vunpack.c.h.bf16 %v3608_v56 }
 0x206   : > { %v2362_v37 = vadd.f32 %v4367_v30, %v2337_v20  ;;  %v2338_v3 = vmul.f32 %v3249_v22, %v4362_v17 }
 0x207   : > { %v2411_v7 = vrot.slane %v2317_v54, 3  ;;  %v2413_v21 = vrot.slane %v2318_v38, 3 }
 0x208   : > { %v2455_v36 = vadd.f32 %v2402_v31, %v2362_v37  ;;  %v2363_v25 = vadd.f32 %v4367_v30, %v2338_v3  ;;  %v2415_v37 = vrot.slane %v2319_v19, 3 }
 0x209   : > { %v2230_v39 = vpop.f32.mrb[4].mxu0  ;;  %v2412_v16 = vsel %vm2138_vm10, %v2409_v15, %v2411_v7 }
 0x20a   : > { %v2473_v55 = vmax.f32 %v2455_v36, 0.0  ;;  %v2456_v41 = vadd.f32 %v2404_v51, %v2363_v25  ;;  %v3250_v42 = vadd.f32 %v2230_v39, %v1133_v63  ;;  %v3216_v27 = vpop.f32.mrb[5].mxu0  ;;  %v2414_v36 = vsel %vm2138_vm10, %v2411_v7, %v2413_v21 }
 0x20b   : > { %v2233_v53 = vpop.f32.mrb[6].mxu0  ;;  %v2320_v25 = vunpack.c.h.bf16 %v3609_v18 }
 0x20c   : > { %2491 = vst.msk [vmem:[#allocation3] sm:$0xff] %vm531_vm4, %v2473_v55  ;;  %v2474_v45 = vmax.f32 %v2456_v41, 0.0  ;;  %v2339_v47 = vmul.f32 %v3250_v42, %v4362_v17  ;;  %v3251_v60 = vadd.f32 %v2233_v53, %v1136_v58  ;;  %v3217_v48 = vpop.f32.mrb[7].mxu0  ;;  %v2416_v55 = vsel %vm2138_vm10, %v2413_v21, %v2415_v37  ;;  %v3610_v42 = vld [vmem:[#allocation2 + $0x30] sm:$0xff]  }
 0x20d   : > { %v2321_v27 = vunpack.c.l.bf16 %v3610_v42  ;;  %v2417_v48 = vrot.slane %v2320_v25, 3 }
 0x20e   : > { %2492 = vst.msk [vmem:[#allocation3 + $0x8] sm:$0xff] %vm531_vm4, %v2474_v45  ;;  %v2364_v49 = vadd.f32 %v4367_v30, %v2339_v47  ;;  %v2340_v26 = vmul.f32 %v3251_v60, %v4362_v17 }
 0x210   : > { %v2457_v63 = vadd.f32 %v2406_v35, %v2364_v49  ;;  %v2365_v57 = vadd.f32 %v4367_v30, %v2340_v26 }
 0x211   : > { %v2238_v59 = vpop.f32.mrb[8].mxu0 }
 0x212   : > { %v2475_v58 = vmax.f32 %v2457_v63, 0.0  ;;  %v2458_v2 = vadd.f32 %v2408_v9, %v2365_v57  ;;  %v3252_v43 = vadd.f32 %v2238_v59, %v4347_v28  ;;  %v3220_v13 = vpop.f32.mrb[9].mxu0  ;;  %v2419_v59 = vrot.slane %v2321_v27, 3 }
 0x213   : > { %v2241_v29 = vpop.f32.mrb[10].mxu0 }
 0x214   : > { %2493 = vst.msk [vmem:[#allocation3 + $0x10] sm:$0xff] %vm531_vm4, %v2475_v58  ;;  %v2476_v8 = vmax.f32 %v2458_v2, 0.0  ;;  %v2341_v11 = vmul.f32 %v3252_v43, %v4362_v17  ;;  %v3253_v23 = vadd.f32 %v2241_v29, %v4349_v61  ;;  %v3221_v10 = vpop.f32.mrb[11].mxu0  ;;  %v2322_v29 = vunpack.c.h.bf16 %v3610_v42 }
 0x215   : > { %v2511_v53 = vld [vmem:[#allocation3 + $0x1] ss:$2 sm:$0xff] }
 0x216   : > { %2494 = vst.msk [vmem:[#allocation3 + $0x18] sm:$0xff] %vm531_vm4, %v2476_v8  ;;  %v2366_v14 = vadd.f32 %v4367_v30, %v2341_v11  ;;  %v2342_v28 = vmul.f32 %v3253_v23, %v4362_v17  ;;  %v2421_v18 = vrot.slane %v2322_v29, 3 }
 0x218   : > { %v2459_v34 = vadd.f32 %v2410_v12, %v2366_v14  ;;  %v2367_v61 = vadd.f32 %v4367_v30, %v2342_v28  ;;  %v2323_v12 = vunpack.c.l.bf16 %v3980_v46 }
 0x219   : > { %v2246_v5 = vpop.f32.mrb[12].mxu0 }
 0x21a   : > { %v2477_v20 = vmax.f32 %v2459_v34, 0.0  ;;  %v2460_v22 = vadd.f32 %v2412_v16, %v2367_v61  ;;  %v3254_v24 = vadd.f32 %v2246_v5, %v4351_v62  ;;  %v3224_v31 = vpop.f32.mrb[13].mxu0 }
 0x21b   : > { %v2249_v33 = vpop.f32.mrb[14].mxu0 }
 0x21c   : > { %2495 = vst.msk [vmem:[#allocation3 + $0x20] sm:$0xff] %vm531_vm4, %v2477_v20  ;;  %v2478_v3 = vmax.f32 %v2460_v22, 0.0  ;;  %v2343_v51 = vmul.f32 %v3254_v24, %v4362_v17  ;;  %v3255_v52 = vadd.f32 %v2249_v33, %v4353_v1  ;;  %v3225_v32 = vpop.f32.mrb[15].mxu0  ;;  %v2509_v1 = vld [vmem:[#allocation3] ss:$2 sm:$0xff]  ;;  %v2423_v22 = vrot.slane %v2323_v12, 3 }
 0x21d   : > { %v2516_v56 = vmax.f32 %v2509_v1, %v2511_v53 }
 0x21e   : > { %2496 = vst.msk [vmem:[#allocation3 + $0x28] sm:$0xff] %vm531_vm4, %v2478_v3  ;;  %v2368_v62 = vadd.f32 %v4367_v30, %v2343_v51  ;;  %v2344_v39 = vmul.f32 %v3255_v52, %v4362_v17  ;;  %v2422_v3 = vsel %vm2138_vm10, %v2419_v59, %v2421_v18  ;;  %v2324_v51 = vunpack.c.h.bf16 %v3980_v46 }
 0x21f   : > { %v1414_v40 = vpop.f32.mrb[20].mxu1  ;;  %v2424_v25 = vsel %vm2138_vm10, %v2421_v18, %v2423_v22 }
 0x220   : > { %v3080_v41 = vpop.f32.mrb[21].mxu1  ;;  %v2461_v44 = vadd.f32 %v2414_v36, %v2368_v62  ;;  %v2369_v45 = vadd.f32 %v4367_v30, %v2344_v39  ;;  %v2325_v39 = vunpack.c.l.bf16 %v3993_v50  ;;  %v2425_v46 = vrot.slane %v2324_v51, 3 }
 0x221   : > { %v1417_v47 = vpop.f32.mrb[22].mxu1  ;;  %v2254_v60 = vpop.f32.mrb[16].mxu0 }
 0x222   : > { %v3081_v35 = vpop.f32.mrb[23].mxu1  ;;  %v2479_v0 = vmax.f32 %v2461_v44, 0.0  ;;  %v2462_v49 = vadd.f32 %v2416_v55, %v2369_v45  ;;  %v3256_v26 = vadd.f32 %v2254_v60, %v4355_v4  ;;  %v3228_v9 = vpop.f32.mrb[17].mxu0  ;;  %v2418_v4 = vsel %vm2138_vm10, %v2415_v37, %v2417_v48 }
 0x223   : > { %v2513_v54 = vld [vmem:[#allocation3 + $0x12] ss:$2 sm:$0xff]  ;;  %v2515_v63 = vld [vmem:[#allocation3 + $0x13] ss:$2 sm:$0xff]  ;;  %v2257_v57 = vpop.f32.mrb[18].mxu0 }
 0x224   : > { %v2517_v15 = vmax.f32 %v2513_v54, %v2515_v63  ;;  %2497 = vst.msk [vmem:[#allocation3 + $0x30] sm:$0xff] %vm531_vm4, %v2479_v0  ;;  %v2480_v58 = vmax.f32 %v2462_v49, 0.0  ;;  %v2345_v2 = vmul.f32 %v3256_v26, %v4362_v17  ;;  %v3257_v43 = vadd.f32 %v2257_v57, %v4357_v6  ;;  %v3229_v13 = vpop.f32.mrb[19].mxu0 }
 0x225   : > { %v2420_v6 = vsel %vm2138_vm10, %v2417_v48, %v2419_v59  ;;  %v2427_v26 = vrot.slane %v2325_v39, 3  ;;  %v2426_v57 = vsel %vm2138_vm10, %v2423_v22, %v2425_v46  ;;  %v3611_v59 = vld [vmem:[#allocation2 + $0x40] sm:$0xff]  }
 0x226   : > { %v2518_v7 = vmax.f32 %v2516_v56, %v2517_v15  ;;  %2498 = vst.msk [vmem:[#allocation3 + $0x38] sm:$0xff] %vm531_vm4, %v2480_v58  ;;  %v2370_v8 = vadd.f32 %v4367_v30, %v2345_v2  ;;  %v2346_v11 = vmul.f32 %v3257_v43, %v4362_v17  ;;  %v2326_v15 = vunpack.c.h.bf16 %v3611_v59 }
 0x227   : > { %v1422_v23 = vpop.f32.mrb[24].mxu1 }
 0x228   : > { %v3084_v10 = vpop.f32.mrb[25].mxu1  ;;  %2519 = vst.msk [vmem:[%s4416_s29] sm:$0xff] %vm531_vm4, %v2518_v7  ;;  %v2463_v38 = vadd.f32 %v2418_v4, %v2370_v8  ;;  %v2371_v14 = vadd.f32 %v4367_v30, %v2346_v11  ;;  %v2428_v4 = vsel %vm2138_vm10, %v2425_v46, %v2427_v26  ;;  %v3612_v7 = vld [vmem:[#allocation2 + $0x48] sm:$0xff]   ;;  %v2429_v12 = vrot.slane %v2326_v15, 3 }
 0x229   : > { %v1425_v28 = vpop.f32.mrb[26].mxu1  ;;  %v2262_v16 = vpop.f32.mrb[20].mxu0  ;;  %v2327_v8 = vunpack.c.l.bf16 %v3612_v7 }
 0x22a   : > { %v3085_v19 = vpop.f32.mrb[27].mxu1  ;;  %v2481_v34 = vmax.f32 %v2463_v38, 0.0  ;;  %v2464_v61 = vadd.f32 %v2420_v6, %v2371_v14  ;;  %v3258_v5 = vadd.f32 %v2262_v16, %v1414_v40  ;;  %v3232_v21 = vpop.f32.mrb[21].mxu0  ;;  %v2430_v22 = vsel %vm2138_vm10, %v2427_v26, %v2429_v12 }
 0x22b   : > { %v2265_v20 = vpop.f32.mrb[22].mxu0  ;;  %v2521_v40 = vld [vmem:[#allocation3 + $0x24] ss:$2 sm:$0xff]  ;;  %v2523_v55 = vld [vmem:[#allocation3 + $0x25] ss:$2 sm:$0xff] }
 0x22c   : > { %2499 = vst.msk [vmem:[#allocation3 + $0x40] sm:$0xff] %vm531_vm4, %v2481_v34  ;;  %v2482_v24 = vmax.f32 %v2464_v61, 0.0  ;;  %v2347_v31 = vmul.f32 %v3258_v5, %v4362_v17  ;;  %v3259_v33 = vadd.f32 %v2265_v20, %v1417_v47  ;;  %v3233_v37 = vpop.f32.mrb[23].mxu0  ;;  %v2528_v48 = vmax.f32 %v2521_v40, %v2523_v55 }
 0x22d   : > { %v2431_v34 = vrot.slane %v2327_v8, 3 }
 0x22e   : > { %2500 = vst.msk [vmem:[#allocation3 + $0x48] sm:$0xff] %vm531_vm4, %v2482_v24  ;;  %v2372_v52 = vadd.f32 %v4367_v30, %v2347_v31  ;;  %v2348_v32 = vmul.f32 %v3259_v33, %v4362_v17  ;;  %v2328_v24 = vunpack.c.h.bf16 %v3612_v7 }
 0x22f   : > { %v1430_v36 = vpop.f32.mrb[28].mxu1  ;;  %v2432_v37 = vsel %vm2138_vm10, %v2429_v12, %v2431_v34 }
 0x230   : > { %v3088_v62 = vpop.f32.mrb[29].mxu1  ;;  %v2465_v41 = vadd.f32 %v2422_v3, %v2372_v52  ;;  %v2373_v42 = vadd.f32 %v4367_v30, %v2348_v32  ;;  %v3613_v3 = vld [vmem:[#allocation2 + $0x50] sm:$0x3] }
 0x231   : > { %v1433_v27 = vpop.f32.mrb[30].mxu1  ;;  %v2270_v1 = vpop.f32.mrb[24].mxu0  ;;  %v2329_v51 = vunpack.c.l.bf16 %v3613_v3 }
 0x232   : > { %v3089_v53 = vpop.f32.mrb[31].mxu1  ;;  %v2483_v44 = vmax.f32 %v2465_v41, 0.0  ;;  %v2466_v45 = vadd.f32 %v2424_v25, %v2373_v42  ;;  %v3260_v47 = vadd.f32 %v2270_v1, %v1422_v23  ;;  %v3236_v60 = vpop.f32.mrb[25].mxu0  ;;  %v2433_v25 = vrot.slane %v2328_v24, 3 }
 0x233   : > { %v2525_v35 = vld [vmem:[#allocation3 + $0x36] ss:$2 sm:$0xff]  ;;  %v2527_v0 = vld [vmem:[#allocation3 + $0x37] ss:$2 sm:$0xff]  ;;  %v2273_v49 = vpop.f32.mrb[26].mxu0  ;;  %v2435_v1 = vrot.slane %v2329_v51, 3 }
 0x234   : > { %v2529_v9 = vmax.f32 %v2525_v35, %v2527_v0  ;;  %2501 = vst.msk [vmem:[#allocation3 + $0x50] sm:$0xff] %vm531_vm4, %v2483_v44  ;;  %v2484_v50 = vmax.f32 %v2466_v45, 0.0  ;;  %v2349_v56 = vmul.f32 %v3260_v47, %v4362_v17  ;;  %v3261_v54 = vadd.f32 %v2273_v49, %v1425_v28  ;;  %v3237_v63 = vpop.f32.mrb[27].mxu0 }
 0x236   : > { %v2530_v58 = vmax.f32 %v2528_v48, %v2529_v9  ;;  %2502 = vst.msk [vmem:[#allocation3 + $0x58] sm:$0xff] %vm531_vm4, %v2484_v50  ;;  %v2374_v2 = vadd.f32 %v4367_v30, %v2349_v56  ;;  %v2350_v43 = vmul.f32 %v3261_v54, %v4362_v17  ;;  %v2434_v48 = vsel %vm2138_vm10, %v2431_v34, %v2433_v25 }
 0x237   : > { %v1438_v13 = vpop.f32.mrb[32].mxu1  ;;  %v2436_v9 = vsel %vm2138_vm10, %v2433_v25, %v2435_v1 }
 0x238   : > { %v3092_v29 = vpop.f32.mrb[33].mxu1  ;;  %2809 = vst.msk [vmem:[%s4416_s29 + $0x8] sm:$0xff] %vm531_vm4, %v2530_v58  ;;  %v2467_v11 = vadd.f32 %v2426_v57, %v2374_v2  ;;  %v2375_v23 = vadd.f32 %v4367_v30, %v2350_v43 }
 0x239   : > { %v1441_v6 = vpop.f32.mrb[34].mxu1  ;;  %v2278_v10 = vpop.f32.mrb[28].mxu0 }
 0x23a   : > { %v3093_v38 = vpop.f32.mrb[35].mxu1  ;;  %v2485_v14 = vmax.f32 %v2467_v11, 0.0  ;;  %v2468_v28 = vadd.f32 %v2428_v4, %v2375_v23  ;;  %v3262_v16 = vadd.f32 %v2278_v10, %v1430_v36  ;;  %v3240_v18 = vpop.f32.mrb[29].mxu0 }
 0x23b   : > { %v2281_v19 = vpop.f32.mrb[30].mxu0  ;;  %v2534_v41 = vld [vmem:[#allocation3 + $0x48] ss:$2 sm:$0xff]  ;;  %v2536_v42 = vld [vmem:[#allocation3 + $0x49] ss:$2 sm:$0xff] }
 0x23c   : > { %2503 = vst.msk [vmem:[#allocation3 + $0x60] sm:$0xff] %vm531_vm4, %v2485_v14  ;;  %v2486_v61 = vmax.f32 %v2468_v28, 0.0  ;;  %v2351_v5 = vmul.f32 %v3262_v16, %v4362_v17  ;;  %v3263_v21 = vadd.f32 %v2281_v19, %v1433_v27  ;;  %v3241_v20 = vpop.f32.mrb[31].mxu0  ;;  %v2541_v35 = vmax.f32 %v2534_v41, %v2536_v42 }
 0x23e   : > { %2504 = vst.msk [vmem:[#allocation3 + $0x68] sm:$0xff] %vm531_vm4, %v2486_v61  ;;  %v2376_v31 = vadd.f32 %v4367_v30, %v2351_v5  ;;  %v2352_v33 = vmul.f32 %v3263_v21, %v4362_v17 }
 0x240   : > { %v2469_v52 = vadd.f32 %v2430_v22, %v2376_v31  ;;  %v2377_v32 = vadd.f32 %v4367_v30, %v2352_v33 }
 0x241   : > { %v2286_v36 = vpop.f32.mrb[32].mxu0 }
 0x242   : > { %v2487_v62 = vmax.f32 %v2469_v52, 0.0  ;;  %v2470_v39 = vadd.f32 %v2432_v37, %v2377_v32  ;;  %v3264_v40 = vadd.f32 %v2286_v36, %v1438_v13  ;;  %v3244_v55 = vpop.f32.mrb[33].mxu0 }
 0x243   : > { %v2289_v27 = vpop.f32.mrb[34].mxu0 }
 0x244   : > { %2505 = vst.msk [vmem:[#allocation3 + $0x70] sm:$0xff] %vm531_vm4, %v2487_v62  ;;  %v2488_v46 = vmax.f32 %v2470_v39, 0.0  ;;  %v2353_v53 = vmul.f32 %v3264_v40, %v4362_v17  ;;  %v3265_v44 = vadd.f32 %v2289_v27, %v1441_v6  ;;  %v3245_v45 = vpop.f32.mrb[35].mxu0 }
 0x245   : > { %v2538_v47 = vld [vmem:[#allocation3 + $0x5a] ss:$2 sm:$0xff]  ;;  %v2540_v60 = vld [vmem:[#allocation3 + $0x5b] ss:$2 sm:$0xff] }
 0x246   : > { %v2542_v0 = vmax.f32 %v2538_v47, %v2540_v60  ;;  %2506 = vst.msk [vmem:[#allocation3 + $0x78] sm:$0xff] %vm531_vm4, %v2488_v46  ;;  %v2378_v49 = vadd.f32 %v4367_v30, %v2353_v53  ;;  %v2354_v26 = vmul.f32 %v3265_v44, %v4362_v17 }
 0x248   : > { %v2543_v50 = vmax.f32 %v2541_v35, %v2542_v0  ;;  %v2471_v56 = vadd.f32 %v2434_v48, %v2378_v49  ;;  %v2379_v54 = vadd.f32 %v4367_v30, %v2354_v26 }
 0x24a   : > { %2810 = vst.msk [vmem:[%s4416_s29 + $0x10] sm:$0xff] %vm531_vm4, %v2543_v50  ;;  %v2489_v63 = vmax.f32 %v2471_v56, 0.0  ;;  %v2472_v57 = vadd.f32 %v2436_v9, %v2379_v54 }
 0x24c   : > { %2507 = vst.msk [vmem:[#allocation3 + $0x80] sm:$0xff] %vm531_vm4, %v2489_v63  ;;  %v2490_v59 = vmax.f32 %v2472_v57, 0.0 }
 0x24d   : > { %v2547_v15 = vld [vmem:[#allocation3 + $0x6c] ss:$2 sm:$0xff]  ;;  %v2549_v58 = vld [vmem:[#allocation3 + $0x6d] ss:$2 sm:$0xff] }
 0x24e   : > { %2508 = vst.msk [vmem:[#allocation3 + $0x88] sm:$0xff] %vm531_vm4, %v2490_v59  ;;  %v2554_v43 = vmax.f32 %v2547_v15, %v2549_v58 }
 0x255   : > { %v2551_v2 = vld [vmem:[#allocation3 + $0x7e] ss:$2 sm:$0xff]  ;;  %v2553_v17 = vld [vmem:[#allocation3 + $0x7f] ss:$2 sm:$0xff] }
 0x256   : > { %v2555_v13 = vmax.f32 %v2551_v2, %v2553_v17 }
 0x258   : > { %v2556_v4 = vmax.f32 %v2554_v43, %v2555_v13 }
 0x25a   : > { %2811 = vst.msk [vmem:[%s4416_s29 + $0x18] sm:$0xff] %vm531_vm4, %v2556_v4 }
 0x25b PF: > { %s15_s22 = sadd.s32 1, %s3652_s22   ;;  %s4490_s18 = smov %s3644_s20 }
 0x25c   : > { %p12_p9 = scmp.ge.s32.totalorder %s15_s22, 6   ;;  %s4491_s19 = smov %s3648_s21 }
 0x25d   : > { %s4492_s20 = smov %s4495_s23  ;;  %s4493_s21 = smov %s4499_s24 }
 0x25e   :  { %14 = sbr.rel (!%p12_p9) target bundleno = 3 (0x3), region = 99 }

</bundles_post_ra>
